<compile_context>
chip_gen: v6e
topology: v6e:2x2x1
jax: 0.10.0
libtpu: 0.0.40
codegen_flags: <defaults>
</compile_context>

<pallas_src>
import functools

import jax
import jax.numpy as jnp
from jax.experimental import pallas as pl
from jax.experimental.pallas import tpu as pltpu

KSIZE = 7            # kernel_size=7 branch of the module
PAD = 3              # padding = 3 for kernel_size 7
_KK = KSIZE * KSIZE


def _vmem_limit_bytes():
    """Generation-aware scoped-VMEM limit (~3/4 of physical, capped at 96 MiB)."""
    cap = 64 * 1024 * 1024                    # conservative fallback (= v7x physical)
    try:
        info = pltpu.get_tpu_info()
        reported = int(getattr(info, "vmem_capacity_bytes", 0) or 0)
        if reported > 0:
            cap = reported
    except Exception:
        pass
    return min((cap * 3) // 4, 96 * 1024 * 1024)


def _pick_c_block(C, HW, itemsize, tile_budget_bytes):
    """Largest channel block whose (c_blk, H*W) tile stays under the budget.

    Prefers dtype-aware sublane packing (8 rows f32 / 16 bf16 / 32 int8), then
    plain 8-row alignment; the block must divide C so the grid is exact.  Only
    if no aligned divisor fits do we return C itself (block == full dim keeps
    the layout rules satisfied, at a VMEM cost).
    """
    max_rows = max(1, tile_budget_bytes // (HW * itemsize))
    if C <= max_rows:
        return C
    packing = max(8, (8 * 4) // itemsize)     # 8 f32 / 16 bf16 / 32 int8
    for step in (packing, 8):
        best = 0
        for cb in range(step, int(max_rows) + 1, step):
            if C % cb == 0:
                best = cb
        if best:
            return best
    # TODO(synk): ragged tail via pl.cdiv grid + row masking for awkward C.
    return C


# ---------------------------------------------------------------------------
# Shared epilogue helpers (statically unrolled; run once per image)
# ---------------------------------------------------------------------------
def _conv7x7_sigmoid(w_ref, mean_flat, max_flat, pad_ref, H, W):
    """7x7 cross-correlation (PyTorch Conv2d semantics, no bias) + sigmoid.

    mean_flat / max_flat: (1, H*W) f32 values; pad_ref: (2, H+6, W+6) f32
    scratch.  Returns the (H, W) f32 attention map.  The padded scratch is
    zeroed here every time (megacore-safe: no reliance on a grid-index init).
    """
    pad_ref[...] = jnp.zeros(pad_ref.shape, jnp.float32)
    for h in range(H):                               # scatter interior rows
        sl = slice(h * W, (h + 1) * W)
        pad_ref[0, PAD + h:PAD + h + 1, PAD:PAD + W] = mean_flat[:, sl]
        pad_ref[1, PAD + h:PAD + h + 1, PAD:PAD + W] = max_flat[:, sl]

    # kh-band hoisting: 2*7 = 14 band loads; the 7 kw taps are lane slices of
    # the in-register band (no per-tap strided VMEM slice / relayout copy).
    acc = jnp.zeros((H, W), jnp.float32)
    for c in range(2):
        for kh in range(KSIZE):
            band = pad_ref[c, kh:kh + H, :]          # (H, W + 6)
            for kw in range(KSIZE):
                w = w_ref[c * _KK + kh * KSIZE + kw]
                acc = acc + w * band[:, kw:kw + W]
    return jax.nn.sigmoid(acc)


def _flatten_rows(att_hw, flat_ref, H, W):
    """(H, W) value -> (1, H*W) lane-dense VMEM ref, one row slab at a time."""
    for h in range(H):
        flat_ref[:, h * W:(h + 1) * W] = att_hw[h:h + 1, :]


# ---------------------------------------------------------------------------
# Fused single-pass kernel: mean/max -> conv -> sigmoid -> x * att
# ---------------------------------------------------------------------------
def _fused_kernel(w_ref, x_ref, o_ref, pad_ref, flat_ref, *, C, H, W):
    """w_ref:    (2*7*7,) f32 in SMEM — Conv2d(2,1,7) weight flattened [c,kh,kw]
       x_ref:    (C, H*W) slab of one image (native dtype), lane-dense
       o_ref:    (C, H*W) output slab (native dtype)
       pad_ref:  (2, H+6, W+6) f32 zero-padded [avg, max] maps (VMEM scratch)
       flat_ref: (1, H*W) f32 flattened attention map (VMEM scratch)
    """
    inv_c = 1.0 / C
    mean_flat = jnp.sum(x_ref[...].astype(jnp.float32), axis=0,
                        keepdims=True) * inv_c
    max_flat = jnp.max(x_ref[...], axis=0, keepdims=True).astype(jnp.float32)

    att_hw = _conv7x7_sigmoid(w_ref, mean_flat, max_flat, pad_ref, H, W)
    _flatten_rows(att_hw, flat_ref, H, W)

    att = flat_ref[...].astype(o_ref.dtype)          # keep bulk math in x dtype
    o_ref[...] = x_ref[...] * att                    # broadcast over channels


# ---------------------------------------------------------------------------
# Two-pass fallback, pass 1: C-tiled streaming mean/max -> conv -> sigmoid
# ---------------------------------------------------------------------------
def _attention_map_kernel(w_ref, x_ref, att_ref, sum_ref, max_ref, pad_ref,
                          flat_ref, *, C, H, W):
    """x_ref: (c_blk, H*W) block (native dtype); att_ref: (1, H*W) in x.dtype.
       sum_ref / max_ref: (1, H*W) f32 running accumulators (VMEM scratch)."""
    cb = pl.program_id(1)

    @pl.when(cb == 0)
    def _init():
        sum_ref[...] = jnp.zeros(sum_ref.shape, jnp.float32)
        max_ref[...] = jnp.full(max_ref.shape, -jnp.inf, jnp.float32)

    x = x_ref[...]
    sum_ref[...] += jnp.sum(x.astype(jnp.float32), axis=0, keepdims=True)
    max_ref[...] = jnp.maximum(
        max_ref[...], jnp.max(x, axis=0, keepdims=True).astype(jnp.float32))

    @pl.when(cb == pl.num_programs(1) - 1)
    def _finalize():
        att_hw = _conv7x7_sigmoid(w_ref, sum_ref[...] * (1.0 / C),
                                  max_ref[...], pad_ref, H, W)
        _flatten_rows(att_hw, flat_ref, H, W)
        att_ref[...] = flat_ref[...].astype(att_ref.dtype)   # lane-dense store


# ---------------------------------------------------------------------------
# Two-pass fallback, pass 2: out = att * x (att already flat, x.dtype)
# ---------------------------------------------------------------------------
def _apply_attention_kernel(att_ref, x_ref, o_ref):
    o_ref[...] = x_ref[...] * att_ref[...]


def spatial_attention(x, conv_weight, *, force_two_pass=False, c_block=None):
    """x: (N, C, H, W); conv_weight: (1, 2, 7, 7).  Returns (N, C, H, W)."""
    N, C, H, W = x.shape
    HW = H * W
    itemsize = jnp.dtype(x.dtype).itemsize

    x_flat = x.reshape(N, C, HW)                      # lane-dense view (free)
    w_flat = conv_weight.reshape(-1).astype(jnp.float32)

    vmem_limit = _vmem_limit_bytes()
    pad_shape = (2, H + 2 * PAD, W + 2 * PAD)
    slab_bytes = C * HW * itemsize

    # ---------------- fused single-pass path --------------------------------
    # Double-buffered in + out slabs (4x slab) must fit with headroom.
    if not force_two_pass and slab_bytes <= vmem_limit // 8:
        out_flat = pl.pallas_call(
            functools.partial(_fused_kernel, C=C, H=H, W=W),
            out_shape=jax.ShapeDtypeStruct((N, C, HW), x.dtype),
            grid_spec=pltpu.PrefetchScalarGridSpec(
                num_scalar_prefetch=0,
                grid=(N,),
                in_specs=[
                    pl.BlockSpec(memory_space=pltpu.MemorySpace.SMEM),   # weights
                    pl.BlockSpec((pl.Squeezed(), C, HW), lambda n: (n, 0, 0)),
                ],
                out_specs=pl.BlockSpec((pl.Squeezed(), C, HW),
                                       lambda n: (n, 0, 0)),
                scratch_shapes=[
                    pltpu.VMEM(pad_shape, jnp.float32),   # padded conv maps
                    pltpu.VMEM((1, HW), jnp.float32),     # flat attention map
                ],
            ),
            compiler_params=pltpu.CompilerParams(
                # NOTE: v7x has 2 TensorCores; N >= 2 keeps both busy here.
                dimension_semantics=("parallel",),
                vmem_limit_bytes=vmem_limit),
            cost_estimate=pl.CostEstimate(
                flops=N * (3 * C * HW + 2 * HW * 2 * _KK),
                transcendentals=N * HW,
                bytes_accessed=2 * N * C * HW * itemsize + 2 * _KK * 4),
        )(w_flat, x_flat)
        return out_flat.reshape(N, C, H, W)

    # ---------------- two-pass fallback (slab too big for VMEM) -------------
    tile_budget = max(vmem_limit // 12, 1 << 20)      # ~8 MiB v5e/v6e, ~4 MiB v7x
    if c_block is not None:
        assert C % c_block == 0, "c_block override must divide C"
        c_blk = c_block
    else:
        c_blk = _pick_c_block(C, HW, itemsize, tile_budget)
    num_cb = C // c_blk

    # ---- pass 1: per-image attention map, emitted flat in x.dtype ----------
    att_flat = pl.pallas_call(
        functools.partial(_attention_map_kernel, C=C, H=H, W=W),
        out_shape=jax.ShapeDtypeStruct((N, 1, HW), x.dtype),
        grid_spec=pltpu.PrefetchScalarGridSpec(
            num_scalar_prefetch=0,
            grid=(N, num_cb),
            in_specs=[
                pl.BlockSpec(memory_space=pltpu.MemorySpace.SMEM),       # weights
                pl.BlockSpec((pl.Squeezed(), c_blk, HW),
                             lambda n, cb: (n, cb, 0)),                  # x
            ],
            out_specs=pl.BlockSpec((pl.Squeezed(), 1, HW),
                                   lambda n, cb: (n, 0, 0)),
            scratch_shapes=[
                pltpu.VMEM((1, HW), jnp.float32),     # sum accumulator
                pltpu.VMEM((1, HW), jnp.float32),     # max accumulator
                pltpu.VMEM(pad_shape, jnp.float32),   # padded conv maps
                pltpu.VMEM((1, HW), jnp.float32),     # flat attention map
            ],
        ),
        compiler_params=pltpu.CompilerParams(
            # cb is a reduction axis -> only N is parallel on this pass.
            dimension_semantics=("parallel", "arbitrary"),
            vmem_limit_bytes=vmem_limit),
        cost_estimate=pl.CostEstimate(
            flops=2 * N * HW * (C + 2 * _KK),
            transcendentals=N * HW,
            bytes_accessed=N * C * HW * itemsize + N * HW * itemsize
                           + 2 * _KK * 4),
    )(w_flat, x_flat)

    # ---- pass 2: broadcast multiply, native dtype end to end ---------------
    out_flat = pl.pallas_call(
        _apply_attention_kernel,
        out_shape=jax.ShapeDtypeStruct((N, C, HW), x.dtype),
        grid_spec=pltpu.PrefetchScalarGridSpec(
            num_scalar_prefetch=0,
            grid=(N, num_cb),
            in_specs=[
                pl.BlockSpec((pl.Squeezed(), 1, HW),
                             lambda n, cb: (n, 0, 0)),                   # att
                pl.BlockSpec((pl.Squeezed(), c_blk, HW),
                             lambda n, cb: (n, cb, 0)),                  # x
            ],
            out_specs=pl.BlockSpec((pl.Squeezed(), c_blk, HW),
                                   lambda n, cb: (n, cb, 0)),
        ),
        compiler_params=pltpu.CompilerParams(
            dimension_semantics=("parallel", "parallel"),
            vmem_limit_bytes=vmem_limit),
        cost_estimate=pl.CostEstimate(
            flops=N * C * HW,
            transcendentals=0,
            bytes_accessed=2 * N * C * HW * itemsize + N * HW * itemsize),
    )(att_flat, x_flat)

    return out_flat.reshape(N, C, H, W)


def spatial_attention_ref(x, conv_weight):
    """Pure-JAX reference mirroring the PyTorch forward (for verification)."""
    avg_out = jnp.mean(x, axis=1, keepdims=True)
    max_out = jnp.max(x, axis=1, keepdims=True)
    out = jnp.concatenate([avg_out, max_out], axis=1)          # (N, 2, H, W)
    conv = jax.lax.conv_general_dilated(
        out, conv_weight, window_strides=(1, 1),
        padding=((PAD, PAD), (PAD, PAD)),
        dimension_numbers=("NCHW", "OIHW", "NCHW"))
    return jax.nn.sigmoid(conv) * x


if __name__ == "__main__":
    key = jax.random.PRNGKey(0)
    kx, kw = jax.random.split(key)

    N, C, H, W = 2, 4, 16, 16
    x = jax.random.normal(kx, (N, C, H, W), dtype=jnp.float32)
    # Conv2d(2, 1, 7, padding=3, bias=False) weight, deterministic init
    conv_weight = 0.1 * jax.random.normal(kw, (1, 2, KSIZE, KSIZE),
                                          dtype=jnp.float32)
    ref = spatial_attention_ref(x, conv_weight)

    # Fused single-pass path (default for shapes that fit VMEM).
    out = jax.block_until_ready(spatial_attention(x, conv_weight))
    assert out.shape == (N, C, H, W)
    assert jnp.allclose(out, ref, rtol=1e-4, atol=1e-4), \
        float(jnp.max(jnp.abs(out - ref)))

    # Two-pass fallback path (forced, same small shape).
    out2p = jax.block_until_ready(
        spatial_attention(x, conv_weight, force_two_pass=True))
    assert jnp.allclose(out2p, ref, rtol=1e-4, atol=1e-4), \
        float(jnp.max(jnp.abs(out2p - ref)))

    # Two-pass fallback with a genuine multi-block streaming C reduction.
    N2, C2, H2, W2 = 2, 16, 8, 8
    x2 = jax.random.normal(kx, (N2, C2, H2, W2), dtype=jnp.float32)
    ref2 = spatial_attention_ref(x2, conv_weight)
    out2 = jax.block_until_ready(
        spatial_attention(x2, conv_weight, force_two_pass=True, c_block=8))
    assert jnp.allclose(out2, ref2, rtol=1e-4, atol=1e-4), \
        float(jnp.max(jnp.abs(out2 - ref2)))

    print("KERNEL_OK")
</pallas_src>

<mosaic_0001>
module attributes {stable_mosaic.version = 11 : i64} {
  func.func @_fused_kernel(%arg0: i32, %arg1: memref<98xf32, #tpu.memory_space<smem>>, %arg2: memref<1x4x256xf32, #tpu.memory_space<vmem>>, %arg3: memref<1x4x256xf32, #tpu.memory_space<vmem>>, %arg4: memref<2x22x22xf32, #tpu.memory_space<vmem>>, %arg5: memref<1x256xf32, #tpu.memory_space<vmem>>) attributes {dimension_semantics = [#tpu.dimension_semantics<parallel>], iteration_bounds = array<i64: 2>, scalar_prefetch = 0 : i64, scratch_operands = 2 : i64, tpu.core_type = #tpu.core_type<tc>, window_params = [{transform_indices = @transform_0, window_bounds = array<i64: 98>}, {transform_indices = @transform_1, window_bounds = array<i64: 1, 4, 256>}, {transform_indices = @transform_2, window_bounds = array<i64: 1, 4, 256>}]} {
    %c0 = arith.constant 0 : index
    %c0_0 = arith.constant 0 : index
    %c0_1 = arith.constant 0 : index
    %0 = vector.load %arg2[%c0, %c0_0, %c0_1] : memref<1x4x256xf32, #tpu.memory_space<vmem>>, vector<1x4x256xf32>
    %1 = vector.shape_cast %0 : vector<1x4x256xf32> to vector<4x256xf32>
    %cst = arith.constant dense<0.000000e+00> : vector<256xf32>
    %2 = vector.multi_reduction <add>, %1, %cst [0] : vector<4x256xf32> to vector<256xf32>
    %3 = vector.shape_cast %2 : vector<256xf32> to vector<1x256xf32>
    %cst_2 = arith.constant 2.500000e-01 : f32
    %4 = vector.broadcast %cst_2 : f32 to vector<1x256xf32>
    %5 = arith.mulf %3, %4 : vector<1x256xf32>
    %c0_3 = arith.constant 0 : index
    %c0_4 = arith.constant 0 : index
    %c0_5 = arith.constant 0 : index
    %6 = vector.load %arg2[%c0_3, %c0_4, %c0_5] : memref<1x4x256xf32, #tpu.memory_space<vmem>>, vector<1x4x256xf32>
    %7 = vector.shape_cast %6 : vector<1x4x256xf32> to vector<4x256xf32>
    %cst_6 = arith.constant dense<0xFF800000> : vector<256xf32>
    %8 = vector.multi_reduction <maximumf>, %7, %cst_6 [0] : vector<4x256xf32> to vector<256xf32>
    %9 = vector.shape_cast %8 : vector<256xf32> to vector<1x256xf32>
    %cst_7 = arith.constant 0.000000e+00 : f32
    %10 = vector.broadcast %cst_7 : f32 to vector<2x22x22xf32>
    %c0_8 = arith.constant 0 : index
    %c0_9 = arith.constant 0 : index
    %c0_10 = arith.constant 0 : index
    %11 = vector.load %arg4[%c0_8, %c0_9, %c0_10] : memref<2x22x22xf32, #tpu.memory_space<vmem>>, vector<2x22x22xf32>
    tpu.vector_store %arg4[%c0_8, %c0_9, %c0_10], %10 {strides = array<i32>} : memref<2x22x22xf32, #tpu.memory_space<vmem>>, vector<2x22x22xf32>,
    %12 = vector.extract_strided_slice %5 {offsets = [0, 0], sizes = [1, 16], strides = [1, 1]} : vector<1x256xf32> to vector<1x16xf32>
    %c0_11 = arith.constant 0 : index
    %c3 = arith.constant 3 : index
    %c3_12 = arith.constant 3 : index
    %13 = vector.load %arg4[%c0_11, %c3, %c3_12] : memref<2x22x22xf32, #tpu.memory_space<vmem>>, vector<1x1x16xf32>
    %14 = vector.shape_cast %13 : vector<1x1x16xf32> to vector<1x16xf32>
    %15 = vector.shape_cast %12 : vector<1x16xf32> to vector<1x1x16xf32>
    tpu.vector_store %arg4[%c0_11, %c3, %c3_12], %15 {strides = array<i32>} : memref<2x22x22xf32, #tpu.memory_space<vmem>>, vector<1x1x16xf32>,
    %16 = vector.extract_strided_slice %9 {offsets = [0, 0], sizes = [1, 16], strides = [1, 1]} : vector<1x256xf32> to vector<1x16xf32>
    %c1 = arith.constant 1 : index
    %c3_13 = arith.constant 3 : index
    %c3_14 = arith.constant 3 : index
    %17 = vector.load %arg4[%c1, %c3_13, %c3_14] : memref<2x22x22xf32, #tpu.memory_space<vmem>>, vector<1x1x16xf32>
    %18 = vector.shape_cast %17 : vector<1x1x16xf32> to vector<1x16xf32>
    %19 = vector.shape_cast %16 : vector<1x16xf32> to vector<1x1x16xf32>
    tpu.vector_store %arg4[%c1, %c3_13, %c3_14], %19 {strides = array<i32>} : memref<2x22x22xf32, #tpu.memory_space<vmem>>, vector<1x1x16xf32>,
    %20 = vector.extract_strided_slice %5 {offsets = [0, 16], sizes = [1, 16], strides = [1, 1]} : vector<1x256xf32> to vector<1x16xf32>
    %c0_15 = arith.constant 0 : index
    %c4 = arith.constant 4 : index
    %c3_16 = arith.constant 3 : index
    %21 = vector.load %arg4[%c0_15, %c4, %c3_16] : memref<2x22x22xf32, #tpu.memory_space<vmem>>, vector<1x1x16xf32>
    %22 = vector.shape_cast %21 : vector<1x1x16xf32> to vector<1x16xf32>
    %23 = vector.shape_cast %20 : vector<1x16xf32> to vector<1x1x16xf32>
    tpu.vector_store %arg4[%c0_15, %c4, %c3_16], %23 {strides = array<i32>} : memref<2x22x22xf32, #tpu.memory_space<vmem>>, vector<1x1x16xf32>,
    %24 = vector.extract_strided_slice %9 {offsets = [0, 16], sizes = [1, 16], strides = [1, 1]} : vector<1x256xf32> to vector<1x16xf32>
    %c1_17 = arith.constant 1 : index
    %c4_18 = arith.constant 4 : index
    %c3_19 = arith.constant 3 : index
    %25 = vector.load %arg4[%c1_17, %c4_18, %c3_19] : memref<2x22x22xf32, #tpu.memory_space<vmem>>, vector<1x1x16xf32>
    %26 = vector.shape_cast %25 : vector<1x1x16xf32> to vector<1x16xf32>
    %27 = vector.shape_cast %24 : vector<1x16xf32> to vector<1x1x16xf32>
    tpu.vector_store %arg4[%c1_17, %c4_18, %c3_19], %27 {strides = array<i32>} : memref<2x22x22xf32, #tpu.memory_space<vmem>>, vector<1x1x16xf32>,
    %28 = vector.extract_strided_slice %5 {offsets = [0, 32], sizes = [1, 16], strides = [1, 1]} : vector<1x256xf32> to vector<1x16xf32>
    %c0_20 = arith.constant 0 : index
    %c5 = arith.constant 5 : index
    %c3_21 = arith.constant 3 : index
    %29 = vector.load %arg4[%c0_20, %c5, %c3_21] : memref<2x22x22xf32, #tpu.memory_space<vmem>>, vector<1x1x16xf32>
    %30 = vector.shape_cast %29 : vector<1x1x16xf32> to vector<1x16xf32>
    %31 = vector.shape_cast %28 : vector<1x16xf32> to vector<1x1x16xf32>
    tpu.vector_store %arg4[%c0_20, %c5, %c3_21], %31 {strides = array<i32>} : memref<2x22x22xf32, #tpu.memory_space<vmem>>, vector<1x1x16xf32>,
    %32 = vector.extract_strided_slice %9 {offsets = [0, 32], sizes = [1, 16], strides = [1, 1]} : vector<1x256xf32> to vector<1x16xf32>
    %c1_22 = arith.constant 1 : index
    %c5_23 = arith.constant 5 : index
    %c3_24 = arith.constant 3 : index
    %33 = vector.load %arg4[%c1_22, %c5_23, %c3_24] : memref<2x22x22xf32, #tpu.memory_space<vmem>>, vector<1x1x16xf32>
    %34 = vector.shape_cast %33 : vector<1x1x16xf32> to vector<1x16xf32>
    %35 = vector.shape_cast %32 : vector<1x16xf32> to vector<1x1x16xf32>
    tpu.vector_store %arg4[%c1_22, %c5_23, %c3_24], %35 {strides = array<i32>} : memref<2x22x22xf32, #tpu.memory_space<vmem>>, vector<1x1x16xf32>,
    %36 = vector.extract_strided_slice %5 {offsets = [0, 48], sizes = [1, 16], strides = [1, 1]} : vector<1x256xf32> to vector<1x16xf32>
    %c0_25 = arith.constant 0 : index
    %c6 = arith.constant 6 : index
    %c3_26 = arith.constant 3 : index
    %37 = vector.load %arg4[%c0_25, %c6, %c3_26] : memref<2x22x22xf32, #tpu.memory_space<vmem>>, vector<1x1x16xf32>
    %38 = vector.shape_cast %37 : vector<1x1x16xf32> to vector<1x16xf32>
    %39 = vector.shape_cast %36 : vector<1x16xf32> to vector<1x1x16xf32>
    tpu.vector_store %arg4[%c0_25, %c6, %c3_26], %39 {strides = array<i32>} : memref<2x22x22xf32, #tpu.memory_space<vmem>>, vector<1x1x16xf32>,
    %40 = vector.extract_strided_slice %9 {offsets = [0, 48], sizes = [1, 16], strides = [1, 1]} : vector<1x256xf32> to vector<1x16xf32>
    %c1_27 = arith.constant 1 : index
    %c6_28 = arith.constant 6 : index
    %c3_29 = arith.constant 3 : index
    %41 = vector.load %arg4[%c1_27, %c6_28, %c3_29] : memref<2x22x22xf32, #tpu.memory_space<vmem>>, vector<1x1x16xf32>
    %42 = vector.shape_cast %41 : vector<1x1x16xf32> to vector<1x16xf32>
    %43 = vector.shape_cast %40 : vector<1x16xf32> to vector<1x1x16xf32>
    tpu.vector_store %arg4[%c1_27, %c6_28, %c3_29], %43 {strides = array<i32>} : memref<2x22x22xf32, #tpu.memory_space<vmem>>, vector<1x1x16xf32>,
    %44 = vector.extract_strided_slice %5 {offsets = [0, 64], sizes = [1, 16], strides = [1, 1]} : vector<1x256xf32> to vector<1x16xf32>
    %c0_30 = arith.constant 0 : index
    %c7 = arith.constant 7 : index
    %c3_31 = arith.constant 3 : index
    %45 = vector.load %arg4[%c0_30, %c7, %c3_31] : memref<2x22x22xf32, #tpu.memory_space<vmem>>, vector<1x1x16xf32>
    %46 = vector.shape_cast %45 : vector<1x1x16xf32> to vector<1x16xf32>
    %47 = vector.shape_cast %44 : vector<1x16xf32> to vector<1x1x16xf32>
    tpu.vector_store %arg4[%c0_30, %c7, %c3_31], %47 {strides = array<i32>} : memref<2x22x22xf32, #tpu.memory_space<vmem>>, vector<1x1x16xf32>,
    %48 = vector.extract_strided_slice %9 {offsets = [0, 64], sizes = [1, 16], strides = [1, 1]} : vector<1x256xf32> to vector<1x16xf32>
    %c1_32 = arith.constant 1 : index
    %c7_33 = arith.constant 7 : index
    %c3_34 = arith.constant 3 : index
    %49 = vector.load %arg4[%c1_32, %c7_33, %c3_34] : memref<2x22x22xf32, #tpu.memory_space<vmem>>, vector<1x1x16xf32>
    %50 = vector.shape_cast %49 : vector<1x1x16xf32> to vector<1x16xf32>
    %51 = vector.shape_cast %48 : vector<1x16xf32> to vector<1x1x16xf32>
    tpu.vector_store %arg4[%c1_32, %c7_33, %c3_34], %51 {strides = array<i32>} : memref<2x22x22xf32, #tpu.memory_space<vmem>>, vector<1x1x16xf32>,
    %52 = vector.extract_strided_slice %5 {offsets = [0, 80], sizes = [1, 16], strides = [1, 1]} : vector<1x256xf32> to vector<1x16xf32>
    %c0_35 = arith.constant 0 : index
    %c8 = arith.constant 8 : index
    %c3_36 = arith.constant 3 : index
    %53 = vector.load %arg4[%c0_35, %c8, %c3_36] : memref<2x22x22xf32, #tpu.memory_space<vmem>>, vector<1x1x16xf32>
    %54 = vector.shape_cast %53 : vector<1x1x16xf32> to vector<1x16xf32>
    %55 = vector.shape_cast %52 : vector<1x16xf32> to vector<1x1x16xf32>
    tpu.vector_store %arg4[%c0_35, %c8, %c3_36], %55 {strides = array<i32>} : memref<2x22x22xf32, #tpu.memory_space<vmem>>, vector<1x1x16xf32>,
    %56 = vector.extract_strided_slice %9 {offsets = [0, 80], sizes = [1, 16], strides = [1, 1]} : vector<1x256xf32> to vector<1x16xf32>
    %c1_37 = arith.constant 1 : index
    %c8_38 = arith.constant 8 : index
    %c3_39 = arith.constant 3 : index
    %57 = vector.load %arg4[%c1_37, %c8_38, %c3_39] : memref<2x22x22xf32, #tpu.memory_space<vmem>>, vector<1x1x16xf32>
    %58 = vector.shape_cast %57 : vector<1x1x16xf32> to vector<1x16xf32>
    %59 = vector.shape_cast %56 : vector<1x16xf32> to vector<1x1x16xf32>
    tpu.vector_store %arg4[%c1_37, %c8_38, %c3_39], %59 {strides = array<i32>} : memref<2x22x22xf32, #tpu.memory_space<vmem>>, vector<1x1x16xf32>,
    %60 = vector.extract_strided_slice %5 {offsets = [0, 96], sizes = [1, 16], strides = [1, 1]} : vector<1x256xf32> to vector<1x16xf32>
    %c0_40 = arith.constant 0 : index
    %c9 = arith.constant 9 : index
    %c3_41 = arith.constant 3 : index
    %61 = vector.load %arg4[%c0_40, %c9, %c3_41] : memref<2x22x22xf32, #tpu.memory_space<vmem>>, vector<1x1x16xf32>
    %62 = vector.shape_cast %61 : vector<1x1x16xf32> to vector<1x16xf32>
    %63 = vector.shape_cast %60 : vector<1x16xf32> to vector<1x1x16xf32>
    tpu.vector_store %arg4[%c0_40, %c9, %c3_41], %63 {strides = array<i32>} : memref<2x22x22xf32, #tpu.memory_space<vmem>>, vector<1x1x16xf32>,
    %64 = vector.extract_strided_slice %9 {offsets = [0, 96], sizes = [1, 16], strides = [1, 1]} : vector<1x256xf32> to vector<1x16xf32>
    %c1_42 = arith.constant 1 : index
    %c9_43 = arith.constant 9 : index
    %c3_44 = arith.constant 3 : index
    %65 = vector.load %arg4[%c1_42, %c9_43, %c3_44] : memref<2x22x22xf32, #tpu.memory_space<vmem>>, vector<1x1x16xf32>
    %66 = vector.shape_cast %65 : vector<1x1x16xf32> to vector<1x16xf32>
    %67 = vector.shape_cast %64 : vector<1x16xf32> to vector<1x1x16xf32>
    tpu.vector_store %arg4[%c1_42, %c9_43, %c3_44], %67 {strides = array<i32>} : memref<2x22x22xf32, #tpu.memory_space<vmem>>, vector<1x1x16xf32>,
    %68 = vector.extract_strided_slice %5 {offsets = [0, 112], sizes = [1, 16], strides = [1, 1]} : vector<1x256xf32> to vector<1x16xf32>
    %c0_45 = arith.constant 0 : index
    %c10 = arith.constant 10 : index
    %c3_46 = arith.constant 3 : index
    %69 = vector.load %arg4[%c0_45, %c10, %c3_46] : memref<2x22x22xf32, #tpu.memory_space<vmem>>, vector<1x1x16xf32>
    %70 = vector.shape_cast %69 : vector<1x1x16xf32> to vector<1x16xf32>
    %71 = vector.shape_cast %68 : vector<1x16xf32> to vector<1x1x16xf32>
    tpu.vector_store %arg4[%c0_45, %c10, %c3_46], %71 {strides = array<i32>} : memref<2x22x22xf32, #tpu.memory_space<vmem>>, vector<1x1x16xf32>,
    %72 = vector.extract_strided_slice %9 {offsets = [0, 112], sizes = [1, 16], strides = [1, 1]} : vector<1x256xf32> to vector<1x16xf32>
    %c1_47 = arith.constant 1 : index
    %c10_48 = arith.constant 10 : index
    %c3_49 = arith.constant 3 : index
    %73 = vector.load %arg4[%c1_47, %c10_48, %c3_49] : memref<2x22x22xf32, #tpu.memory_space<vmem>>, vector<1x1x16xf32>
    %74 = vector.shape_cast %73 : vector<1x1x16xf32> to vector<1x16xf32>
    %75 = vector.shape_cast %72 : vector<1x16xf32> to vector<1x1x16xf32>
    tpu.vector_store %arg4[%c1_47, %c10_48, %c3_49], %75 {strides = array<i32>} : memref<2x22x22xf32, #tpu.memory_space<vmem>>, vector<1x1x16xf32>,
    %76 = vector.extract_strided_slice %5 {offsets = [0, 128], sizes = [1, 16], strides = [1, 1]} : vector<1x256xf32> to vector<1x16xf32>
    %c0_50 = arith.constant 0 : index
    %c11 = arith.constant 11 : index
    %c3_51 = arith.constant 3 : index
    %77 = vector.load %arg4[%c0_50, %c11, %c3_51] : memref<2x22x22xf32, #tpu.memory_space<vmem>>, vector<1x1x16xf32>
    %78 = vector.shape_cast %77 : vector<1x1x16xf32> to vector<1x16xf32>
    %79 = vector.shape_cast %76 : vector<1x16xf32> to vector<1x1x16xf32>
    tpu.vector_store %arg4[%c0_50, %c11, %c3_51], %79 {strides = array<i32>} : memref<2x22x22xf32, #tpu.memory_space<vmem>>, vector<1x1x16xf32>,
    %80 = vector.extract_strided_slice %9 {offsets = [0, 128], sizes = [1, 16], strides = [1, 1]} : vector<1x256xf32> to vector<1x16xf32>
    %c1_52 = arith.constant 1 : index
    %c11_53 = arith.constant 11 : index
    %c3_54 = arith.constant 3 : index
    %81 = vector.load %arg4[%c1_52, %c11_53, %c3_54] : memref<2x22x22xf32, #tpu.memory_space<vmem>>, vector<1x1x16xf32>
    %82 = vector.shape_cast %81 : vector<1x1x16xf32> to vector<1x16xf32>
    %83 = vector.shape_cast %80 : vector<1x16xf32> to vector<1x1x16xf32>
    tpu.vector_store %arg4[%c1_52, %c11_53, %c3_54], %83 {strides = array<i32>} : memref<2x22x22xf32, #tpu.memory_space<vmem>>, vector<1x1x16xf32>,
    %84 = vector.extract_strided_slice %5 {offsets = [0, 144], sizes = [1, 16], strides = [1, 1]} : vector<1x256xf32> to vector<1x16xf32>
    %c0_55 = arith.constant 0 : index
    %c12 = arith.constant 12 : index
    %c3_56 = arith.constant 3 : index
    %85 = vector.load %arg4[%c0_55, %c12, %c3_56] : memref<2x22x22xf32, #tpu.memory_space<vmem>>, vector<1x1x16xf32>
    %86 = vector.shape_cast %85 : vector<1x1x16xf32> to vector<1x16xf32>
    %87 = vector.shape_cast %84 : vector<1x16xf32> to vector<1x1x16xf32>
    tpu.vector_store %arg4[%c0_55, %c12, %c3_56], %87 {strides = array<i32>} : memref<2x22x22xf32, #tpu.memory_space<vmem>>, vector<1x1x16xf32>,
    %88 = vector.extract_strided_slice %9 {offsets = [0, 144], sizes = [1, 16], strides = [1, 1]} : vector<1x256xf32> to vector<1x16xf32>
    %c1_57 = arith.constant 1 : index
    %c12_58 = arith.constant 12 : index
    %c3_59 = arith.constant 3 : index
    %89 = vector.load %arg4[%c1_57, %c12_58, %c3_59] : memref<2x22x22xf32, #tpu.memory_space<vmem>>, vector<1x1x16xf32>
    %90 = vector.shape_cast %89 : vector<1x1x16xf32> to vector<1x16xf32>
    %91 = vector.shape_cast %88 : vector<1x16xf32> to vector<1x1x16xf32>
    tpu.vector_store %arg4[%c1_57, %c12_58, %c3_59], %91 {strides = array<i32>} : memref<2x22x22xf32, #tpu.memory_space<vmem>>, vector<1x1x16xf32>,
    %92 = vector.extract_strided_slice %5 {offsets = [0, 160], sizes = [1, 16], strides = [1, 1]} : vector<1x256xf32> to vector<1x16xf32>
    %c0_60 = arith.constant 0 : index
    %c13 = arith.constant 13 : index
    %c3_61 = arith.constant 3 : index
    %93 = vector.load %arg4[%c0_60, %c13, %c3_61] : memref<2x22x22xf32, #tpu.memory_space<vmem>>, vector<1x1x16xf32>
    %94 = vector.shape_cast %93 : vector<1x1x16xf32> to vector<1x16xf32>
    %95 = vector.shape_cast %92 : vector<1x16xf32> to vector<1x1x16xf32>
    tpu.vector_store %arg4[%c0_60, %c13, %c3_61], %95 {strides = array<i32>} : memref<2x22x22xf32, #tpu.memory_space<vmem>>, vector<1x1x16xf32>,
    %96 = vector.extract_strided_slice %9 {offsets = [0, 160], sizes = [1, 16], strides = [1, 1]} : vector<1x256xf32> to vector<1x16xf32>
    %c1_62 = arith.constant 1 : index
    %c13_63 = arith.constant 13 : index
    %c3_64 = arith.constant 3 : index
    %97 = vector.load %arg4[%c1_62, %c13_63, %c3_64] : memref<2x22x22xf32, #tpu.memory_space<vmem>>, vector<1x1x16xf32>
    %98 = vector.shape_cast %97 : vector<1x1x16xf32> to vector<1x16xf32>
    %99 = vector.shape_cast %96 : vector<1x16xf32> to vector<1x1x16xf32>
    tpu.vector_store %arg4[%c1_62, %c13_63, %c3_64], %99 {strides = array<i32>} : memref<2x22x22xf32, #tpu.memory_space<vmem>>, vector<1x1x16xf32>,
    %100 = vector.extract_strided_slice %5 {offsets = [0, 176], sizes = [1, 16], strides = [1, 1]} : vector<1x256xf32> to vector<1x16xf32>
    %c0_65 = arith.constant 0 : index
    %c14 = arith.constant 14 : index
    %c3_66 = arith.constant 3 : index
    %101 = vector.load %arg4[%c0_65, %c14, %c3_66] : memref<2x22x22xf32, #tpu.memory_space<vmem>>, vector<1x1x16xf32>
    %102 = vector.shape_cast %101 : vector<1x1x16xf32> to vector<1x16xf32>
    %103 = vector.shape_cast %100 : vector<1x16xf32> to vector<1x1x16xf32>
    tpu.vector_store %arg4[%c0_65, %c14, %c3_66], %103 {strides = array<i32>} : memref<2x22x22xf32, #tpu.memory_space<vmem>>, vector<1x1x16xf32>,
    %104 = vector.extract_strided_slice %9 {offsets = [0, 176], sizes = [1, 16], strides = [1, 1]} : vector<1x256xf32> to vector<1x16xf32>
    %c1_67 = arith.constant 1 : index
    %c14_68 = arith.constant 14 : index
    %c3_69 = arith.constant 3 : index
    %105 = vector.load %arg4[%c1_67, %c14_68, %c3_69] : memref<2x22x22xf32, #tpu.memory_space<vmem>>, vector<1x1x16xf32>
    %106 = vector.shape_cast %105 : vector<1x1x16xf32> to vector<1x16xf32>
    %107 = vector.shape_cast %104 : vector<1x16xf32> to vector<1x1x16xf32>
    tpu.vector_store %arg4[%c1_67, %c14_68, %c3_69], %107 {strides = array<i32>} : memref<2x22x22xf32, #tpu.memory_space<vmem>>, vector<1x1x16xf32>,
    %108 = vector.extract_strided_slice %5 {offsets = [0, 192], sizes = [1, 16], strides = [1, 1]} : vector<1x256xf32> to vector<1x16xf32>
    %c0_70 = arith.constant 0 : index
    %c15 = arith.constant 15 : index
    %c3_71 = arith.constant 3 : index
    %109 = vector.load %arg4[%c0_70, %c15, %c3_71] : memref<2x22x22xf32, #tpu.memory_space<vmem>>, vector<1x1x16xf32>
    %110 = vector.shape_cast %109 : vector<1x1x16xf32> to vector<1x16xf32>
    %111 = vector.shape_cast %108 : vector<1x16xf32> to vector<1x1x16xf32>
    tpu.vector_store %arg4[%c0_70, %c15, %c3_71], %111 {strides = array<i32>} : memref<2x22x22xf32, #tpu.memory_space<vmem>>, vector<1x1x16xf32>,
    %112 = vector.extract_strided_slice %9 {offsets = [0, 192], sizes = [1, 16], strides = [1, 1]} : vector<1x256xf32> to vector<1x16xf32>
    %c1_72 = arith.constant 1 : index
    %c15_73 = arith.constant 15 : index
    %c3_74 = arith.constant 3 : index
    %113 = vector.load %arg4[%c1_72, %c15_73, %c3_74] : memref<2x22x22xf32, #tpu.memory_space<vmem>>, vector<1x1x16xf32>
    %114 = vector.shape_cast %113 : vector<1x1x16xf32> to vector<1x16xf32>
    %115 = vector.shape_cast %112 : vector<1x16xf32> to vector<1x1x16xf32>
    tpu.vector_store %arg4[%c1_72, %c15_73, %c3_74], %115 {strides = array<i32>} : memref<2x22x22xf32, #tpu.memory_space<vmem>>, vector<1x1x16xf32>,
    %116 = vector.extract_strided_slice %5 {offsets = [0, 208], sizes = [1, 16], strides = [1, 1]} : vector<1x256xf32> to vector<1x16xf32>
    %c0_75 = arith.constant 0 : index
    %c16 = arith.constant 16 : index
    %c3_76 = arith.constant 3 : index
    %117 = vector.load %arg4[%c0_75, %c16, %c3_76] : memref<2x22x22xf32, #tpu.memory_space<vmem>>, vector<1x1x16xf32>
    %118 = vector.shape_cast %117 : vector<1x1x16xf32> to vector<1x16xf32>
    %119 = vector.shape_cast %116 : vector<1x16xf32> to vector<1x1x16xf32>
    tpu.vector_store %arg4[%c0_75, %c16, %c3_76], %119 {strides = array<i32>} : memref<2x22x22xf32, #tpu.memory_space<vmem>>, vector<1x1x16xf32>,
    %120 = vector.extract_strided_slice %9 {offsets = [0, 208], sizes = [1, 16], strides = [1, 1]} : vector<1x256xf32> to vector<1x16xf32>
    %c1_77 = arith.constant 1 : index
    %c16_78 = arith.constant 16 : index
    %c3_79 = arith.constant 3 : index
    %121 = vector.load %arg4[%c1_77, %c16_78, %c3_79] : memref<2x22x22xf32, #tpu.memory_space<vmem>>, vector<1x1x16xf32>
    %122 = vector.shape_cast %121 : vector<1x1x16xf32> to vector<1x16xf32>
    %123 = vector.shape_cast %120 : vector<1x16xf32> to vector<1x1x16xf32>
    tpu.vector_store %arg4[%c1_77, %c16_78, %c3_79], %123 {strides = array<i32>} : memref<2x22x22xf32, #tpu.memory_space<vmem>>, vector<1x1x16xf32>,
    %124 = vector.extract_strided_slice %5 {offsets = [0, 224], sizes = [1, 16], strides = [1, 1]} : vector<1x256xf32> to vector<1x16xf32>
    %c0_80 = arith.constant 0 : index
    %c17 = arith.constant 17 : index
    %c3_81 = arith.constant 3 : index
    %125 = vector.load %arg4[%c0_80, %c17, %c3_81] : memref<2x22x22xf32, #tpu.memory_space<vmem>>, vector<1x1x16xf32>
    %126 = vector.shape_cast %125 : vector<1x1x16xf32> to vector<1x16xf32>
    %127 = vector.shape_cast %124 : vector<1x16xf32> to vector<1x1x16xf32>
    tpu.vector_store %arg4[%c0_80, %c17, %c3_81], %127 {strides = array<i32>} : memref<2x22x22xf32, #tpu.memory_space<vmem>>, vector<1x1x16xf32>,
    %128 = vector.extract_strided_slice %9 {offsets = [0, 224], sizes = [1, 16], strides = [1, 1]} : vector<1x256xf32> to vector<1x16xf32>
    %c1_82 = arith.constant 1 : index
    %c17_83 = arith.constant 17 : index
    %c3_84 = arith.constant 3 : index
    %129 = vector.load %arg4[%c1_82, %c17_83, %c3_84] : memref<2x22x22xf32, #tpu.memory_space<vmem>>, vector<1x1x16xf32>
    %130 = vector.shape_cast %129 : vector<1x1x16xf32> to vector<1x16xf32>
    %131 = vector.shape_cast %128 : vector<1x16xf32> to vector<1x1x16xf32>
    tpu.vector_store %arg4[%c1_82, %c17_83, %c3_84], %131 {strides = array<i32>} : memref<2x22x22xf32, #tpu.memory_space<vmem>>, vector<1x1x16xf32>,
    %132 = vector.extract_strided_slice %5 {offsets = [0, 240], sizes = [1, 16], strides = [1, 1]} : vector<1x256xf32> to vector<1x16xf32>
    %c0_85 = arith.constant 0 : index
    %c18 = arith.constant 18 : index
    %c3_86 = arith.constant 3 : index
    %133 = vector.load %arg4[%c0_85, %c18, %c3_86] : memref<2x22x22xf32, #tpu.memory_space<vmem>>, vector<1x1x16xf32>
    %134 = vector.shape_cast %133 : vector<1x1x16xf32> to vector<1x16xf32>
    %135 = vector.shape_cast %132 : vector<1x16xf32> to vector<1x1x16xf32>
    tpu.vector_store %arg4[%c0_85, %c18, %c3_86], %135 {strides = array<i32>} : memref<2x22x22xf32, #tpu.memory_space<vmem>>, vector<1x1x16xf32>,
    %136 = vector.extract_strided_slice %9 {offsets = [0, 240], sizes = [1, 16], strides = [1, 1]} : vector<1x256xf32> to vector<1x16xf32>
    %c1_87 = arith.constant 1 : index
    %c18_88 = arith.constant 18 : index
    %c3_89 = arith.constant 3 : index
    %137 = vector.load %arg4[%c1_87, %c18_88, %c3_89] : memref<2x22x22xf32, #tpu.memory_space<vmem>>, vector<1x1x16xf32>
    %138 = vector.shape_cast %137 : vector<1x1x16xf32> to vector<1x16xf32>
    %139 = vector.shape_cast %136 : vector<1x16xf32> to vector<1x1x16xf32>
    tpu.vector_store %arg4[%c1_87, %c18_88, %c3_89], %139 {strides = array<i32>} : memref<2x22x22xf32, #tpu.memory_space<vmem>>, vector<1x1x16xf32>,
    %cst_90 = arith.constant 0.000000e+00 : f32
    %140 = vector.broadcast %cst_90 : f32 to vector<16x16xf32>
    %c0_91 = arith.constant 0 : index
    %c0_92 = arith.constant 0 : index
    %c0_93 = arith.constant 0 : index
    %141 = vector.load %arg4[%c0_91, %c0_92, %c0_93] : memref<2x22x22xf32, #tpu.memory_space<vmem>>, vector<1x16x22xf32>
    %142 = vector.shape_cast %141 : vector<1x16x22xf32> to vector<16x22xf32>
    %c0_94 = arith.constant 0 : index
    %143 = memref.load %arg1[%c0_94] : memref<98xf32, #tpu.memory_space<smem>>
    %144 = vector.extract_strided_slice %142 {offsets = [0, 0], sizes = [16, 16], strides = [1, 1]} : vector<16x22xf32> to vector<16x16xf32>
    %145 = vector.broadcast %143 : f32 to vector<16x16xf32>
    %146 = arith.mulf %145, %144 : vector<16x16xf32>
    %147 = arith.addf %140, %146 : vector<16x16xf32>
    %c1_95 = arith.constant 1 : index
    %148 = memref.load %arg1[%c1_95] : memref<98xf32, #tpu.memory_space<smem>>
    %149 = vector.extract_strided_slice %142 {offsets = [0, 1], sizes = [16, 16], strides = [1, 1]} : vector<16x22xf32> to vector<16x16xf32>
    %150 = vector.broadcast %148 : f32 to vector<16x16xf32>
    %151 = arith.mulf %150, %149 : vector<16x16xf32>
    %152 = arith.addf %147, %151 : vector<16x16xf32>
    %c2 = arith.constant 2 : index
    %153 = memref.load %arg1[%c2] : memref<98xf32, #tpu.memory_space<smem>>
    %154 = vector.extract_strided_slice %142 {offsets = [0, 2], sizes = [16, 16], strides = [1, 1]} : vector<16x22xf32> to vector<16x16xf32>
    %155 = vector.broadcast %153 : f32 to vector<16x16xf32>
    %156 = arith.mulf %155, %154 : vector<16x16xf32>
    %157 = arith.addf %152, %156 : vector<16x16xf32>
    %c3_96 = arith.constant 3 : index
    %158 = memref.load %arg1[%c3_96] : memref<98xf32, #tpu.memory_space<smem>>
    %159 = vector.extract_strided_slice %142 {offsets = [0, 3], sizes = [16, 16], strides = [1, 1]} : vector<16x22xf32> to vector<16x16xf32>
    %160 = vector.broadcast %158 : f32 to vector<16x16xf32>
    %161 = arith.mulf %160, %159 : vector<16x16xf32>
    %162 = arith.addf %157, %161 : vector<16x16xf32>
    %c4_97 = arith.constant 4 : index
    %163 = memref.load %arg1[%c4_97] : memref<98xf32, #tpu.memory_space<smem>>
    %164 = vector.extract_strided_slice %142 {offsets = [0, 4], sizes = [16, 16], strides = [1, 1]} : vector<16x22xf32> to vector<16x16xf32>
    %165 = vector.broadcast %163 : f32 to vector<16x16xf32>
    %166 = arith.mulf %165, %164 : vector<16x16xf32>
    %167 = arith.addf %162, %166 : vector<16x16xf32>
    %c5_98 = arith.constant 5 : index
    %168 = memref.load %arg1[%c5_98] : memref<98xf32, #tpu.memory_space<smem>>
    %169 = vector.extract_strided_slice %142 {offsets = [0, 5], sizes = [16, 16], strides = [1, 1]} : vector<16x22xf32> to vector<16x16xf32>
    %170 = vector.broadcast %168 : f32 to vector<16x16xf32>
    %171 = arith.mulf %170, %169 : vector<16x16xf32>
    %172 = arith.addf %167, %171 : vector<16x16xf32>
    %c6_99 = arith.constant 6 : index
    %173 = memref.load %arg1[%c6_99] : memref<98xf32, #tpu.memory_space<smem>>
    %174 = vector.extract_strided_slice %142 {offsets = [0, 6], sizes = [16, 16], strides = [1, 1]} : vector<16x22xf32> to vector<16x16xf32>
    %175 = vector.broadcast %173 : f32 to vector<16x16xf32>
    %176 = arith.mulf %175, %174 : vector<16x16xf32>
    %177 = arith.addf %172, %176 : vector<16x16xf32>
    %c0_100 = arith.constant 0 : index
    %c1_101 = arith.constant 1 : index
    %c0_102 = arith.constant 0 : index
    %178 = vector.load %arg4[%c0_100, %c1_101, %c0_102] : memref<2x22x22xf32, #tpu.memory_space<vmem>>, vector<1x16x22xf32>
    %179 = vector.shape_cast %178 : vector<1x16x22xf32> to vector<16x22xf32>
    %c7_103 = arith.constant 7 : index
    %180 = memref.load %arg1[%c7_103] : memref<98xf32, #tpu.memory_space<smem>>
    %181 = vector.extract_strided_slice %179 {offsets = [0, 0], sizes = [16, 16], strides = [1, 1]} : vector<16x22xf32> to vector<16x16xf32>
    %182 = vector.broadcast %180 : f32 to vector<16x16xf32>
    %183 = arith.mulf %182, %181 : vector<16x16xf32>
    %184 = arith.addf %177, %183 : vector<16x16xf32>
    %c8_104 = arith.constant 8 : index
    %185 = memref.load %arg1[%c8_104] : memref<98xf32, #tpu.memory_space<smem>>
    %186 = vector.extract_strided_slice %179 {offsets = [0, 1], sizes = [16, 16], strides = [1, 1]} : vector<16x22xf32> to vector<16x16xf32>
    %187 = vector.broadcast %185 : f32 to vector<16x16xf32>
    %188 = arith.mulf %187, %186 : vector<16x16xf32>
    %189 = arith.addf %184, %188 : vector<16x16xf32>
    %c9_105 = arith.constant 9 : index
    %190 = memref.load %arg1[%c9_105] : memref<98xf32, #tpu.memory_space<smem>>
    %191 = vector.extract_strided_slice %179 {offsets = [0, 2], sizes = [16, 16], strides = [1, 1]} : vector<16x22xf32> to vector<16x16xf32>
    %192 = vector.broadcast %190 : f32 to vector<16x16xf32>
    %193 = arith.mulf %192, %191 : vector<16x16xf32>
    %194 = arith.addf %189, %193 : vector<16x16xf32>
    %c10_106 = arith.constant 10 : index
    %195 = memref.load %arg1[%c10_106] : memref<98xf32, #tpu.memory_space<smem>>
    %196 = vector.extract_strided_slice %179 {offsets = [0, 3], sizes = [16, 16], strides = [1, 1]} : vector<16x22xf32> to vector<16x16xf32>
    %197 = vector.broadcast %195 : f32 to vector<16x16xf32>
    %198 = arith.mulf %197, %196 : vector<16x16xf32>
    %199 = arith.addf %194, %198 : vector<16x16xf32>
    %c11_107 = arith.constant 11 : index
    %200 = memref.load %arg1[%c11_107] : memref<98xf32, #tpu.memory_space<smem>>
    %201 = vector.extract_strided_slice %179 {offsets = [0, 4], sizes = [16, 16], strides = [1, 1]} : vector<16x22xf32> to vector<16x16xf32>
    %202 = vector.broadcast %200 : f32 to vector<16x16xf32>
    %203 = arith.mulf %202, %201 : vector<16x16xf32>
    %204 = arith.addf %199, %203 : vector<16x16xf32>
    %c12_108 = arith.constant 12 : index
    %205 = memref.load %arg1[%c12_108] : memref<98xf32, #tpu.memory_space<smem>>
    %206 = vector.extract_strided_slice %179 {offsets = [0, 5], sizes = [16, 16], strides = [1, 1]} : vector<16x22xf32> to vector<16x16xf32>
    %207 = vector.broadcast %205 : f32 to vector<16x16xf32>
    %208 = arith.mulf %207, %206 : vector<16x16xf32>
    %209 = arith.addf %204, %208 : vector<16x16xf32>
    %c13_109 = arith.constant 13 : index
    %210 = memref.load %arg1[%c13_109] : memref<98xf32, #tpu.memory_space<smem>>
    %211 = vector.extract_strided_slice %179 {offsets = [0, 6], sizes = [16, 16], strides = [1, 1]} : vector<16x22xf32> to vector<16x16xf32>
    %212 = vector.broadcast %210 : f32 to vector<16x16xf32>
    %213 = arith.mulf %212, %211 : vector<16x16xf32>
    %214 = arith.addf %209, %213 : vector<16x16xf32>
    %c0_110 = arith.constant 0 : index
    %c2_111 = arith.constant 2 : index
    %c0_112 = arith.constant 0 : index
    %215 = vector.load %arg4[%c0_110, %c2_111, %c0_112] : memref<2x22x22xf32, #tpu.memory_space<vmem>>, vector<1x16x22xf32>
    %216 = vector.shape_cast %215 : vector<1x16x22xf32> to vector<16x22xf32>
    %c14_113 = arith.constant 14 : index
    %217 = memref.load %arg1[%c14_113] : memref<98xf32, #tpu.memory_space<smem>>
    %218 = vector.extract_strided_slice %216 {offsets = [0, 0], sizes = [16, 16], strides = [1, 1]} : vector<16x22xf32> to vector<16x16xf32>
    %219 = vector.broadcast %217 : f32 to vector<16x16xf32>
    %220 = arith.mulf %219, %218 : vector<16x16xf32>
    %221 = arith.addf %214, %220 : vector<16x16xf32>
    %c15_114 = arith.constant 15 : index
    %222 = memref.load %arg1[%c15_114] : memref<98xf32, #tpu.memory_space<smem>>
    %223 = vector.extract_strided_slice %216 {offsets = [0, 1], sizes = [16, 16], strides = [1, 1]} : vector<16x22xf32> to vector<16x16xf32>
    %224 = vector.broadcast %222 : f32 to vector<16x16xf32>
    %225 = arith.mulf %224, %223 : vector<16x16xf32>
    %226 = arith.addf %221, %225 : vector<16x16xf32>
    %c16_115 = arith.constant 16 : index
    %227 = memref.load %arg1[%c16_115] : memref<98xf32, #tpu.memory_space<smem>>
    %228 = vector.extract_strided_slice %216 {offsets = [0, 2], sizes = [16, 16], strides = [1, 1]} : vector<16x22xf32> to vector<16x16xf32>
    %229 = vector.broadcast %227 : f32 to vector<16x16xf32>
    %230 = arith.mulf %229, %228 : vector<16x16xf32>
    %231 = arith.addf %226, %230 : vector<16x16xf32>
    %c17_116 = arith.constant 17 : index
    %232 = memref.load %arg1[%c17_116] : memref<98xf32, #tpu.memory_space<smem>>
    %233 = vector.extract_strided_slice %216 {offsets = [0, 3], sizes = [16, 16], strides = [1, 1]} : vector<16x22xf32> to vector<16x16xf32>
    %234 = vector.broadcast %232 : f32 to vector<16x16xf32>
    %235 = arith.mulf %234, %233 : vector<16x16xf32>
    %236 = arith.addf %231, %235 : vector<16x16xf32>
    %c18_117 = arith.constant 18 : index
    %237 = memref.load %arg1[%c18_117] : memref<98xf32, #tpu.memory_space<smem>>
    %238 = vector.extract_strided_slice %216 {offsets = [0, 4], sizes = [16, 16], strides = [1, 1]} : vector<16x22xf32> to vector<16x16xf32>
    %239 = vector.broadcast %237 : f32 to vector<16x16xf32>
    %240 = arith.mulf %239, %238 : vector<16x16xf32>
    %241 = arith.addf %236, %240 : vector<16x16xf32>
    %c19 = arith.constant 19 : index
    %242 = memref.load %arg1[%c19] : memref<98xf32, #tpu.memory_space<smem>>
    %243 = vector.extract_strided_slice %216 {offsets = [0, 5], sizes = [16, 16], strides = [1, 1]} : vector<16x22xf32> to vector<16x16xf32>
    %244 = vector.broadcast %242 : f32 to vector<16x16xf32>
    %245 = arith.mulf %244, %243 : vector<16x16xf32>
    %246 = arith.addf %241, %245 : vector<16x16xf32>
    %c20 = arith.constant 20 : index
    %247 = memref.load %arg1[%c20] : memref<98xf32, #tpu.memory_space<smem>>
    %248 = vector.extract_strided_slice %216 {offsets = [0, 6], sizes = [16, 16], strides = [1, 1]} : vector<16x22xf32> to vector<16x16xf32>
    %249 = vector.broadcast %247 : f32 to vector<16x16xf32>
    %250 = arith.mulf %249, %248 : vector<16x16xf32>
    %251 = arith.addf %246, %250 : vector<16x16xf32>
    %c0_118 = arith.constant 0 : index
    %c3_119 = arith.constant 3 : index
    %c0_120 = arith.constant 0 : index
    %252 = vector.load %arg4[%c0_118, %c3_119, %c0_120] : memref<2x22x22xf32, #tpu.memory_space<vmem>>, vector<1x16x22xf32>
    %253 = vector.shape_cast %252 : vector<1x16x22xf32> to vector<16x22xf32>
    %c21 = arith.constant 21 : index
    %254 = memref.load %arg1[%c21] : memref<98xf32, #tpu.memory_space<smem>>
    %255 = vector.extract_strided_slice %253 {offsets = [0, 0], sizes = [16, 16], strides = [1, 1]} : vector<16x22xf32> to vector<16x16xf32>
    %256 = vector.broadcast %254 : f32 to vector<16x16xf32>
    %257 = arith.mulf %256, %255 : vector<16x16xf32>
    %258 = arith.addf %251, %257 : vector<16x16xf32>
    %c22 = arith.constant 22 : index
    %259 = memref.load %arg1[%c22] : memref<98xf32, #tpu.memory_space<smem>>
    %260 = vector.extract_strided_slice %253 {offsets = [0, 1], sizes = [16, 16], strides = [1, 1]} : vector<16x22xf32> to vector<16x16xf32>
    %261 = vector.broadcast %259 : f32 to vector<16x16xf32>
    %262 = arith.mulf %261, %260 : vector<16x16xf32>
    %263 = arith.addf %258, %262 : vector<16x16xf32>
    %c23 = arith.constant 23 : index
    %264 = memref.load %arg1[%c23] : memref<98xf32, #tpu.memory_space<smem>>
    %265 = vector.extract_strided_slice %253 {offsets = [0, 2], sizes = [16, 16], strides = [1, 1]} : vector<16x22xf32> to vector<16x16xf32>
    %266 = vector.broadcast %264 : f32 to vector<16x16xf32>
    %267 = arith.mulf %266, %265 : vector<16x16xf32>
    %268 = arith.addf %263, %267 : vector<16x16xf32>
    %c24 = arith.constant 24 : index
    %269 = memref.load %arg1[%c24] : memref<98xf32, #tpu.memory_space<smem>>
    %270 = vector.extract_strided_slice %253 {offsets = [0, 3], sizes = [16, 16], strides = [1, 1]} : vector<16x22xf32> to vector<16x16xf32>
    %271 = vector.broadcast %269 : f32 to vector<16x16xf32>
    %272 = arith.mulf %271, %270 : vector<16x16xf32>
    %273 = arith.addf %268, %272 : vector<16x16xf32>
    %c25 = arith.constant 25 : index
    %274 = memref.load %arg1[%c25] : memref<98xf32, #tpu.memory_space<smem>>
    %275 = vector.extract_strided_slice %253 {offsets = [0, 4], sizes = [16, 16], strides = [1, 1]} : vector<16x22xf32> to vector<16x16xf32>
    %276 = vector.broadcast %274 : f32 to vector<16x16xf32>
    %277 = arith.mulf %276, %275 : vector<16x16xf32>
    %278 = arith.addf %273, %277 : vector<16x16xf32>
    %c26 = arith.constant 26 : index
    %279 = memref.load %arg1[%c26] : memref<98xf32, #tpu.memory_space<smem>>
    %280 = vector.extract_strided_slice %253 {offsets = [0, 5], sizes = [16, 16], strides = [1, 1]} : vector<16x22xf32> to vector<16x16xf32>
    %281 = vector.broadcast %279 : f32 to vector<16x16xf32>
    %282 = arith.mulf %281, %280 : vector<16x16xf32>
    %283 = arith.addf %278, %282 : vector<16x16xf32>
    %c27 = arith.constant 27 : index
    %284 = memref.load %arg1[%c27] : memref<98xf32, #tpu.memory_space<smem>>
    %285 = vector.extract_strided_slice %253 {offsets = [0, 6], sizes = [16, 16], strides = [1, 1]} : vector<16x22xf32> to vector<16x16xf32>
    %286 = vector.broadcast %284 : f32 to vector<16x16xf32>
    %287 = arith.mulf %286, %285 : vector<16x16xf32>
    %288 = arith.addf %283, %287 : vector<16x16xf32>
    %c0_121 = arith.constant 0 : index
    %c4_122 = arith.constant 4 : index
    %c0_123 = arith.constant 0 : index
    %289 = vector.load %arg4[%c0_121, %c4_122, %c0_123] : memref<2x22x22xf32, #tpu.memory_space<vmem>>, vector<1x16x22xf32>
    %290 = vector.shape_cast %289 : vector<1x16x22xf32> to vector<16x22xf32>
    %c28 = arith.constant 28 : index
    %291 = memref.load %arg1[%c28] : memref<98xf32, #tpu.memory_space<smem>>
    %292 = vector.extract_strided_slice %290 {offsets = [0, 0], sizes = [16, 16], strides = [1, 1]} : vector<16x22xf32> to vector<16x16xf32>
    %293 = vector.broadcast %291 : f32 to vector<16x16xf32>
    %294 = arith.mulf %293, %292 : vector<16x16xf32>
    %295 = arith.addf %288, %294 : vector<16x16xf32>
    %c29 = arith.constant 29 : index
    %296 = memref.load %arg1[%c29] : memref<98xf32, #tpu.memory_space<smem>>
    %297 = vector.extract_strided_slice %290 {offsets = [0, 1], sizes = [16, 16], strides = [1, 1]} : vector<16x22xf32> to vector<16x16xf32>
    %298 = vector.broadcast %296 : f32 to vector<16x16xf32>
    %299 = arith.mulf %298, %297 : vector<16x16xf32>
    %300 = arith.addf %295, %299 : vector<16x16xf32>
    %c30 = arith.constant 30 : index
    %301 = memref.load %arg1[%c30] : memref<98xf32, #tpu.memory_space<smem>>
    %302 = vector.extract_strided_slice %290 {offsets = [0, 2], sizes = [16, 16], strides = [1, 1]} : vector<16x22xf32> to vector<16x16xf32>
    %303 = vector.broadcast %301 : f32 to vector<16x16xf32>
    %304 = arith.mulf %303, %302 : vector<16x16xf32>
    %305 = arith.addf %300, %304 : vector<16x16xf32>
    %c31 = arith.constant 31 : index
    %306 = memref.load %arg1[%c31] : memref<98xf32, #tpu.memory_space<smem>>
    %307 = vector.extract_strided_slice %290 {offsets = [0, 3], sizes = [16, 16], strides = [1, 1]} : vector<16x22xf32> to vector<16x16xf32>
    %308 = vector.broadcast %306 : f32 to vector<16x16xf32>
    %309 = arith.mulf %308, %307 : vector<16x16xf32>
    %310 = arith.addf %305, %309 : vector<16x16xf32>
    %c32 = arith.constant 32 : index
    %311 = memref.load %arg1[%c32] : memref<98xf32, #tpu.memory_space<smem>>
    %312 = vector.extract_strided_slice %290 {offsets = [0, 4], sizes = [16, 16], strides = [1, 1]} : vector<16x22xf32> to vector<16x16xf32>
    %313 = vector.broadcast %311 : f32 to vector<16x16xf32>
    %314 = arith.mulf %313, %312 : vector<16x16xf32>
    %315 = arith.addf %310, %314 : vector<16x16xf32>
    %c33 = arith.constant 33 : index
    %316 = memref.load %arg1[%c33] : memref<98xf32, #tpu.memory_space<smem>>
    %317 = vector.extract_strided_slice %290 {offsets = [0, 5], sizes = [16, 16], strides = [1, 1]} : vector<16x22xf32> to vector<16x16xf32>
    %318 = vector.broadcast %316 : f32 to vector<16x16xf32>
    %319 = arith.mulf %318, %317 : vector<16x16xf32>
    %320 = arith.addf %315, %319 : vector<16x16xf32>
    %c34 = arith.constant 34 : index
    %321 = memref.load %arg1[%c34] : memref<98xf32, #tpu.memory_space<smem>>
    %322 = vector.extract_strided_slice %290 {offsets = [0, 6], sizes = [16, 16], strides = [1, 1]} : vector<16x22xf32> to vector<16x16xf32>
    %323 = vector.broadcast %321 : f32 to vector<16x16xf32>
    %324 = arith.mulf %323, %322 : vector<16x16xf32>
    %325 = arith.addf %320, %324 : vector<16x16xf32>
    %c0_124 = arith.constant 0 : index
    %c5_125 = arith.constant 5 : index
    %c0_126 = arith.constant 0 : index
    %326 = vector.load %arg4[%c0_124, %c5_125, %c0_126] : memref<2x22x22xf32, #tpu.memory_space<vmem>>, vector<1x16x22xf32>
    %327 = vector.shape_cast %326 : vector<1x16x22xf32> to vector<16x22xf32>
    %c35 = arith.constant 35 : index
    %328 = memref.load %arg1[%c35] : memref<98xf32, #tpu.memory_space<smem>>
    %329 = vector.extract_strided_slice %327 {offsets = [0, 0], sizes = [16, 16], strides = [1, 1]} : vector<16x22xf32> to vector<16x16xf32>
    %330 = vector.broadcast %328 : f32 to vector<16x16xf32>
    %331 = arith.mulf %330, %329 : vector<16x16xf32>
    %332 = arith.addf %325, %331 : vector<16x16xf32>
    %c36 = arith.constant 36 : index
    %333 = memref.load %arg1[%c36] : memref<98xf32, #tpu.memory_space<smem>>
    %334 = vector.extract_strided_slice %327 {offsets = [0, 1], sizes = [16, 16], strides = [1, 1]} : vector<16x22xf32> to vector<16x16xf32>
    %335 = vector.broadcast %333 : f32 to vector<16x16xf32>
    %336 = arith.mulf %335, %334 : vector<16x16xf32>
    %337 = arith.addf %332, %336 : vector<16x16xf32>
    %c37 = arith.constant 37 : index
    %338 = memref.load %arg1[%c37] : memref<98xf32, #tpu.memory_space<smem>>
    %339 = vector.extract_strided_slice %327 {offsets = [0, 2], sizes = [16, 16], strides = [1, 1]} : vector<16x22xf32> to vector<16x16xf32>
    %340 = vector.broadcast %338 : f32 to vector<16x16xf32>
    %341 = arith.mulf %340, %339 : vector<16x16xf32>
    %342 = arith.addf %337, %341 : vector<16x16xf32>
    %c38 = arith.constant 38 : index
    %343 = memref.load %arg1[%c38] : memref<98xf32, #tpu.memory_space<smem>>
    %344 = vector.extract_strided_slice %327 {offsets = [0, 3], sizes = [16, 16], strides = [1, 1]} : vector<16x22xf32> to vector<16x16xf32>
    %345 = vector.broadcast %343 : f32 to vector<16x16xf32>
    %346 = arith.mulf %345, %344 : vector<16x16xf32>
    %347 = arith.addf %342, %346 : vector<16x16xf32>
    %c39 = arith.constant 39 : index
    %348 = memref.load %arg1[%c39] : memref<98xf32, #tpu.memory_space<smem>>
    %349 = vector.extract_strided_slice %327 {offsets = [0, 4], sizes = [16, 16], strides = [1, 1]} : vector<16x22xf32> to vector<16x16xf32>
    %350 = vector.broadcast %348 : f32 to vector<16x16xf32>
    %351 = arith.mulf %350, %349 : vector<16x16xf32>
    %352 = arith.addf %347, %351 : vector<16x16xf32>
    %c40 = arith.constant 40 : index
    %353 = memref.load %arg1[%c40] : memref<98xf32, #tpu.memory_space<smem>>
    %354 = vector.extract_strided_slice %327 {offsets = [0, 5], sizes = [16, 16], strides = [1, 1]} : vector<16x22xf32> to vector<16x16xf32>
    %355 = vector.broadcast %353 : f32 to vector<16x16xf32>
    %356 = arith.mulf %355, %354 : vector<16x16xf32>
    %357 = arith.addf %352, %356 : vector<16x16xf32>
    %c41 = arith.constant 41 : index
    %358 = memref.load %arg1[%c41] : memref<98xf32, #tpu.memory_space<smem>>
    %359 = vector.extract_strided_slice %327 {offsets = [0, 6], sizes = [16, 16], strides = [1, 1]} : vector<16x22xf32> to vector<16x16xf32>
    %360 = vector.broadcast %358 : f32 to vector<16x16xf32>
    %361 = arith.mulf %360, %359 : vector<16x16xf32>
    %362 = arith.addf %357, %361 : vector<16x16xf32>
    %c0_127 = arith.constant 0 : index
    %c6_128 = arith.constant 6 : index
    %c0_129 = arith.constant 0 : index
    %363 = vector.load %arg4[%c0_127, %c6_128, %c0_129] : memref<2x22x22xf32, #tpu.memory_space<vmem>>, vector<1x16x22xf32>
    %364 = vector.shape_cast %363 : vector<1x16x22xf32> to vector<16x22xf32>
    %c42 = arith.constant 42 : index
    %365 = memref.load %arg1[%c42] : memref<98xf32, #tpu.memory_space<smem>>
    %366 = vector.extract_strided_slice %364 {offsets = [0, 0], sizes = [16, 16], strides = [1, 1]} : vector<16x22xf32> to vector<16x16xf32>
    %367 = vector.broadcast %365 : f32 to vector<16x16xf32>
    %368 = arith.mulf %367, %366 : vector<16x16xf32>
    %369 = arith.addf %362, %368 : vector<16x16xf32>
    %c43 = arith.constant 43 : index
    %370 = memref.load %arg1[%c43] : memref<98xf32, #tpu.memory_space<smem>>
    %371 = vector.extract_strided_slice %364 {offsets = [0, 1], sizes = [16, 16], strides = [1, 1]} : vector<16x22xf32> to vector<16x16xf32>
    %372 = vector.broadcast %370 : f32 to vector<16x16xf32>
    %373 = arith.mulf %372, %371 : vector<16x16xf32>
    %374 = arith.addf %369, %373 : vector<16x16xf32>
    %c44 = arith.constant 44 : index
    %375 = memref.load %arg1[%c44] : memref<98xf32, #tpu.memory_space<smem>>
    %376 = vector.extract_strided_slice %364 {offsets = [0, 2], sizes = [16, 16], strides = [1, 1]} : vector<16x22xf32> to vector<16x16xf32>
    %377 = vector.broadcast %375 : f32 to vector<16x16xf32>
    %378 = arith.mulf %377, %376 : vector<16x16xf32>
    %379 = arith.addf %374, %378 : vector<16x16xf32>
    %c45 = arith.constant 45 : index
    %380 = memref.load %arg1[%c45] : memref<98xf32, #tpu.memory_space<smem>>
    %381 = vector.extract_strided_slice %364 {offsets = [0, 3], sizes = [16, 16], strides = [1, 1]} : vector<16x22xf32> to vector<16x16xf32>
    %382 = vector.broadcast %380 : f32 to vector<16x16xf32>
    %383 = arith.mulf %382, %381 : vector<16x16xf32>
    %384 = arith.addf %379, %383 : vector<16x16xf32>
    %c46 = arith.constant 46 : index
    %385 = memref.load %arg1[%c46] : memref<98xf32, #tpu.memory_space<smem>>
    %386 = vector.extract_strided_slice %364 {offsets = [0, 4], sizes = [16, 16], strides = [1, 1]} : vector<16x22xf32> to vector<16x16xf32>
    %387 = vector.broadcast %385 : f32 to vector<16x16xf32>
    %388 = arith.mulf %387, %386 : vector<16x16xf32>
    %389 = arith.addf %384, %388 : vector<16x16xf32>
    %c47 = arith.constant 47 : index
    %390 = memref.load %arg1[%c47] : memref<98xf32, #tpu.memory_space<smem>>
    %391 = vector.extract_strided_slice %364 {offsets = [0, 5], sizes = [16, 16], strides = [1, 1]} : vector<16x22xf32> to vector<16x16xf32>
    %392 = vector.broadcast %390 : f32 to vector<16x16xf32>
    %393 = arith.mulf %392, %391 : vector<16x16xf32>
    %394 = arith.addf %389, %393 : vector<16x16xf32>
    %c48 = arith.constant 48 : index
    %395 = memref.load %arg1[%c48] : memref<98xf32, #tpu.memory_space<smem>>
    %396 = vector.extract_strided_slice %364 {offsets = [0, 6], sizes = [16, 16], strides = [1, 1]} : vector<16x22xf32> to vector<16x16xf32>
    %397 = vector.broadcast %395 : f32 to vector<16x16xf32>
    %398 = arith.mulf %397, %396 : vector<16x16xf32>
    %399 = arith.addf %394, %398 : vector<16x16xf32>
    %c1_130 = arith.constant 1 : index
    %c0_131 = arith.constant 0 : index
    %c0_132 = arith.constant 0 : index
    %400 = vector.load %arg4[%c1_130, %c0_131, %c0_132] : memref<2x22x22xf32, #tpu.memory_space<vmem>>, vector<1x16x22xf32>
    %401 = vector.shape_cast %400 : vector<1x16x22xf32> to vector<16x22xf32>
    %c49 = arith.constant 49 : index
    %402 = memref.load %arg1[%c49] : memref<98xf32, #tpu.memory_space<smem>>
    %403 = vector.extract_strided_slice %401 {offsets = [0, 0], sizes = [16, 16], strides = [1, 1]} : vector<16x22xf32> to vector<16x16xf32>
    %404 = vector.broadcast %402 : f32 to vector<16x16xf32>
    %405 = arith.mulf %404, %403 : vector<16x16xf32>
    %406 = arith.addf %399, %405 : vector<16x16xf32>
    %c50 = arith.constant 50 : index
    %407 = memref.load %arg1[%c50] : memref<98xf32, #tpu.memory_space<smem>>
    %408 = vector.extract_strided_slice %401 {offsets = [0, 1], sizes = [16, 16], strides = [1, 1]} : vector<16x22xf32> to vector<16x16xf32>
    %409 = vector.broadcast %407 : f32 to vector<16x16xf32>
    %410 = arith.mulf %409, %408 : vector<16x16xf32>
    %411 = arith.addf %406, %410 : vector<16x16xf32>
    %c51 = arith.constant 51 : index
    %412 = memref.load %arg1[%c51] : memref<98xf32, #tpu.memory_space<smem>>
    %413 = vector.extract_strided_slice %401 {offsets = [0, 2], sizes = [16, 16], strides = [1, 1]} : vector<16x22xf32> to vector<16x16xf32>
    %414 = vector.broadcast %412 : f32 to vector<16x16xf32>
    %415 = arith.mulf %414, %413 : vector<16x16xf32>
    %416 = arith.addf %411, %415 : vector<16x16xf32>
    %c52 = arith.constant 52 : index
    %417 = memref.load %arg1[%c52] : memref<98xf32, #tpu.memory_space<smem>>
    %418 = vector.extract_strided_slice %401 {offsets = [0, 3], sizes = [16, 16], strides = [1, 1]} : vector<16x22xf32> to vector<16x16xf32>
    %419 = vector.broadcast %417 : f32 to vector<16x16xf32>
    %420 = arith.mulf %419, %418 : vector<16x16xf32>
    %421 = arith.addf %416, %420 : vector<16x16xf32>
    %c53 = arith.constant 53 : index
    %422 = memref.load %arg1[%c53] : memref<98xf32, #tpu.memory_space<smem>>
    %423 = vector.extract_strided_slice %401 {offsets = [0, 4], sizes = [16, 16], strides = [1, 1]} : vector<16x22xf32> to vector<16x16xf32>
    %424 = vector.broadcast %422 : f32 to vector<16x16xf32>
    %425 = arith.mulf %424, %423 : vector<16x16xf32>
    %426 = arith.addf %421, %425 : vector<16x16xf32>
    %c54 = arith.constant 54 : index
    %427 = memref.load %arg1[%c54] : memref<98xf32, #tpu.memory_space<smem>>
    %428 = vector.extract_strided_slice %401 {offsets = [0, 5], sizes = [16, 16], strides = [1, 1]} : vector<16x22xf32> to vector<16x16xf32>
    %429 = vector.broadcast %427 : f32 to vector<16x16xf32>
    %430 = arith.mulf %429, %428 : vector<16x16xf32>
    %431 = arith.addf %426, %430 : vector<16x16xf32>
    %c55 = arith.constant 55 : index
    %432 = memref.load %arg1[%c55] : memref<98xf32, #tpu.memory_space<smem>>
    %433 = vector.extract_strided_slice %401 {offsets = [0, 6], sizes = [16, 16], strides = [1, 1]} : vector<16x22xf32> to vector<16x16xf32>
    %434 = vector.broadcast %432 : f32 to vector<16x16xf32>
    %435 = arith.mulf %434, %433 : vector<16x16xf32>
    %436 = arith.addf %431, %435 : vector<16x16xf32>
    %c1_133 = arith.constant 1 : index
    %c1_134 = arith.constant 1 : index
    %c0_135 = arith.constant 0 : index
    %437 = vector.load %arg4[%c1_133, %c1_134, %c0_135] : memref<2x22x22xf32, #tpu.memory_space<vmem>>, vector<1x16x22xf32>
    %438 = vector.shape_cast %437 : vector<1x16x22xf32> to vector<16x22xf32>
    %c56 = arith.constant 56 : index
    %439 = memref.load %arg1[%c56] : memref<98xf32, #tpu.memory_space<smem>>
    %440 = vector.extract_strided_slice %438 {offsets = [0, 0], sizes = [16, 16], strides = [1, 1]} : vector<16x22xf32> to vector<16x16xf32>
    %441 = vector.broadcast %439 : f32 to vector<16x16xf32>
    %442 = arith.mulf %441, %440 : vector<16x16xf32>
    %443 = arith.addf %436, %442 : vector<16x16xf32>
    %c57 = arith.constant 57 : index
    %444 = memref.load %arg1[%c57] : memref<98xf32, #tpu.memory_space<smem>>
    %445 = vector.extract_strided_slice %438 {offsets = [0, 1], sizes = [16, 16], strides = [1, 1]} : vector<16x22xf32> to vector<16x16xf32>
    %446 = vector.broadcast %444 : f32 to vector<16x16xf32>
    %447 = arith.mulf %446, %445 : vector<16x16xf32>
    %448 = arith.addf %443, %447 : vector<16x16xf32>
    %c58 = arith.constant 58 : index
    %449 = memref.load %arg1[%c58] : memref<98xf32, #tpu.memory_space<smem>>
    %450 = vector.extract_strided_slice %438 {offsets = [0, 2], sizes = [16, 16], strides = [1, 1]} : vector<16x22xf32> to vector<16x16xf32>
    %451 = vector.broadcast %449 : f32 to vector<16x16xf32>
    %452 = arith.mulf %451, %450 : vector<16x16xf32>
    %453 = arith.addf %448, %452 : vector<16x16xf32>
    %c59 = arith.constant 59 : index
    %454 = memref.load %arg1[%c59] : memref<98xf32, #tpu.memory_space<smem>>
    %455 = vector.extract_strided_slice %438 {offsets = [0, 3], sizes = [16, 16], strides = [1, 1]} : vector<16x22xf32> to vector<16x16xf32>
    %456 = vector.broadcast %454 : f32 to vector<16x16xf32>
    %457 = arith.mulf %456, %455 : vector<16x16xf32>
    %458 = arith.addf %453, %457 : vector<16x16xf32>
    %c60 = arith.constant 60 : index
    %459 = memref.load %arg1[%c60] : memref<98xf32, #tpu.memory_space<smem>>
    %460 = vector.extract_strided_slice %438 {offsets = [0, 4], sizes = [16, 16], strides = [1, 1]} : vector<16x22xf32> to vector<16x16xf32>
    %461 = vector.broadcast %459 : f32 to vector<16x16xf32>
    %462 = arith.mulf %461, %460 : vector<16x16xf32>
    %463 = arith.addf %458, %462 : vector<16x16xf32>
    %c61 = arith.constant 61 : index
    %464 = memref.load %arg1[%c61] : memref<98xf32, #tpu.memory_space<smem>>
    %465 = vector.extract_strided_slice %438 {offsets = [0, 5], sizes = [16, 16], strides = [1, 1]} : vector<16x22xf32> to vector<16x16xf32>
    %466 = vector.broadcast %464 : f32 to vector<16x16xf32>
    %467 = arith.mulf %466, %465 : vector<16x16xf32>
    %468 = arith.addf %463, %467 : vector<16x16xf32>
    %c62 = arith.constant 62 : index
    %469 = memref.load %arg1[%c62] : memref<98xf32, #tpu.memory_space<smem>>
    %470 = vector.extract_strided_slice %438 {offsets = [0, 6], sizes = [16, 16], strides = [1, 1]} : vector<16x22xf32> to vector<16x16xf32>
    %471 = vector.broadcast %469 : f32 to vector<16x16xf32>
    %472 = arith.mulf %471, %470 : vector<16x16xf32>
    %473 = arith.addf %468, %472 : vector<16x16xf32>
    %c1_136 = arith.constant 1 : index
    %c2_137 = arith.constant 2 : index
    %c0_138 = arith.constant 0 : index
    %474 = vector.load %arg4[%c1_136, %c2_137, %c0_138] : memref<2x22x22xf32, #tpu.memory_space<vmem>>, vector<1x16x22xf32>
    %475 = vector.shape_cast %474 : vector<1x16x22xf32> to vector<16x22xf32>
    %c63 = arith.constant 63 : index
    %476 = memref.load %arg1[%c63] : memref<98xf32, #tpu.memory_space<smem>>
    %477 = vector.extract_strided_slice %475 {offsets = [0, 0], sizes = [16, 16], strides = [1, 1]} : vector<16x22xf32> to vector<16x16xf32>
    %478 = vector.broadcast %476 : f32 to vector<16x16xf32>
    %479 = arith.mulf %478, %477 : vector<16x16xf32>
    %480 = arith.addf %473, %479 : vector<16x16xf32>
    %c64 = arith.constant 64 : index
    %481 = memref.load %arg1[%c64] : memref<98xf32, #tpu.memory_space<smem>>
    %482 = vector.extract_strided_slice %475 {offsets = [0, 1], sizes = [16, 16], strides = [1, 1]} : vector<16x22xf32> to vector<16x16xf32>
    %483 = vector.broadcast %481 : f32 to vector<16x16xf32>
    %484 = arith.mulf %483, %482 : vector<16x16xf32>
    %485 = arith.addf %480, %484 : vector<16x16xf32>
    %c65 = arith.constant 65 : index
    %486 = memref.load %arg1[%c65] : memref<98xf32, #tpu.memory_space<smem>>
    %487 = vector.extract_strided_slice %475 {offsets = [0, 2], sizes = [16, 16], strides = [1, 1]} : vector<16x22xf32> to vector<16x16xf32>
    %488 = vector.broadcast %486 : f32 to vector<16x16xf32>
    %489 = arith.mulf %488, %487 : vector<16x16xf32>
    %490 = arith.addf %485, %489 : vector<16x16xf32>
    %c66 = arith.constant 66 : index
    %491 = memref.load %arg1[%c66] : memref<98xf32, #tpu.memory_space<smem>>
    %492 = vector.extract_strided_slice %475 {offsets = [0, 3], sizes = [16, 16], strides = [1, 1]} : vector<16x22xf32> to vector<16x16xf32>
    %493 = vector.broadcast %491 : f32 to vector<16x16xf32>
    %494 = arith.mulf %493, %492 : vector<16x16xf32>
    %495 = arith.addf %490, %494 : vector<16x16xf32>
    %c67 = arith.constant 67 : index
    %496 = memref.load %arg1[%c67] : memref<98xf32, #tpu.memory_space<smem>>
    %497 = vector.extract_strided_slice %475 {offsets = [0, 4], sizes = [16, 16], strides = [1, 1]} : vector<16x22xf32> to vector<16x16xf32>
    %498 = vector.broadcast %496 : f32 to vector<16x16xf32>
    %499 = arith.mulf %498, %497 : vector<16x16xf32>
    %500 = arith.addf %495, %499 : vector<16x16xf32>
    %c68 = arith.constant 68 : index
    %501 = memref.load %arg1[%c68] : memref<98xf32, #tpu.memory_space<smem>>
    %502 = vector.extract_strided_slice %475 {offsets = [0, 5], sizes = [16, 16], strides = [1, 1]} : vector<16x22xf32> to vector<16x16xf32>
    %503 = vector.broadcast %501 : f32 to vector<16x16xf32>
    %504 = arith.mulf %503, %502 : vector<16x16xf32>
    %505 = arith.addf %500, %504 : vector<16x16xf32>
    %c69 = arith.constant 69 : index
    %506 = memref.load %arg1[%c69] : memref<98xf32, #tpu.memory_space<smem>>
    %507 = vector.extract_strided_slice %475 {offsets = [0, 6], sizes = [16, 16], strides = [1, 1]} : vector<16x22xf32> to vector<16x16xf32>
    %508 = vector.broadcast %506 : f32 to vector<16x16xf32>
    %509 = arith.mulf %508, %507 : vector<16x16xf32>
    %510 = arith.addf %505, %509 : vector<16x16xf32>
    %c1_139 = arith.constant 1 : index
    %c3_140 = arith.constant 3 : index
    %c0_141 = arith.constant 0 : index
    %511 = vector.load %arg4[%c1_139, %c3_140, %c0_141] : memref<2x22x22xf32, #tpu.memory_space<vmem>>, vector<1x16x22xf32>
    %512 = vector.shape_cast %511 : vector<1x16x22xf32> to vector<16x22xf32>
    %c70 = arith.constant 70 : index
    %513 = memref.load %arg1[%c70] : memref<98xf32, #tpu.memory_space<smem>>
    %514 = vector.extract_strided_slice %512 {offsets = [0, 0], sizes = [16, 16], strides = [1, 1]} : vector<16x22xf32> to vector<16x16xf32>
    %515 = vector.broadcast %513 : f32 to vector<16x16xf32>
    %516 = arith.mulf %515, %514 : vector<16x16xf32>
    %517 = arith.addf %510, %516 : vector<16x16xf32>
    %c71 = arith.constant 71 : index
    %518 = memref.load %arg1[%c71] : memref<98xf32, #tpu.memory_space<smem>>
    %519 = vector.extract_strided_slice %512 {offsets = [0, 1], sizes = [16, 16], strides = [1, 1]} : vector<16x22xf32> to vector<16x16xf32>
    %520 = vector.broadcast %518 : f32 to vector<16x16xf32>
    %521 = arith.mulf %520, %519 : vector<16x16xf32>
    %522 = arith.addf %517, %521 : vector<16x16xf32>
    %c72 = arith.constant 72 : index
    %523 = memref.load %arg1[%c72] : memref<98xf32, #tpu.memory_space<smem>>
    %524 = vector.extract_strided_slice %512 {offsets = [0, 2], sizes = [16, 16], strides = [1, 1]} : vector<16x22xf32> to vector<16x16xf32>
    %525 = vector.broadcast %523 : f32 to vector<16x16xf32>
    %526 = arith.mulf %525, %524 : vector<16x16xf32>
    %527 = arith.addf %522, %526 : vector<16x16xf32>
    %c73 = arith.constant 73 : index
    %528 = memref.load %arg1[%c73] : memref<98xf32, #tpu.memory_space<smem>>
    %529 = vector.extract_strided_slice %512 {offsets = [0, 3], sizes = [16, 16], strides = [1, 1]} : vector<16x22xf32> to vector<16x16xf32>
    %530 = vector.broadcast %528 : f32 to vector<16x16xf32>
    %531 = arith.mulf %530, %529 : vector<16x16xf32>
    %532 = arith.addf %527, %531 : vector<16x16xf32>
    %c74 = arith.constant 74 : index
    %533 = memref.load %arg1[%c74] : memref<98xf32, #tpu.memory_space<smem>>
    %534 = vector.extract_strided_slice %512 {offsets = [0, 4], sizes = [16, 16], strides = [1, 1]} : vector<16x22xf32> to vector<16x16xf32>
    %535 = vector.broadcast %533 : f32 to vector<16x16xf32>
    %536 = arith.mulf %535, %534 : vector<16x16xf32>
    %537 = arith.addf %532, %536 : vector<16x16xf32>
    %c75 = arith.constant 75 : index
    %538 = memref.load %arg1[%c75] : memref<98xf32, #tpu.memory_space<smem>>
    %539 = vector.extract_strided_slice %512 {offsets = [0, 5], sizes = [16, 16], strides = [1, 1]} : vector<16x22xf32> to vector<16x16xf32>
    %540 = vector.broadcast %538 : f32 to vector<16x16xf32>
    %541 = arith.mulf %540, %539 : vector<16x16xf32>
    %542 = arith.addf %537, %541 : vector<16x16xf32>
    %c76 = arith.constant 76 : index
    %543 = memref.load %arg1[%c76] : memref<98xf32, #tpu.memory_space<smem>>
    %544 = vector.extract_strided_slice %512 {offsets = [0, 6], sizes = [16, 16], strides = [1, 1]} : vector<16x22xf32> to vector<16x16xf32>
    %545 = vector.broadcast %543 : f32 to vector<16x16xf32>
    %546 = arith.mulf %545, %544 : vector<16x16xf32>
    %547 = arith.addf %542, %546 : vector<16x16xf32>
    %c1_142 = arith.constant 1 : index
    %c4_143 = arith.constant 4 : index
    %c0_144 = arith.constant 0 : index
    %548 = vector.load %arg4[%c1_142, %c4_143, %c0_144] : memref<2x22x22xf32, #tpu.memory_space<vmem>>, vector<1x16x22xf32>
    %549 = vector.shape_cast %548 : vector<1x16x22xf32> to vector<16x22xf32>
    %c77 = arith.constant 77 : index
    %550 = memref.load %arg1[%c77] : memref<98xf32, #tpu.memory_space<smem>>
    %551 = vector.extract_strided_slice %549 {offsets = [0, 0], sizes = [16, 16], strides = [1, 1]} : vector<16x22xf32> to vector<16x16xf32>
    %552 = vector.broadcast %550 : f32 to vector<16x16xf32>
    %553 = arith.mulf %552, %551 : vector<16x16xf32>
    %554 = arith.addf %547, %553 : vector<16x16xf32>
    %c78 = arith.constant 78 : index
    %555 = memref.load %arg1[%c78] : memref<98xf32, #tpu.memory_space<smem>>
    %556 = vector.extract_strided_slice %549 {offsets = [0, 1], sizes = [16, 16], strides = [1, 1]} : vector<16x22xf32> to vector<16x16xf32>
    %557 = vector.broadcast %555 : f32 to vector<16x16xf32>
    %558 = arith.mulf %557, %556 : vector<16x16xf32>
    %559 = arith.addf %554, %558 : vector<16x16xf32>
    %c79 = arith.constant 79 : index
    %560 = memref.load %arg1[%c79] : memref<98xf32, #tpu.memory_space<smem>>
    %561 = vector.extract_strided_slice %549 {offsets = [0, 2], sizes = [16, 16], strides = [1, 1]} : vector<16x22xf32> to vector<16x16xf32>
    %562 = vector.broadcast %560 : f32 to vector<16x16xf32>
    %563 = arith.mulf %562, %561 : vector<16x16xf32>
    %564 = arith.addf %559, %563 : vector<16x16xf32>
    %c80 = arith.constant 80 : index
    %565 = memref.load %arg1[%c80] : memref<98xf32, #tpu.memory_space<smem>>
    %566 = vector.extract_strided_slice %549 {offsets = [0, 3], sizes = [16, 16], strides = [1, 1]} : vector<16x22xf32> to vector<16x16xf32>
    %567 = vector.broadcast %565 : f32 to vector<16x16xf32>
    %568 = arith.mulf %567, %566 : vector<16x16xf32>
    %569 = arith.addf %564, %568 : vector<16x16xf32>
    %c81 = arith.constant 81 : index
    %570 = memref.load %arg1[%c81] : memref<98xf32, #tpu.memory_space<smem>>
    %571 = vector.extract_strided_slice %549 {offsets = [0, 4], sizes = [16, 16], strides = [1, 1]} : vector<16x22xf32> to vector<16x16xf32>
    %572 = vector.broadcast %570 : f32 to vector<16x16xf32>
    %573 = arith.mulf %572, %571 : vector<16x16xf32>
    %574 = arith.addf %569, %573 : vector<16x16xf32>
    %c82 = arith.constant 82 : index
    %575 = memref.load %arg1[%c82] : memref<98xf32, #tpu.memory_space<smem>>
    %576 = vector.extract_strided_slice %549 {offsets = [0, 5], sizes = [16, 16], strides = [1, 1]} : vector<16x22xf32> to vector<16x16xf32>
    %577 = vector.broadcast %575 : f32 to vector<16x16xf32>
    %578 = arith.mulf %577, %576 : vector<16x16xf32>
    %579 = arith.addf %574, %578 : vector<16x16xf32>
    %c83 = arith.constant 83 : index
    %580 = memref.load %arg1[%c83] : memref<98xf32, #tpu.memory_space<smem>>
    %581 = vector.extract_strided_slice %549 {offsets = [0, 6], sizes = [16, 16], strides = [1, 1]} : vector<16x22xf32> to vector<16x16xf32>
    %582 = vector.broadcast %580 : f32 to vector<16x16xf32>
    %583 = arith.mulf %582, %581 : vector<16x16xf32>
    %584 = arith.addf %579, %583 : vector<16x16xf32>
    %c1_145 = arith.constant 1 : index
    %c5_146 = arith.constant 5 : index
    %c0_147 = arith.constant 0 : index
    %585 = vector.load %arg4[%c1_145, %c5_146, %c0_147] : memref<2x22x22xf32, #tpu.memory_space<vmem>>, vector<1x16x22xf32>
    %586 = vector.shape_cast %585 : vector<1x16x22xf32> to vector<16x22xf32>
    %c84 = arith.constant 84 : index
    %587 = memref.load %arg1[%c84] : memref<98xf32, #tpu.memory_space<smem>>
    %588 = vector.extract_strided_slice %586 {offsets = [0, 0], sizes = [16, 16], strides = [1, 1]} : vector<16x22xf32> to vector<16x16xf32>
    %589 = vector.broadcast %587 : f32 to vector<16x16xf32>
    %590 = arith.mulf %589, %588 : vector<16x16xf32>
    %591 = arith.addf %584, %590 : vector<16x16xf32>
    %c85 = arith.constant 85 : index
    %592 = memref.load %arg1[%c85] : memref<98xf32, #tpu.memory_space<smem>>
    %593 = vector.extract_strided_slice %586 {offsets = [0, 1], sizes = [16, 16], strides = [1, 1]} : vector<16x22xf32> to vector<16x16xf32>
    %594 = vector.broadcast %592 : f32 to vector<16x16xf32>
    %595 = arith.mulf %594, %593 : vector<16x16xf32>
    %596 = arith.addf %591, %595 : vector<16x16xf32>
    %c86 = arith.constant 86 : index
    %597 = memref.load %arg1[%c86] : memref<98xf32, #tpu.memory_space<smem>>
    %598 = vector.extract_strided_slice %586 {offsets = [0, 2], sizes = [16, 16], strides = [1, 1]} : vector<16x22xf32> to vector<16x16xf32>
    %599 = vector.broadcast %597 : f32 to vector<16x16xf32>
    %600 = arith.mulf %599, %598 : vector<16x16xf32>
    %601 = arith.addf %596, %600 : vector<16x16xf32>
    %c87 = arith.constant 87 : index
    %602 = memref.load %arg1[%c87] : memref<98xf32, #tpu.memory_space<smem>>
    %603 = vector.extract_strided_slice %586 {offsets = [0, 3], sizes = [16, 16], strides = [1, 1]} : vector<16x22xf32> to vector<16x16xf32>
    %604 = vector.broadcast %602 : f32 to vector<16x16xf32>
    %605 = arith.mulf %604, %603 : vector<16x16xf32>
    %606 = arith.addf %601, %605 : vector<16x16xf32>
    %c88 = arith.constant 88 : index
    %607 = memref.load %arg1[%c88] : memref<98xf32, #tpu.memory_space<smem>>
    %608 = vector.extract_strided_slice %586 {offsets = [0, 4], sizes = [16, 16], strides = [1, 1]} : vector<16x22xf32> to vector<16x16xf32>
    %609 = vector.broadcast %607 : f32 to vector<16x16xf32>
    %610 = arith.mulf %609, %608 : vector<16x16xf32>
    %611 = arith.addf %606, %610 : vector<16x16xf32>
    %c89 = arith.constant 89 : index
    %612 = memref.load %arg1[%c89] : memref<98xf32, #tpu.memory_space<smem>>
    %613 = vector.extract_strided_slice %586 {offsets = [0, 5], sizes = [16, 16], strides = [1, 1]} : vector<16x22xf32> to vector<16x16xf32>
    %614 = vector.broadcast %612 : f32 to vector<16x16xf32>
    %615 = arith.mulf %614, %613 : vector<16x16xf32>
    %616 = arith.addf %611, %615 : vector<16x16xf32>
    %c90 = arith.constant 90 : index
    %617 = memref.load %arg1[%c90] : memref<98xf32, #tpu.memory_space<smem>>
    %618 = vector.extract_strided_slice %586 {offsets = [0, 6], sizes = [16, 16], strides = [1, 1]} : vector<16x22xf32> to vector<16x16xf32>
    %619 = vector.broadcast %617 : f32 to vector<16x16xf32>
    %620 = arith.mulf %619, %618 : vector<16x16xf32>
    %621 = arith.addf %616, %620 : vector<16x16xf32>
    %c1_148 = arith.constant 1 : index
    %c6_149 = arith.constant 6 : index
    %c0_150 = arith.constant 0 : index
    %622 = vector.load %arg4[%c1_148, %c6_149, %c0_150] : memref<2x22x22xf32, #tpu.memory_space<vmem>>, vector<1x16x22xf32>
    %623 = vector.shape_cast %622 : vector<1x16x22xf32> to vector<16x22xf32>
    %c91 = arith.constant 91 : index
    %624 = memref.load %arg1[%c91] : memref<98xf32, #tpu.memory_space<smem>>
    %625 = vector.extract_strided_slice %623 {offsets = [0, 0], sizes = [16, 16], strides = [1, 1]} : vector<16x22xf32> to vector<16x16xf32>
    %626 = vector.broadcast %624 : f32 to vector<16x16xf32>
    %627 = arith.mulf %626, %625 : vector<16x16xf32>
    %628 = arith.addf %621, %627 : vector<16x16xf32>
    %c92 = arith.constant 92 : index
    %629 = memref.load %arg1[%c92] : memref<98xf32, #tpu.memory_space<smem>>
    %630 = vector.extract_strided_slice %623 {offsets = [0, 1], sizes = [16, 16], strides = [1, 1]} : vector<16x22xf32> to vector<16x16xf32>
    %631 = vector.broadcast %629 : f32 to vector<16x16xf32>
    %632 = arith.mulf %631, %630 : vector<16x16xf32>
    %633 = arith.addf %628, %632 : vector<16x16xf32>
    %c93 = arith.constant 93 : index
    %634 = memref.load %arg1[%c93] : memref<98xf32, #tpu.memory_space<smem>>
    %635 = vector.extract_strided_slice %623 {offsets = [0, 2], sizes = [16, 16], strides = [1, 1]} : vector<16x22xf32> to vector<16x16xf32>
    %636 = vector.broadcast %634 : f32 to vector<16x16xf32>
    %637 = arith.mulf %636, %635 : vector<16x16xf32>
    %638 = arith.addf %633, %637 : vector<16x16xf32>
    %c94 = arith.constant 94 : index
    %639 = memref.load %arg1[%c94] : memref<98xf32, #tpu.memory_space<smem>>
    %640 = vector.extract_strided_slice %623 {offsets = [0, 3], sizes = [16, 16], strides = [1, 1]} : vector<16x22xf32> to vector<16x16xf32>
    %641 = vector.broadcast %639 : f32 to vector<16x16xf32>
    %642 = arith.mulf %641, %640 : vector<16x16xf32>
    %643 = arith.addf %638, %642 : vector<16x16xf32>
    %c95 = arith.constant 95 : index
    %644 = memref.load %arg1[%c95] : memref<98xf32, #tpu.memory_space<smem>>
    %645 = vector.extract_strided_slice %623 {offsets = [0, 4], sizes = [16, 16], strides = [1, 1]} : vector<16x22xf32> to vector<16x16xf32>
    %646 = vector.broadcast %644 : f32 to vector<16x16xf32>
    %647 = arith.mulf %646, %645 : vector<16x16xf32>
    %648 = arith.addf %643, %647 : vector<16x16xf32>
    %c96 = arith.constant 96 : index
    %649 = memref.load %arg1[%c96] : memref<98xf32, #tpu.memory_space<smem>>
    %650 = vector.extract_strided_slice %623 {offsets = [0, 5], sizes = [16, 16], strides = [1, 1]} : vector<16x22xf32> to vector<16x16xf32>
    %651 = vector.broadcast %649 : f32 to vector<16x16xf32>
    %652 = arith.mulf %651, %650 : vector<16x16xf32>
    %653 = arith.addf %648, %652 : vector<16x16xf32>
    %c97 = arith.constant 97 : index
    %654 = memref.load %arg1[%c97] : memref<98xf32, #tpu.memory_space<smem>>
    %655 = vector.extract_strided_slice %623 {offsets = [0, 6], sizes = [16, 16], strides = [1, 1]} : vector<16x22xf32> to vector<16x16xf32>
    %656 = vector.broadcast %654 : f32 to vector<16x16xf32>
    %657 = arith.mulf %656, %655 : vector<16x16xf32>
    %658 = arith.addf %653, %657 : vector<16x16xf32>
    %659 = arith.negf %658 : vector<16x16xf32>
    %660 = math.exp %659 : vector<16x16xf32>
    %cst_151 = arith.constant 1.000000e+00 : f32
    %661 = vector.broadcast %cst_151 : f32 to vector<16x16xf32>
    %662 = arith.addf %661, %660 : vector<16x16xf32>
    %663 = arith.divf %661, %662 : vector<16x16xf32>
    %664 = vector.extract_strided_slice %663 {offsets = [0, 0], sizes = [1, 16], strides = [1, 1]} : vector<16x16xf32> to vector<1x16xf32>
    %c0_152 = arith.constant 0 : index
    %c0_153 = arith.constant 0 : index
    %665 = vector.load %arg5[%c0_152, %c0_153] : memref<1x256xf32, #tpu.memory_space<vmem>>, vector<1x16xf32>
    tpu.vector_store %arg5[%c0_152, %c0_153], %664 {strides = array<i32>} : memref<1x256xf32, #tpu.memory_space<vmem>>, vector<1x16xf32>,
    %666 = vector.extract_strided_slice %663 {offsets = [1, 0], sizes = [1, 16], strides = [1, 1]} : vector<16x16xf32> to vector<1x16xf32>
    %c0_154 = arith.constant 0 : index
    %c16_155 = arith.constant 16 : index
    %667 = vector.load %arg5[%c0_154, %c16_155] : memref<1x256xf32, #tpu.memory_space<vmem>>, vector<1x16xf32>
    tpu.vector_store %arg5[%c0_154, %c16_155], %666 {strides = array<i32>} : memref<1x256xf32, #tpu.memory_space<vmem>>, vector<1x16xf32>,
    %668 = vector.extract_strided_slice %663 {offsets = [2, 0], sizes = [1, 16], strides = [1, 1]} : vector<16x16xf32> to vector<1x16xf32>
    %c0_156 = arith.constant 0 : index
    %c32_157 = arith.constant 32 : index
    %669 = vector.load %arg5[%c0_156, %c32_157] : memref<1x256xf32, #tpu.memory_space<vmem>>, vector<1x16xf32>
    tpu.vector_store %arg5[%c0_156, %c32_157], %668 {strides = array<i32>} : memref<1x256xf32, #tpu.memory_space<vmem>>, vector<1x16xf32>,
    %670 = vector.extract_strided_slice %663 {offsets = [3, 0], sizes = [1, 16], strides = [1, 1]} : vector<16x16xf32> to vector<1x16xf32>
    %c0_158 = arith.constant 0 : index
    %c48_159 = arith.constant 48 : index
    %671 = vector.load %arg5[%c0_158, %c48_159] : memref<1x256xf32, #tpu.memory_space<vmem>>, vector<1x16xf32>
    tpu.vector_store %arg5[%c0_158, %c48_159], %670 {strides = array<i32>} : memref<1x256xf32, #tpu.memory_space<vmem>>, vector<1x16xf32>,
    %672 = vector.extract_strided_slice %663 {offsets = [4, 0], sizes = [1, 16], strides = [1, 1]} : vector<16x16xf32> to vector<1x16xf32>
    %c0_160 = arith.constant 0 : index
    %c64_161 = arith.constant 64 : index
    %673 = vector.load %arg5[%c0_160, %c64_161] : memref<1x256xf32, #tpu.memory_space<vmem>>, vector<1x16xf32>
    tpu.vector_store %arg5[%c0_160, %c64_161], %672 {strides = array<i32>} : memref<1x256xf32, #tpu.memory_space<vmem>>, vector<1x16xf32>,
    %674 = vector.extract_strided_slice %663 {offsets = [5, 0], sizes = [1, 16], strides = [1, 1]} : vector<16x16xf32> to vector<1x16xf32>
    %c0_162 = arith.constant 0 : index
    %c80_163 = arith.constant 80 : index
    %675 = vector.load %arg5[%c0_162, %c80_163] : memref<1x256xf32, #tpu.memory_space<vmem>>, vector<1x16xf32>
    tpu.vector_store %arg5[%c0_162, %c80_163], %674 {strides = array<i32>} : memref<1x256xf32, #tpu.memory_space<vmem>>, vector<1x16xf32>,
    %676 = vector.extract_strided_slice %663 {offsets = [6, 0], sizes = [1, 16], strides = [1, 1]} : vector<16x16xf32> to vector<1x16xf32>
    %c0_164 = arith.constant 0 : index
    %c96_165 = arith.constant 96 : index
    %677 = vector.load %arg5[%c0_164, %c96_165] : memref<1x256xf32, #tpu.memory_space<vmem>>, vector<1x16xf32>
    tpu.vector_store %arg5[%c0_164, %c96_165], %676 {strides = array<i32>} : memref<1x256xf32, #tpu.memory_space<vmem>>, vector<1x16xf32>,
    %678 = vector.extract_strided_slice %663 {offsets = [7, 0], sizes = [1, 16], strides = [1, 1]} : vector<16x16xf32> to vector<1x16xf32>
    %c0_166 = arith.constant 0 : index
    %c112 = arith.constant 112 : index
    %679 = vector.load %arg5[%c0_166, %c112] : memref<1x256xf32, #tpu.memory_space<vmem>>, vector<1x16xf32>
    tpu.vector_store %arg5[%c0_166, %c112], %678 {strides = array<i32>} : memref<1x256xf32, #tpu.memory_space<vmem>>, vector<1x16xf32>,
    %680 = vector.extract_strided_slice %663 {offsets = [8, 0], sizes = [1, 16], strides = [1, 1]} : vector<16x16xf32> to vector<1x16xf32>
    %c0_167 = arith.constant 0 : index
    %c128 = arith.constant 128 : index
    %681 = vector.load %arg5[%c0_167, %c128] : memref<1x256xf32, #tpu.memory_space<vmem>>, vector<1x16xf32>
    tpu.vector_store %arg5[%c0_167, %c128], %680 {strides = array<i32>} : memref<1x256xf32, #tpu.memory_space<vmem>>, vector<1x16xf32>,
    %682 = vector.extract_strided_slice %663 {offsets = [9, 0], sizes = [1, 16], strides = [1, 1]} : vector<16x16xf32> to vector<1x16xf32>
    %c0_168 = arith.constant 0 : index
    %c144 = arith.constant 144 : index
    %683 = vector.load %arg5[%c0_168, %c144] : memref<1x256xf32, #tpu.memory_space<vmem>>, vector<1x16xf32>
    tpu.vector_store %arg5[%c0_168, %c144], %682 {strides = array<i32>} : memref<1x256xf32, #tpu.memory_space<vmem>>, vector<1x16xf32>,
    %684 = vector.extract_strided_slice %663 {offsets = [10, 0], sizes = [1, 16], strides = [1, 1]} : vector<16x16xf32> to vector<1x16xf32>
    %c0_169 = arith.constant 0 : index
    %c160 = arith.constant 160 : index
    %685 = vector.load %arg5[%c0_169, %c160] : memref<1x256xf32, #tpu.memory_space<vmem>>, vector<1x16xf32>
    tpu.vector_store %arg5[%c0_169, %c160], %684 {strides = array<i32>} : memref<1x256xf32, #tpu.memory_space<vmem>>, vector<1x16xf32>,
    %686 = vector.extract_strided_slice %663 {offsets = [11, 0], sizes = [1, 16], strides = [1, 1]} : vector<16x16xf32> to vector<1x16xf32>
    %c0_170 = arith.constant 0 : index
    %c176 = arith.constant 176 : index
    %687 = vector.load %arg5[%c0_170, %c176] : memref<1x256xf32, #tpu.memory_space<vmem>>, vector<1x16xf32>
    tpu.vector_store %arg5[%c0_170, %c176], %686 {strides = array<i32>} : memref<1x256xf32, #tpu.memory_space<vmem>>, vector<1x16xf32>,
    %688 = vector.extract_strided_slice %663 {offsets = [12, 0], sizes = [1, 16], strides = [1, 1]} : vector<16x16xf32> to vector<1x16xf32>
    %c0_171 = arith.constant 0 : index
    %c192 = arith.constant 192 : index
    %689 = vector.load %arg5[%c0_171, %c192] : memref<1x256xf32, #tpu.memory_space<vmem>>, vector<1x16xf32>
    tpu.vector_store %arg5[%c0_171, %c192], %688 {strides = array<i32>} : memref<1x256xf32, #tpu.memory_space<vmem>>, vector<1x16xf32>,
    %690 = vector.extract_strided_slice %663 {offsets = [13, 0], sizes = [1, 16], strides = [1, 1]} : vector<16x16xf32> to vector<1x16xf32>
    %c0_172 = arith.constant 0 : index
    %c208 = arith.constant 208 : index
    %691 = vector.load %arg5[%c0_172, %c208] : memref<1x256xf32, #tpu.memory_space<vmem>>, vector<1x16xf32>
    tpu.vector_store %arg5[%c0_172, %c208], %690 {strides = array<i32>} : memref<1x256xf32, #tpu.memory_space<vmem>>, vector<1x16xf32>,
    %692 = vector.extract_strided_slice %663 {offsets = [14, 0], sizes = [1, 16], strides = [1, 1]} : vector<16x16xf32> to vector<1x16xf32>
    %c0_173 = arith.constant 0 : index
    %c224 = arith.constant 224 : index
    %693 = vector.load %arg5[%c0_173, %c224] : memref<1x256xf32, #tpu.memory_space<vmem>>, vector<1x16xf32>
    tpu.vector_store %arg5[%c0_173, %c224], %692 {strides = array<i32>} : memref<1x256xf32, #tpu.memory_space<vmem>>, vector<1x16xf32>,
    %694 = vector.extract_strided_slice %663 {offsets = [15, 0], sizes = [1, 16], strides = [1, 1]} : vector<16x16xf32> to vector<1x16xf32>
    %c0_174 = arith.constant 0 : index
    %c240 = arith.constant 240 : index
    %695 = vector.load %arg5[%c0_174, %c240] : memref<1x256xf32, #tpu.memory_space<vmem>>, vector<1x16xf32>
    tpu.vector_store %arg5[%c0_174, %c240], %694 {strides = array<i32>} : memref<1x256xf32, #tpu.memory_space<vmem>>, vector<1x16xf32>,
    %c0_175 = arith.constant 0 : index
    %c0_176 = arith.constant 0 : index
    %696 = vector.load %arg5[%c0_175, %c0_176] : memref<1x256xf32, #tpu.memory_space<vmem>>, vector<1x256xf32>
    %c0_177 = arith.constant 0 : index
    %c0_178 = arith.constant 0 : index
    %c0_179 = arith.constant 0 : index
    %697 = vector.load %arg2[%c0_177, %c0_178, %c0_179] : memref<1x4x256xf32, #tpu.memory_space<vmem>>, vector<1x4x256xf32>
    %698 = vector.shape_cast %697 : vector<1x4x256xf32> to vector<4x256xf32>
    %699 = vector.broadcast %696 : vector<1x256xf32> to vector<4x256xf32>
    %700 = arith.mulf %698, %699 : vector<4x256xf32>
    %c0_180 = arith.constant 0 : index
    %c0_181 = arith.constant 0 : index
    %c0_182 = arith.constant 0 : index
    %701 = vector.load %arg3[%c0_180, %c0_181, %c0_182] : memref<1x4x256xf32, #tpu.memory_space<vmem>>, vector<1x4x256xf32>
    %702 = vector.shape_cast %701 : vector<1x4x256xf32> to vector<4x256xf32>
    %703 = vector.shape_cast %700 : vector<4x256xf32> to vector<1x4x256xf32>
    tpu.vector_store %arg3[%c0_180, %c0_181, %c0_182], %703 {strides = array<i32>} : memref<1x4x256xf32, #tpu.memory_space<vmem>>, vector<1x4x256xf32>,
    return
  }
  func.func @transform_0(%arg0: i32) -> i32 {
    %c0_i32 = arith.constant 0 : i32
    %c0_i32_0 = arith.constant 0 : i32
    return %c0_i32 : i32
  }
  func.func @transform_1(%arg0: i32) -> (i32, i32, i32) {
    %c0_i32 = arith.constant 0 : i32
    %c0_i32_0 = arith.constant 0 : i32
    %c0_i32_1 = arith.constant 0 : i32
    return %arg0, %c0_i32, %c0_i32_0 : i32, i32, i32
  }
  func.func @transform_2(%arg0: i32) -> (i32, i32, i32) {
    %c0_i32 = arith.constant 0 : i32
    %c0_i32_0 = arith.constant 0 : i32
    %c0_i32_1 = arith.constant 0 : i32
    return %arg0, %c0_i32, %c0_i32_0 : i32, i32, i32
  }
}

</mosaic_0001>

<bundles_post_ra>
// kernel: tpu_custom_call.1
= control target key start
LH: loop header
LB: loop body
LE: loop exit
PB: predicated region body
PF: predicated region fallthrough
CT: control target
= control target key end

     0   :  { %7 = vsyncpa [#allocation7], 0  ;;  %s3503_s0 = inlined_call_operand.hbm [shape: f32[98], index: 0, kind: input, shape index: {}]   ;;  %s3504_s1 = inlined_call_operand.hbm [shape: f32[2,4,256], index: 1, kind: input, shape index: {}]   ;;  %s3505_s2 = inlined_call_operand.hbm [shape: f32[2,4,256], index: 2, kind: output, shape index: {}]  }
   0x1   :  { %8 = vsyncpa [#allocation5], 0 }
   0x2   :  { %10 = vsyncpa [#allocation5 + $0x1], 0 }
   0x3   :  { %11 = vsyncpa [#allocation6], 0 }
   0x4   :  { %13 = vsyncpa [#allocation6 + $0x1], 0  ;;  %s2300_s9 = smov 0   ;;  %s2302_s10 = smov 0  }
   0x5   :  { %s2304_s11 = smov 0   ;;  %s2306_s12 = smov 0  }
   0x6 LB: > { %s2321_s13 = sadd.s32 4294967295, %s2257_s12   ;;  %s1944_s14 = sadd.s32 4294967294, %s2257_s12   ;;  %s2257_s12 = sphi %s2306_s12, %s3569_s12   ;;  %s2253_s11 = sphi %s2304_s11, %s3568_s11   ;;  %s2249_s10 = sphi %s2302_s10, %s3567_s10   ;;  %s2245_s9 = sphi %s2300_s9, %s3566_s9  }
   0x7   : > { %p60_p0 = scmp.ne.s32.totalorder %s2249_s10, %s2245_s9  ;;  %p3506_p1 = scmp.eq.s32.totalorder %s2321_s13, 0 }
   0x8   : > { %p84_p2 = scmp.eq.s32.totalorder %s2321_s13, 1  ;;  %p90_p3 = scmp.eq.s32.totalorder %s1944_s14, 1 }
   0x9   : > { %p2330_p4 = por %p3506_p1, %p60_p0  ;;  %p1945_p5 = scmp.ge.s32.totalorder %s2257_s12, 1 }
   0xa   : > { %p2335_p6 = por %p90_p3, %p60_p0  ;;  %p97_p7 = scmp.lt.s32.totalorder %s2257_s12, 3 }
   0xb   : > { %s3517_s15 = scalar_select %p2330_p4, 1, 0 }
   0xc   : > { %s3518_s16 = scalar_select %p2335_p6, 1, 0 }
   0xd   : > { %p2340_p8 = pnand %p1945_p5, %p97_p7  ;;  %s2346_s18 = sadd.s32 1, %s2257_s12  }
   0xe   : > { %s44_s19 = ssub.s32 %s2257_s12, %s2346_s18  ;;  %s47_s20 = sadd.s32 1, %s2253_s11 }
   0xf   : > { %s3519_s17 = scalar_select %p2340_p8, 1, 0 }
  0x10   : > { %p2069_p10 = pneg %p2340_p8  ;;  %p45_p12 = scmp.eq.s32.totalorder %s44_s19, 0 }
  0x11   : > { %p54_p13 = scmp.ne.s32.totalorder %s2253_s11, %s2249_s10  ;;  %p55_p0 = scmp.eq.s32.totalorder %s2257_s12, 0 }
  0x12   : > { %p2070_p11 = pnand %p2069_p10, %p3506_p1  ;;  %p2082_p3 = scmp.lt.s32.totalorder %s2257_s12, 2 }
  0x13   : > { %s2259_s21 = smov [#allocation4]   ;;  %p56_p5 = por %p55_p0, %p54_p13 }
  0x14   : > { %2072 = dma.hbm_to_smem (!%p2070_p11), %s3503_s0, 16, %s2259_s21, [#allocation7]  }
  0x15   : > { %s2363_s24 = scalar_select %p45_p12, %s2253_s11, %s47_s20  }
  0x16   : > { %p2367_p7 = por %p84_p2, %p54_p13  ;;  %s119_s26 = sand.u32 1, %s2253_s11  }
  0x17   : > { %s2059_s27 = sshll.u32 %s2257_s12, 7  ;;  %s1948_s28 = sshll.u32 %s119_s26, 3 }
  0x18   : > { %s3520_s25 = scalar_select %p2367_p7, 1, 0 }
  0x19   : > { %s2376_s3 = scalar_lea.hbm %s3504_s1, %s2059_s27  ;;  %s123_s4 = scalar_lea.vmem [#allocation8], %s1948_s28 }
  0x1a   : > { %s131_s5 = sshll.u32 %s123_s4, 4  ;;  %p2378_p10 = pnand %p2082_p3, %p56_p5  ;;  %s132_s5 = int_to_ptr.vmem [resolvable:$true] %s131_s5 }
  0x1b   : > { %s120_s7 = scalar_lea.sflag [#allocation5], %s119_s26  ;;  %s2161_s8 = scalar_lea.hbm %s2376_s3, 128 }
  0x1c   : > { %p2162_p2 = scmp.ne.s32.totalorder %s2376_s3, %s2161_s8  ;;  %p2163_p11 = pneg %p2378_p10 }
  0x1d   : > { %s2166_s20 = scalar_lea.hbm %s3504_s1, 256  ;;  %p2167_p0 = scmp.lt.s32.totalorder %s2376_s3, %s3504_s1 }
  0x1e   : > { %p2164_p12 = pnand %p2163_p11, %p2162_p2  ;;  %p2168_p3 = scmp.lt.s32.totalorder %s2166_s20, %s2161_s8 }
  0x20   : > { %p2165_p13 = pneg %p2164_p12  ;;  %p2169_p5 = por %p2168_p3, %p2167_p0 }
  0x22   : > { %p2170_p9 = pnand %p2169_p5, %p2165_p13 }
  0x24   : > { %2173 = shalt.err (!%p2170_p9)
}
  0x25   : > { %s2174_s23 = scalar_lea.vmem %s132_s5, 128  ;;  %s2260_s26 = smov [#allocation8]  }
  0x26   : > { %p2175_p1 = scmp.ne.s32.totalorder %s132_s5, %s2174_s23  ;;  %s2179_s27 = sshll.u32 %s2260_s26, 4  ;;  %s2180_s27 = int_to_ptr.vmem [resolvable:$false] %s2179_s27 }
  0x27   : > { %s2181_s28 = scalar_lea.vmem %s2180_s27, 256  ;;  %p2182_p2 = scmp.lt.s32.totalorder %s132_s5, %s2180_s27 }
  0x28   : > { %p2177_p6 = pnand %p2175_p1, %p2163_p11  ;;  %p2183_p12 = scmp.lt.s32.totalorder %s2181_s28, %s2174_s23 }
  0x2a   : > { %p2178_p7 = pneg %p2177_p6  ;;  %p2184_p4 = por %p2183_p12, %p2182_p2 }
  0x2c   : > { %p2185_p8 = pnand %p2184_p4, %p2178_p7 }
  0x2e   : > { %2188 = shalt.err (!%p2185_p8)
}
  0x2f   : > { %2076 = dma.hbm_to_vmem [thread:$0]  (!%p2378_p10), %s2376_s3, 128, %s132_s5, %s120_s7  }
  0x30   : > { %p3522_p13 = scmp.ne.s32.totalorder %s3519_s17, 0 }
  0x31   : > { %p3523_p9 = scmp.eq.s32.totalorder (!%p3522_p13), %s2321_s13, 0 }
  0x32   : > { %140 = sbr.rel (%p3522_p13) target bundleno = 889 (0x379), region = 28 }
  0x37   : > { %2232 = dma.done.wait (%p3523_p9), [#allocation7], 16   ;;  %p3524_p1 = pmov %p3523_p9 }
  0x38   : > { %s2403_s29 = sand.u32 1, %s2249_s10   ;;  %p3525_p4 = scmp.ne.s32.totalorder %s3517_s15, 0 }
  0x39   : > { %2234 = vsyncadd (%p3524_p1), [#allocation7], 4294967280  ;;  %s1953_s30 = sshll.u32 %s2403_s29, 3  ;;  %s147_s4 = scalar_lea.sflag [#allocation5], %s2403_s29 }
  0x3a   : > { %s2409_s3 = scalar_lea.vmem [#allocation8], %s1953_s30 }
  0x3b   : > { %2236 = dma.done.wait (%p3525_p4), %s147_s4, 128  }
  0x3c   : > { %2238 = vsyncadd (%p3525_p4), %s147_s4, 4294967168 }
  0x3d   : > { %155 = sfence }
  0x3e   : > { %v172_v0 = vld [vmem:[%s2409_s3] sm:$0xff]  ;;  %vm176_vm0 = vcmask 1043456   ;;  %vm207_vm1 = vcmask 179200   ;;  %v2261_v3 = vmov 0.0   ;;  %s2262_s15 = smov 99   ;;  %s2263_s17 = smov 3  }
  0x3f   : > { %v177_v1 = vsel %vm176_vm0, %v172_v0, 0.0  ;;  %v174_v2 = vcombine.high %v172_v0, %v172_v0  ;;  %208 = vst.msk [vmem:[#allocation2] sm:$0xff] %vm207_vm1, %v2261_v3  ;;  %209 = vst.msk [vmem:[#allocation2 + $0x8] sm:$0xff] %vm207_vm1, %v2261_v3  ;;  %v193_v16 = vsel %vm176_vm0, %v172_v0, -inf  ;;  %s2264_s5 = smov 83   ;;  %s2265_s6 = smov 115  }
  0x40   : > { %212 = vst.msk [vmem:[#allocation2 + $0x18] sm:$0xff] %vm207_vm1, %v2261_v3  ;;  %213 = vst.msk [vmem:[#allocation2 + $0x20] sm:$0xff] %vm207_vm1, %v2261_v3  ;;  %v178_v4 = vrot.slane %v177_v1, 4  ;;  %v194_v18 = vrot.slane %v193_v16, 4  ;;  %s2266_s7 = smov 51   ;;  %s2267_s8 = smov 67  }
  0x41   : > { %v184_v5 = vsel %vm176_vm0, %v174_v2, 0.0  ;;  %vm210_vm2 = vcmask 177152   ;;  %s2268_s14 = smov 19   ;;  %s2269_s19 = smov 35   ;;  %v200_v25 = vsel %vm176_vm0, %v174_v2, -inf  ;;  %vm219_vm3 = vcmask 147480  }
  0x42   : > { %v179_v6 = vadd.f32 %v178_v4, %v177_v1  ;;  %v185_v7 = vrot.slane %v184_v5, 4  ;;  %v195_v20 = vmax.f32 %v193_v16, %v194_v18  ;;  %211 = vst.msk [vmem:[#allocation2 + $0x10] sm:$0x3f] %vm210_vm2, %v2261_v3  ;;  %214 = vst.msk [vmem:[#allocation2 + $0x28] sm:$0x3f] %vm210_vm2, %v2261_v3  ;;  %v201_v27 = vrot.slane %v200_v25, 4 }
  0x43   : > { %s2462_s20 = sld [smem:[#allocation4 + $0x1]]  ;;  %s2270_s26 = smov 127  }
  0x44   : > { %v180_v8 = vrot.slane %v179_v6, 2  ;;  %v186_v10 = vadd.f32 %v185_v7, %v184_v5  ;;  %v196_v22 = vrot.slane %v195_v20, 2  ;;  %v202_v28 = vmax.f32 %v200_v25, %v201_v27  ;;  %s2466_s21 = sld [smem:[#allocation4 + $0x2]]  ;;  %s2271_s28 = smov 126  }
  0x45   : > { %s2471_s22 = sld [smem:[#allocation4 + $0x3]]  ;;  %p3563_p8 = scmp.ne.s32.totalorder %s3520_s25, 0 }
  0x46   : > { %v181_v9 = vadd.f32 %v180_v8, %v179_v6  ;;  %v187_v13 = vrot.slane %v186_v10, 2  ;;  %v197_v23 = vmax.f32 %v195_v20, %v196_v22  ;;  %v203_v29 = vrot.slane %v202_v28, 2  ;;  %s2479_s23 = sld [smem:[#allocation4 + $0x4]] }
  0x47   : > { %s2486_s27 = sld [smem:[#allocation4 + $0x5]] }
  0x48   : > { %v182_v11 = vrot.slane %v181_v9, 1  ;;  %v188_v15 = vadd.f32 %v187_v13, %v186_v10  ;;  %v198_v24 = vrot.slane %v197_v23, 1  ;;  %v204_v30 = vmax.f32 %v202_v28, %v203_v29  ;;  %s2493_s4 = sld [smem:[#allocation4 + $0x6]] }
  0x49   : > { %v358_v41 = vstv %s2462_s20  ;;  %s2275_s20 = smov 122  }
  0x4a   : > { %v183_v12 = vadd.f32 %v182_v11, %v181_v9  ;;  %v189_v17 = vrot.slane %v188_v15, 1  ;;  %v199_v26 = vmax.f32 %v197_v23, %v198_v24  ;;  %v205_v31 = vrot.slane %v204_v30, 1 }
  0x4b   : > { %v372_v46 = vstv %s2466_s21  ;;  %v386_v50 = vstv %s2471_s22  ;;  %s2530_s21 = sld [smem:[#allocation4 + $0xb]] }
  0x4c   : > { %v191_v14 = vmul.f32 0.25, %v183_v12  ;;  %v190_v19 = vadd.f32 %v189_v17, %v188_v15  ;;  %v2444_v32 = vmax.f32 %v204_v30, %v205_v31  ;;  %v400_v54 = vstv %s2479_s23  ;;  %s2539_s22 = sld [smem:[#allocation4 + $0xc]] }
  0x4d   : > { %v414_v58 = vstv %s2486_s27  ;;  %s2548_s23 = sld [smem:[#allocation4 + $0xd]] }
  0x4e   : > { %235 = vrot.lane.b32.xlu1 %v191_v14, %s2262_s15  ;;  %216 = vrot.lane.b32.xlu0 %v191_v14, %s2263_s17  ;;  %v192_v21 = vmul.f32 0.25, %v190_v19  ;;  %v428_v0 = vstv %s2493_s4  ;;  %s2559_s27 = sld [smem:[#allocation4 + $0xf]] }
  0x4f   : > { %s2568_s4 = sld [smem:[#allocation4 + $0x10]] }
  0x52   : > { %243 = vrot.lane.b32.xlu1 %v191_v14, %s2264_s5  ;;  %227 = vrot.lane.b32.xlu0 %v191_v14, %s2265_s6  ;;  %v506_v27 = vstv %s2539_s22  ;;  %s2607_s22 = sld [smem:[#allocation4 + $0x16]] }
  0x56   : > { %259 = vrot.lane.b32.xlu1 %v191_v14, %s2266_s7  ;;  %251 = vrot.lane.b32.xlu0 %v191_v14, %s2267_s8 }
  0x5a   : > { %275 = vrot.lane.b32.xlu1 %v191_v14, %s2268_s14  ;;  %267 = vrot.lane.b32.xlu0 %v191_v14, %s2269_s19 }
  0x5e   : > { %293 = vrot.lane.b32.xlu1 %v192_v21, %s2265_s6  ;;  %284 = vrot.lane.b32.xlu0 %v192_v21, %s2263_s17 }
  0x62   : > { %309 = vrot.lane.b32.xlu1 %v192_v21, %s2264_s5  ;;  %301 = vrot.lane.b32.xlu0 %v192_v21, %s2262_s15 }
  0x66   : > { %325 = vrot.lane.b32.xlu1 %v192_v21, %s2266_s7  ;;  %317 = vrot.lane.b32.xlu0 %v192_v21, %s2267_s8 }
  0x6a   : > { %222 = vrot.lane.b32.xlu1 %v199_v26, %s2263_s17  ;;  %333 = vrot.lane.b32.xlu0 %v192_v21, %s2269_s19 }
  0x6e   : > { %341 = vrot.lane.b32.xlu1 %v192_v21, %s2268_s14  ;;  %231 = vrot.lane.b32.xlu0 %v199_v26, %s2265_s6  ;;  %v492_v21 = vstv %s2530_s21  ;;  %s2598_s21 = sld [smem:[#allocation4 + $0x14]] }
  0x72   : > { %247 = vrot.lane.b32.xlu1 %v199_v26, %s2264_s5  ;;  %239 = vrot.lane.b32.xlu0 %v199_v26, %s2262_s15 }
  0x76   : > { %263 = vrot.lane.b32.xlu1 %v199_v26, %s2266_s7  ;;  %255 = vrot.lane.b32.xlu0 %v199_v26, %s2267_s8 }
  0x7a   : > { %279 = vrot.lane.b32.xlu1 %v199_v26, %s2268_s14  ;;  %271 = vrot.lane.b32.xlu0 %v199_v26, %s2269_s19 }
  0x7e   : > { %289 = vrot.lane.b32.xlu0 %v2444_v32, %s2263_s17  ;;  %297 = vrot.lane.b32.xlu1 %v2444_v32, %s2265_s6  ;;  %s2500_s17 = sld [smem:[#allocation4 + $0x8]] }
  0x7f   : > { %s2510_s6 = sld [smem:[#allocation4 + $0x9]] }
  0x82   : > { %305 = vrot.lane.b32.xlu0 %v2444_v32, %s2262_s15  ;;  %313 = vrot.lane.b32.xlu1 %v2444_v32, %s2264_s5  ;;  %s2272_s15 = smov 125   ;;  %s2273_s5 = smov 124  }
  0x84   : > { %v450_v6 = vstv %s2500_s17  ;;  %s2577_s17 = sld [smem:[#allocation4 + $0x11]] }
  0x85   : > { %v464_v11 = vstv %s2510_s6  ;;  %s2584_s6 = sld [smem:[#allocation4 + $0x12]] }
  0x86   : > { %321 = vrot.lane.b32.xlu0 %v2444_v32, %s2267_s8  ;;  %329 = vrot.lane.b32.xlu1 %v2444_v32, %s2266_s7  ;;  %s2274_s7 = smov 123   ;;  %s2521_s8 = sld [smem:[#allocation4 + $0xa]] }
  0x8c   : > { %v478_v16 = vstv %s2521_s8  ;;  %s2591_s8 = sld [smem:[#allocation4 + $0x13]] }
  0xc0   : > { %v236_v33 = vpop.permute.xlu1 %235  ;;  %v217_v34 = vpop.permute.xlu0 %216 }
  0xc1   : > { %238 = vst.msk [vmem:[#allocation2 + $0x5] sm:$0x1] %vm219_vm3, %v236_v33  ;;  %220 = vst.msk [vmem:[#allocation2 + $0x3] sm:$0x1] %vm219_vm3, %v217_v34  ;;  %v520_v33 = vstv %s2548_s23  ;;  %s2614_s23 = sld [smem:[#allocation4 + $0x17]] }
  0xc4   : > { %v244_v35 = vpop.permute.xlu1 %243  ;;  %v228_v36 = vpop.permute.xlu0 %227 }
  0xc5   : > { %246 = vst.msk [vmem:[#allocation2 + $0x6] sm:$0x1] %vm219_vm3, %v244_v35  ;;  %230 = vst.msk [vmem:[#allocation2 + $0x4] sm:$0x1] %vm219_vm3, %v228_v36 }
  0xc8   : > { %v260_v37 = vpop.permute.xlu1 %259  ;;  %v252_v38 = vpop.permute.xlu0 %251 }
  0xc9   : > { %262 = vst.msk [vmem:[#allocation2 + $0x8] sm:$0x1] %vm219_vm3, %v260_v37  ;;  %254 = vst.msk [vmem:[#allocation2 + $0x7] sm:$0x1] %vm219_vm3, %v252_v38  ;;  %v542_v37 = vstv %s2559_s27  ;;  %s2623_s27 = sld [smem:[#allocation4 + $0x18]] }
  0xcc   : > { %v276_v39 = vpop.permute.xlu1 %275  ;;  %v268_v40 = vpop.permute.xlu0 %267 }
  0xcd   : > { %278 = vst.msk [vmem:[#allocation2 + $0xa] sm:$0x1] %vm219_vm3, %v276_v39  ;;  %270 = vst.msk [vmem:[#allocation2 + $0x9] sm:$0x1] %vm219_vm3, %v268_v40  ;;  %v556_v40 = vstv %s2568_s4  ;;  %s2630_s4 = sld [smem:[#allocation4 + $0x19]] }
  0xd0   : > { %v2473_v42 = vld [vmem:[#allocation2] sm:$0xff]  ;;  %v294_v43 = vpop.permute.xlu1 %293  ;;  %v285_v44 = vpop.permute.xlu0 %284 }
  0xd1   : > { %296 = vst.msk [vmem:[#allocation2 + $0xc] sm:$0x1] %vm219_vm3, %v294_v43  ;;  %287 = vst.msk [vmem:[#allocation2 + $0xb] sm:$0x1] %vm219_vm3, %v285_v44  ;;  %v359_v45 = vmul.f32 %v358_v41, %v2473_v42  ;;  %v373_v49 = vmul.f32 %v372_v46, %v2473_v42  ;;  %v387_v53 = vmul.f32 %v386_v50, %v2473_v42  ;;  %v2518_v5 = vld [vmem:[#allocation2 + $0x1] sm:$0xff]  ;;  %v570_v44 = vstv %s2577_s17  ;;  %s2637_s17 = sld [smem:[#allocation4 + $0x1a]] }
  0xd2   : > { %v401_v57 = vmul.f32 %v400_v54, %v2473_v42  ;;  %v415_v62 = vmul.f32 %v414_v58, %v2473_v42  ;;  %v429_v3 = vmul.f32 %v428_v0, %v2473_v42  ;;  %v451_v9 = vmul.f32 %v450_v6, %v2518_v5 }
  0xd3   : > { %363 = vrot.lane.b32.xlu0 %v359_v45, %s2270_s26  ;;  %v465_v14 = vmul.f32 %v464_v11, %v2518_v5  ;;  %v479_v19 = vmul.f32 %v478_v16, %v2518_v5  ;;  %v493_v24 = vmul.f32 %v492_v21, %v2518_v5  ;;  %v507_v30 = vmul.f32 %v506_v27, %v2518_v5 }
  0xd4   : > { %v310_v47 = vpop.permute.xlu1 %309  ;;  %v302_v48 = vpop.permute.xlu0 %301  ;;  %v521_v34 = vmul.f32 %v520_v33, %v2518_v5  ;;  %v2574_v36 = vld [vmem:[#allocation2 + $0x2] sm:$0xff] }
  0xd5   : > { %312 = vst.msk [vmem:[#allocation2 + $0xe] sm:$0x1] %vm219_vm3, %v310_v47  ;;  %304 = vst.msk [vmem:[#allocation2 + $0xd] sm:$0x1] %vm219_vm3, %v302_v48  ;;  %v543_v38 = vmul.f32 %v542_v37, %v2574_v36  ;;  %v571_v45 = vmul.f32 %v570_v44, %v2574_v36  ;;  %v584_v47 = vstv %s2584_s6  ;;  %s2644_s6 = sld [smem:[#allocation4 + $0x1b]] }
  0xd6   : > { %v585_v48 = vmul.f32 %v584_v47, %v2574_v36 }
  0xd7   : > { %377 = vrot.lane.b32.xlu0 %v373_v49, %s2271_s28 }
  0xd8   : > { %v326_v51 = vpop.permute.xlu1 %325  ;;  %v318_v52 = vpop.permute.xlu0 %317 }
  0xd9   : > { %328 = vst.msk [vmem:[#allocation2 + $0x10] sm:$0x1] %vm219_vm3, %v326_v51  ;;  %320 = vst.msk [vmem:[#allocation2 + $0xf] sm:$0x1] %vm219_vm3, %v318_v52  ;;  %v598_v51 = vstv %s2591_s8  ;;  %s2653_s8 = sld [smem:[#allocation4 + $0x1d]] }
  0xda   : > { %v599_v52 = vmul.f32 %v598_v51, %v2574_v36 }
  0xdb   : > { %391 = vrot.lane.b32.xlu0 %v387_v53, %s2272_s15 }
  0xdc   : > { %v223_v55 = vpop.permute.xlu1 %222  ;;  %v334_v56 = vpop.permute.xlu0 %333 }
  0xdd   : > { %226 = vst.msk [vmem:[#allocation2 + $0x1b] sm:$0x1] %vm219_vm3, %v223_v55  ;;  %336 = vst.msk [vmem:[#allocation2 + $0x11] sm:$0x1] %vm219_vm3, %v334_v56 }
  0xdf   : > { %405 = vrot.lane.b32.xlu0 %v401_v57, %s2273_s5  ;;  %v2620_v57 = vld [vmem:[#allocation2 + $0x3] sm:$0xff] }
  0xe0   : > { %v2503_v59 = vld [vmem:[#allocation2 + $0x8] sm:$0xff]  ;;  %v342_v60 = vpop.permute.xlu1 %341  ;;  %v232_v61 = vpop.permute.xlu0 %231 }
  0xe1   : > { %344 = vst.msk [vmem:[#allocation2 + $0x12] sm:$0x1] %vm219_vm3, %v342_v60  ;;  %v360_v63 = vmul.f32 %v358_v41, %v2503_v59  ;;  %234 = vst.msk [vmem:[#allocation2 + $0x1c] sm:$0x1] %vm219_vm3, %v232_v61  ;;  %v374_v4 = vmul.f32 %v372_v46, %v2503_v59  ;;  %v388_v10 = vmul.f32 %v386_v50, %v2503_v59  ;;  %v2556_v26 = vld [vmem:[#allocation2 + $0x9] sm:$0xff] }
  0xe2   : > { %v402_v15 = vmul.f32 %v400_v54, %v2503_v59  ;;  %v416_v20 = vmul.f32 %v414_v58, %v2503_v59  ;;  %v430_v25 = vmul.f32 %v428_v0, %v2503_v59  ;;  %v452_v31 = vmul.f32 %v450_v6, %v2556_v26 }
  0xe3   : > { %419 = vrot.lane.b32.xlu0 %v415_v62, %s2274_s7  ;;  %365 = vrot.lane.b32.xlu1 %v360_v63, %s2270_s26  ;;  %v466_v35 = vmul.f32 %v464_v11, %v2556_v26  ;;  %v480_v39 = vmul.f32 %v478_v16, %v2556_v26  ;;  %v557_v41 = vmul.f32 %v556_v40, %v2574_v36  ;;  %v612_v54 = vstv %s2598_s21  ;;  %s2669_s21 = sld [smem:[#allocation4 + $0x1e]] }
  0xe4   : > { %v248_v1 = vpop.permute.xlu1 %247  ;;  %v240_v2 = vpop.permute.xlu0 %239  ;;  %v494_v43 = vmul.f32 %v492_v21, %v2556_v26  ;;  %v508_v46 = vmul.f32 %v506_v27, %v2556_v26  ;;  %v522_v49 = vmul.f32 %v520_v33, %v2556_v26  ;;  %v2604_v50 = vld [vmem:[#allocation2 + $0xa] sm:$0xff]  ;;  %v613_v55 = vmul.f32 %v612_v54, %v2574_v36 }
  0xe5   : > { %250 = vst.msk [vmem:[#allocation2 + $0x1e] sm:$0x1] %vm219_vm3, %v248_v1  ;;  %242 = vst.msk [vmem:[#allocation2 + $0x1d] sm:$0x1] %vm219_vm3, %v240_v2  ;;  %v544_v53 = vmul.f32 %v542_v37, %v2604_v50  ;;  %v558_v56 = vmul.f32 %v556_v40, %v2604_v50  ;;  %v634_v58 = vstv %s2607_s22  ;;  %v572_v61 = vmul.f32 %v570_v44, %v2604_v50  ;;  %s2675_s22 = sld [smem:[#allocation4 + $0x1f]] }
  0xe6   : > { %v635_v60 = vmul.f32 %v634_v58, %v2620_v57  ;;  %v648_v62 = vstv %s2614_s23  ;;  %v586_v0 = vmul.f32 %v584_v47, %v2604_v50  ;;  %v662_v1 = vstv %s2623_s27  ;;  %s2684_s23 = sld [smem:[#allocation4 + $0x20]] }
  0xe7   : > { %433 = vrot.lane.b32.xlu0 %v429_v3, %s2275_s20  ;;  %379 = vrot.lane.b32.xlu1 %v374_v4, %s2271_s28  ;;  %v649_v63 = vmul.f32 %v648_v62, %v2620_v57  ;;  %v663_v2 = vmul.f32 %v662_v1, %v2620_v57  ;;  %v600_v3 = vmul.f32 %v598_v51, %v2604_v50  ;;  %v676_v4 = vstv %s2630_s4  ;;  %s2691_s27 = sld [smem:[#allocation4 + $0x21]] }
  0xe8   : > { %v264_v7 = vpop.permute.xlu1 %263  ;;  %v256_v8 = vpop.permute.xlu0 %255  ;;  %v677_v6 = vmul.f32 %v676_v4, %v2620_v57  ;;  %v726_v16 = vstv %s2653_s8  ;;  %s2702_s4 = sld [smem:[#allocation4]] }
  0xe9   : > { %266 = vst.msk [vmem:[#allocation2 + $0x20] sm:$0x1] %vm219_vm3, %v264_v7  ;;  %258 = vst.msk [vmem:[#allocation2 + $0x1f] sm:$0x1] %vm219_vm3, %v256_v8  ;;  %v614_v7 = vmul.f32 %v612_v54, %v2604_v50  ;;  %v2650_v8 = vld [vmem:[#allocation2 + $0xb] sm:$0xff]  ;;  %v740_v21 = vstv %s2669_s21  ;;  %s2720_s8 = sld [smem:[#allocation4 + $0x26]] }
  0xea   : > { %v636_v11 = vmul.f32 %v634_v58, %v2650_v8  ;;  %s2732_s21 = sld [smem:[#allocation4 + $0x27]] }
  0xeb   : > { %455 = vrot.lane.b32.xlu0 %v451_v9, %s2270_s26  ;;  %393 = vrot.lane.b32.xlu1 %v388_v10, %s2272_s15  ;;  %v690_v9 = vstv %s2637_s17  ;;  %s2707_s17 = sld [smem:[#allocation4 + $0x24]] }
  0xec   : > { %v280_v12 = vpop.permute.xlu1 %279  ;;  %v272_v13 = vpop.permute.xlu0 %271  ;;  %v691_v10 = vmul.f32 %v690_v9, %v2620_v57 }
  0xed   : > { %282 = vst.msk [vmem:[#allocation2 + $0x22] sm:$0x1] %vm219_vm3, %v280_v12  ;;  %274 = vst.msk [vmem:[#allocation2 + $0x21] sm:$0x1] %vm219_vm3, %v272_v13  ;;  %v704_v12 = vstv %s2644_s6  ;;  %s2711_s6 = sld [smem:[#allocation4 + $0x25]] }
  0xee   : > { %v705_v13 = vmul.f32 %v704_v12, %v2620_v57  ;;  %v706_v27 = vmul.f32 %v704_v12, %v2650_v8 }
  0xef   : > { %469 = vrot.lane.b32.xlu0 %v465_v14, %s2271_s28  ;;  %407 = vrot.lane.b32.xlu1 %v402_v15, %s2273_s5  ;;  %v650_v14 = vmul.f32 %v648_v62, %v2650_v8  ;;  %v2664_v15 = vld [vmem:[#allocation2 + $0x4] sm:$0xff] }
  0xf0   : > { %v290_v17 = vpop.permute.xlu0 %289  ;;  %v298_v18 = vpop.permute.xlu1 %297 }
  0xf1   : > { %292 = vst.msk [vmem:[#allocation2 + $0x23] sm:$0x1] %vm219_vm3, %v290_v17  ;;  %300 = vst.msk [vmem:[#allocation2 + $0x24] sm:$0x1] %vm219_vm3, %v298_v18  ;;  %v727_v17 = vmul.f32 %v726_v16, %v2664_v15  ;;  %v664_v18 = vmul.f32 %v662_v1, %v2650_v8  ;;  %v818_v44 = vstv %s2707_s17  ;;  %v860_v1 = vstv %s2732_s21  ;;  %s2774_s17 = sld [smem:[#allocation4 + $0x2d]] }
  0xf2   : > { %s2798_s21 = sld [smem:[#allocation4 + $0x30]] }
  0xf3   : > { %483 = vrot.lane.b32.xlu0 %v479_v19, %s2272_s15  ;;  %421 = vrot.lane.b32.xlu1 %v416_v20, %s2274_s7  ;;  %v678_v19 = vmul.f32 %v676_v4, %v2650_v8  ;;  %v2678_v20 = vld [vmem:[#allocation2 + $0xc] sm:$0xff]  ;;  %v832_v51 = vstv %s2711_s6  ;;  %s2783_s6 = sld [smem:[#allocation4 + $0xe]] }
  0xf4   : > { %v306_v22 = vpop.permute.xlu0 %305  ;;  %v314_v23 = vpop.permute.xlu1 %313 }
  0xf5   : > { %308 = vst.msk [vmem:[#allocation2 + $0x25] sm:$0x1] %vm219_vm3, %v306_v22  ;;  %316 = vst.msk [vmem:[#allocation2 + $0x26] sm:$0x1] %vm219_vm3, %v314_v23  ;;  %v742_v22 = vmul.f32 %v740_v21, %v2678_v20  ;;  %v692_v23 = vmul.f32 %v690_v9, %v2650_v8 }
  0xf7   : > { %497 = vrot.lane.b32.xlu0 %v493_v24, %s2273_s5  ;;  %435 = vrot.lane.b32.xlu1 %v430_v25, %s2275_s20  ;;  %v754_v24 = vstv %s2675_s22  ;;  %s2734_s22 = sld [smem:[#allocation4 + $0x7]] }
  0xf8   : > { %v322_v28 = vpop.permute.xlu0 %321  ;;  %v330_v29 = vpop.permute.xlu1 %329  ;;  %v756_v25 = vmul.f32 %v754_v24, %v2678_v20  ;;  %v755_v40 = vmul.f32 %v754_v24, %v2664_v15 }
  0xf9   : > { %324 = vst.msk [vmem:[#allocation2 + $0x27] sm:$0x1] %vm219_vm3, %v322_v28  ;;  %332 = vst.msk [vmem:[#allocation2 + $0x28] sm:$0x1] %vm219_vm3, %v330_v29  ;;  %v768_v28 = vstv %s2684_s23  ;;  %s2741_s23 = sld [smem:[#allocation4 + $0x28]] }
  0xfa   : > { %v770_v29 = vmul.f32 %v768_v28, %v2678_v20  ;;  %v769_v47 = vmul.f32 %v768_v28, %v2664_v15 }
  0xfb   : > { %511 = vrot.lane.b32.xlu0 %v507_v30, %s2274_s7  ;;  %457 = vrot.lane.b32.xlu1 %v452_v31, %s2270_s26  ;;  %v728_v30 = vmul.f32 %v726_v16, %v2678_v20  ;;  %v782_v31 = vstv %s2691_s27  ;;  %s2748_s27 = sld [smem:[#allocation4 + $0x29]] }
  0xff   : > { %525 = vrot.lane.b32.xlu0 %v521_v34, %s2275_s20  ;;  %471 = vrot.lane.b32.xlu1 %v466_v35, %s2271_s28  ;;  %v784_v34 = vmul.f32 %v782_v31, %v2678_v20  ;;  %v741_v35 = vmul.f32 %v740_v21, %v2664_v15  ;;  %v874_v12 = vstv %s2741_s23  ;;  %s2816_s23 = sld [smem:[#allocation4 + $0x33]] }
 0x103   : > { %547 = vrot.lane.b32.xlu0 %v543_v38, %s2270_s26  ;;  %485 = vrot.lane.b32.xlu1 %v480_v39, %s2272_s15 }
 0x107   : > { %561 = vrot.lane.b32.xlu0 %v557_v41, %s2271_s28  ;;  %499 = vrot.lane.b32.xlu1 %v494_v43, %s2273_s5  ;;  %v2718_v41 = vld [vmem:[#allocation2 + $0xd] sm:$0xff]  ;;  %v352_v43 = vstv %s2702_s4  ;;  %s2764_s4 = sld [smem:[#allocation4 + $0x2c]] }
 0x108   : > { %v834_v24 = vmul.f32 %v832_v51, %v2718_v41 }
 0x10b   : > { %575 = vrot.lane.b32.xlu0 %v571_v45, %s2272_s15  ;;  %513 = vrot.lane.b32.xlu1 %v508_v46, %s2274_s7  ;;  %v820_v46 = vmul.f32 %v818_v44, %v2718_v41 }
 0x10f   : > { %589 = vrot.lane.b32.xlu0 %v585_v48, %s2273_s5  ;;  %527 = vrot.lane.b32.xlu1 %v522_v49, %s2275_s20  ;;  %v353_v48 = vmul.f32 %v352_v43, %v2473_v42  ;;  %v2729_v49 = vld [vmem:[#allocation2 + $0x5] sm:$0xff] }
 0x110   : > { %v833_v54 = vmul.f32 %v832_v51, %v2729_v49  ;;  %v819_v9 = vmul.f32 %v818_v44, %v2729_v49 }
 0x113   : > { %603 = vrot.lane.b32.xlu0 %v599_v52, %s2274_s7  ;;  %549 = vrot.lane.b32.xlu1 %v544_v53, %s2270_s26 }
 0x117   : > { %617 = vrot.lane.b32.xlu0 %v613_v55, %s2275_s20  ;;  %563 = vrot.lane.b32.xlu1 %v558_v56, %s2271_s28  ;;  %v783_v55 = vmul.f32 %v782_v31, %v2664_v15  ;;  %v846_v56 = vstv %s2720_s8  ;;  %s2791_s8 = sld [smem:[#allocation4 + $0x2f]] }
 0x118   : > { %v847_v62 = vmul.f32 %v846_v56, %v2729_v49  ;;  %v848_v31 = vmul.f32 %v846_v56, %v2718_v41  ;;  %v536_v56 = vstv %s2783_s6  ;;  %s2860_s6 = sld [smem:[#allocation4 + $0x39]] }
 0x11b   : > { %639 = vrot.lane.b32.xlu0 %v635_v60, %s2270_s26  ;;  %577 = vrot.lane.b32.xlu1 %v572_v61, %s2272_s15 }
 0x11f   : > { %653 = vrot.lane.b32.xlu0 %v649_v63, %s2271_s28  ;;  %591 = vrot.lane.b32.xlu1 %v586_v0, %s2273_s5 }
 0x123   : > { %667 = vrot.lane.b32.xlu0 %v663_v2, %s2272_s15  ;;  %605 = vrot.lane.b32.xlu1 %v600_v3, %s2274_s7  ;;  %v444_v2 = vstv %s2734_s22  ;;  %s2809_s22 = sld [smem:[#allocation4 + $0x32]] }
 0x124   : > { %v446_v44 = vmul.f32 %v444_v2, %v2556_v26 }
 0x127   : > { %681 = vrot.lane.b32.xlu0 %v677_v6, %s2273_s5  ;;  %619 = vrot.lane.b32.xlu1 %v614_v7, %s2275_s20  ;;  %v861_v7 = vmul.f32 %v860_v1, %v2729_v49 }
 0x12b   : > { %695 = vrot.lane.b32.xlu0 %v691_v10, %s2274_s7  ;;  %641 = vrot.lane.b32.xlu1 %v636_v11, %s2270_s26  ;;  %v445_v10 = vmul.f32 %v444_v2, %v2518_v5 }
 0x12f   : > { %709 = vrot.lane.b32.xlu0 %v705_v13, %s2275_s20  ;;  %655 = vrot.lane.b32.xlu1 %v650_v14, %s2271_s28 }
 0x133   : > { %731 = vrot.lane.b32.xlu0 %v727_v17, %s2270_s26  ;;  %669 = vrot.lane.b32.xlu1 %v664_v18, %s2272_s15  ;;  %v875_v17 = vmul.f32 %v874_v12, %v2729_v49  ;;  %v354_v18 = vmul.f32 %v352_v43, %v2503_v59  ;;  %v862_v43 = vmul.f32 %v860_v1, %v2718_v41  ;;  %v2806_v1 = vld [vmem:[#allocation2 + $0xe] sm:$0xff] }
 0x137   : > { %337 = vrot.lane.b32.xlu0 %v2444_v32, %s2269_s19  ;;  %683 = vrot.lane.b32.xlu1 %v678_v19, %s2273_s5  ;;  %s2698_s19 = sld [smem:[#allocation4 + $0x22]]  ;;  %v888_v19 = vstv %s2748_s27 }
 0x138   : > { %s2825_s27 = sld [smem:[#allocation4 + $0x34]] }
 0x13b   : > { %747 = vrot.lane.b32.xlu0 %v742_v22, %s2271_s28  ;;  %697 = vrot.lane.b32.xlu1 %v692_v23, %s2274_s7  ;;  %v889_v23 = vmul.f32 %v888_v19, %v2729_v49 }
 0x13d   : > { %v796_v37 = vstv %s2698_s19  ;;  %s2757_s19 = sld [smem:[#allocation4 + $0x2b]] }
 0x13e   : > { %v798_v39 = vmul.f32 %v796_v37, %v2678_v20  ;;  %v797_v63 = vmul.f32 %v796_v37, %v2664_v15 }
 0x13f   : > { %761 = vrot.lane.b32.xlu0 %v756_v25, %s2272_s15  ;;  %711 = vrot.lane.b32.xlu1 %v706_v27, %s2275_s20  ;;  %v2771_v25 = vld [vmem:[#allocation2 + $0x6] sm:$0xff] }
 0x143   : > { %775 = vrot.lane.b32.xlu0 %v770_v29, %s2273_s5  ;;  %733 = vrot.lane.b32.xlu1 %v728_v30, %s2270_s26  ;;  %v910_v59 = vstv %s2757_s19  ;;  %s2832_s19 = sld [smem:[#allocation4 + $0x35]] }
 0x144   : > { %v911_v30 = vmul.f32 %v910_v59, %v2771_v25 }
 0x145   : > { %v364_v33 = vpop.permute.xlu0 %363 }
 0x146   : > { %v369_v52 = vadd.f32 %v364_v33, %v353_v48 }
 0x147   : > { %789 = vrot.lane.b32.xlu0 %v784_v34, %s2274_s7  ;;  %745 = vrot.lane.b32.xlu1 %v741_v35, %s2271_s28  ;;  %v924_v34 = vstv %s2764_s4  ;;  %s2834_s4 = sld [smem:[#allocation4 + $0x15]] }
 0x149   : > { %v378_v38 = vpop.permute.xlu0 %377 }
 0x14a   : > { %v383_v42 = vadd.f32 %v378_v38, %v369_v52 }
 0x14b   : > { %803 = vrot.lane.b32.xlu0 %v798_v39, %s2275_s20  ;;  %759 = vrot.lane.b32.xlu1 %v755_v40, %s2272_s15  ;;  %v925_v40 = vmul.f32 %v924_v34, %v2771_v25 }
 0x14d   : > { %v392_v45 = vpop.permute.xlu0 %391 }
 0x14e   : > { %v397_v58 = vadd.f32 %v392_v45, %v383_v42 }
 0x14f   : > { %825 = vrot.lane.b32.xlu0 %v820_v46, %s2270_s26  ;;  %773 = vrot.lane.b32.xlu1 %v769_v47, %s2273_s5  ;;  %v938_v47 = vstv %s2774_s17  ;;  %s2842_s17 = sld [smem:[#allocation4 + $0x36]] }
 0x151   : > { %v406_v53 = vpop.permute.xlu0 %405 }
 0x152   : > { %v411_v0 = vadd.f32 %v406_v53, %v397_v58 }
 0x153   : > { %837 = vrot.lane.b32.xlu0 %v833_v54, %s2271_s28  ;;  %787 = vrot.lane.b32.xlu1 %v783_v55, %s2274_s7  ;;  %v939_v54 = vmul.f32 %v938_v47, %v2771_v25  ;;  %v876_v55 = vmul.f32 %v874_v12, %v2718_v41 }
 0x155   : > { %v366_v60 = vpop.permute.xlu1 %365  ;;  %v420_v61 = vpop.permute.xlu0 %419 }
 0x156   : > { %v425_v3 = vadd.f32 %v420_v61, %v411_v0  ;;  %v370_v5 = vadd.f32 %v366_v60, %v354_v18  ;;  %v537_v0 = vmul.f32 %v536_v56, %v2574_v36  ;;  %v2822_v18 = vld [vmem:[#allocation2 + $0x18] sm:$0xff] }
 0x157   : > { %851 = vrot.lane.b32.xlu0 %v847_v62, %s2272_s15  ;;  %801 = vrot.lane.b32.xlu1 %v797_v63, %s2275_s20  ;;  %v890_v63 = vmul.f32 %v888_v19, %v2718_v41  ;;  %v1002_v19 = vstv %s2809_s22  ;;  %s2883_s22 = sld [smem:[#allocation4 + $0x3c]] }
 0x159   : > { %v380_v4 = vpop.permute.xlu1 %379  ;;  %v434_v6 = vpop.permute.xlu0 %433 }
 0x15a   : > { %v439_v11 = vadd.f32 %v434_v6, %v425_v3  ;;  %v384_v27 = vadd.f32 %v380_v4, %v370_v5  ;;  %v966_v3 = vstv %s2791_s8  ;;  %s2867_s8 = sld [smem:[#allocation4 + $0x3a]] }
 0x15b   : > { %865 = vrot.lane.b32.xlu0 %v861_v7, %s2273_s5  ;;  %823 = vrot.lane.b32.xlu1 %v819_v9, %s2270_s26  ;;  %v967_v9 = vmul.f32 %v966_v3, %v2771_v25 }
 0x15c   : > { %v447_v13 = vadd.f32 %v445_v10, %v439_v11  ;;  %v912_v10 = vmul.f32 %v910_v59, %v2806_v1  ;;  %v980_v11 = vstv %s2798_s21  ;;  %v1016_v59 = vstv %s2816_s23  ;;  %s2876_s21 = sld [smem:[#allocation4 + $0x3b]] }
 0x15d   : > { %v394_v14 = vpop.permute.xlu1 %393  ;;  %v456_v16 = vpop.permute.xlu0 %455  ;;  %s2885_s23 = sld [smem:[#allocation4 + $0x1c]] }
 0x15e   : > { %v398_v28 = vadd.f32 %v394_v14, %v384_v27  ;;  %v461_v35 = vadd.f32 %v456_v16, %v447_v13  ;;  %v926_v14 = vmul.f32 %v924_v34, %v2806_v1  ;;  %v981_v16 = vmul.f32 %v980_v11, %v2771_v25 }
 0x15f   : > { %879 = vrot.lane.b32.xlu0 %v875_v17, %s2274_s7  ;;  %345 = vrot.lane.b32.xlu1 %v2444_v32, %s2268_s14  ;;  %s2781_s14 = sld [smem:[#allocation4 + $0x2e]]  ;;  %v538_v34 = vmul.f32 %v536_v56, %v2604_v50  ;;  %v1058_v56 = vstv %s2842_s17 }
 0x160   : > { %s2922_s17 = sld [smem:[#allocation4 + $0x41]] }
 0x161   : > { %v408_v21 = vpop.permute.xlu1 %407  ;;  %v470_v22 = vpop.permute.xlu0 %469 }
 0x162   : > { %v412_v33 = vadd.f32 %v408_v21, %v398_v28  ;;  %v475_v45 = vadd.f32 %v470_v22, %v461_v35 }
 0x163   : > { %893 = vrot.lane.b32.xlu0 %v889_v23, %s2275_s20  ;;  %839 = vrot.lane.b32.xlu1 %v834_v24, %s2271_s28  ;;  %v940_v23 = vmul.f32 %v938_v47, %v2806_v1  ;;  %v1003_v24 = vmul.f32 %v1002_v19, %v2822_v18  ;;  %v1044_v47 = vstv %s2832_s19  ;;  %s2900_s19 = sld [smem:[#allocation4 + $0x3e]] }
 0x165   : > { %v422_v32 = vpop.permute.xlu1 %421  ;;  %v484_v29 = vpop.permute.xlu0 %483  ;;  %v952_v42 = vstv %s2781_s14  ;;  %s2849_s14 = sld [smem:[#allocation4 + $0x37]] }
 0x166   : > { %v426_v37 = vadd.f32 %v422_v32, %v412_v33  ;;  %v489_v48 = vadd.f32 %v484_v29, %v475_v45  ;;  %v953_v62 = vmul.f32 %v952_v42, %v2771_v25  ;;  %v1017_v33 = vmul.f32 %v1016_v59, %v2822_v18 }
 0x167   : > { %915 = vrot.lane.b32.xlu0 %v911_v30, %s2270_s26  ;;  %853 = vrot.lane.b32.xlu1 %v848_v31, %s2272_s15  ;;  %v954_v31 = vmul.f32 %v952_v42, %v2806_v1  ;;  %v968_v45 = vmul.f32 %v966_v3, %v2806_v1 }
 0x169   : > { %v436_v38 = vpop.permute.xlu1 %435  ;;  %v498_v39 = vpop.permute.xlu0 %497 }
 0x16a   : > { %v440_v46 = vadd.f32 %v436_v38, %v426_v37  ;;  %v503_v26 = vadd.f32 %v498_v39, %v489_v48  ;;  %v1030_v38 = vstv %s2825_s27  ;;  %v628_v48 = vstv %s2834_s4  ;;  %s2893_s27 = sld [smem:[#allocation4 + $0x3d]] }
 0x16b   : > { %929 = vrot.lane.b32.xlu0 %v925_v40, %s2271_s28  ;;  %867 = vrot.lane.b32.xlu1 %v862_v43, %s2273_s5  ;;  %s2911_s4 = sld [smem:[#allocation4 + $0x40]] }
 0x16c   : > { %v448_v51 = vadd.f32 %v446_v44, %v440_v46  ;;  %v1031_v46 = vmul.f32 %v1030_v38, %v2822_v18 }
 0x16d   : > { %v458_v52 = vpop.permute.xlu1 %457  ;;  %v512_v53 = vpop.permute.xlu0 %511 }
 0x16e   : > { %v517_v58 = vadd.f32 %v512_v53, %v503_v26  ;;  %v462_v36 = vadd.f32 %v458_v52, %v448_v51  ;;  %v629_v26 = vmul.f32 %v628_v48, %v2620_v57 }
 0x16f   : > { %943 = vrot.lane.b32.xlu0 %v939_v54, %s2272_s15  ;;  %881 = vrot.lane.b32.xlu1 %v876_v55, %s2274_s7  ;;  %v982_v54 = vmul.f32 %v980_v11, %v2806_v1  ;;  %v1045_v55 = vmul.f32 %v1044_v47, %v2822_v18  ;;  %v1094_v11 = vstv %s2860_s6  ;;  %s2939_s6 = sld [smem:[#allocation4 + $0x43]] }
 0x171   : > { %v472_v60 = vpop.permute.xlu1 %471  ;;  %v526_v61 = vpop.permute.xlu0 %525 }
 0x172   : > { %v531_v2 = vadd.f32 %v526_v61, %v517_v58  ;;  %v476_v17 = vadd.f32 %v472_v60, %v462_v36  ;;  %v2858_v58 = vld [vmem:[#allocation2 + $0x20] sm:$0xff] }
 0x173   : > { %957 = vrot.lane.b32.xlu0 %v953_v62, %s2273_s5  ;;  %895 = vrot.lane.b32.xlu1 %v890_v63, %s2275_s20  ;;  %v1059_v63 = vmul.f32 %v1058_v56, %v2822_v18 }
 0x174   : > { %v539_v4 = vadd.f32 %v537_v0, %v531_v2  ;;  %v1004_v0 = vmul.f32 %v1002_v19, %v2858_v58  ;;  %v1072_v2 = vstv %s2849_s14  ;;  %v1108_v19 = vstv %s2867_s8  ;;  %s2932_s14 = sld [smem:[#allocation4 + $0x42]] }
 0x175   : > { %v486_v6 = vpop.permute.xlu1 %485  ;;  %v548_v7 = vpop.permute.xlu0 %547  ;;  %s2947_s8 = sld [smem:[#allocation4 + $0x44]] }
 0x176   : > { %v490_v5 = vadd.f32 %v486_v6, %v476_v17  ;;  %v553_v28 = vadd.f32 %v548_v7, %v539_v4  ;;  %v1018_v6 = vmul.f32 %v1016_v59, %v2858_v58  ;;  %v1073_v7 = vmul.f32 %v1072_v2, %v2822_v18 }
 0x177   : > { %971 = vrot.lane.b32.xlu0 %v967_v9, %s2274_s7  ;;  %917 = vrot.lane.b32.xlu1 %v912_v10, %s2270_s26  ;;  %v2873_v10 = vld [vmem:[#allocation2 + $0x19] sm:$0xff]  ;;  %v630_v59 = vmul.f32 %v628_v48, %v2650_v8  ;;  %v2908_v48 = vld [vmem:[#allocation2 + $0x21] sm:$0xff] }
 0x179   : > { %v500_v12 = vpop.permute.xlu1 %499  ;;  %v562_v13 = vpop.permute.xlu0 %561 }
 0x17a   : > { %v504_v27 = vadd.f32 %v500_v12, %v490_v5  ;;  %v567_v35 = vadd.f32 %v562_v13, %v553_v28 }
 0x17b   : > { %931 = vrot.lane.b32.xlu1 %v926_v14, %s2271_s28  ;;  %985 = vrot.lane.b32.xlu0 %v981_v16, %s2275_s20  ;;  %v1032_v14 = vmul.f32 %v1030_v38, %v2858_v58  ;;  %v1095_v16 = vmul.f32 %v1094_v11, %v2873_v10  ;;  %v1136_v38 = vstv %s2883_s22  ;;  %s2956_s22 = sld [smem:[#allocation4 + $0x23]] }
 0x17d   : > { %v514_v21 = vpop.permute.xlu1 %513  ;;  %v576_v22 = vpop.permute.xlu0 %575 }
 0x17e   : > { %v518_v32 = vadd.f32 %v514_v21, %v504_v27  ;;  %v581_v39 = vadd.f32 %v576_v22, %v567_v35  ;;  %v1109_v27 = vmul.f32 %v1108_v19, %v2873_v10  ;;  %v1060_v35 = vmul.f32 %v1058_v56, %v2858_v58 }
 0x17f   : > { %945 = vrot.lane.b32.xlu1 %v940_v23, %s2272_s15  ;;  %1007 = vrot.lane.b32.xlu0 %v1003_v24, %s2270_s26  ;;  %v1046_v24 = vmul.f32 %v1044_v47, %v2858_v58 }
 0x181   : > { %v528_v29 = vpop.permute.xlu1 %527  ;;  %v590_v30 = vpop.permute.xlu0 %589 }
 0x182   : > { %v532_v37 = vadd.f32 %v528_v29, %v518_v32  ;;  %v595_v50 = vadd.f32 %v590_v30, %v581_v39  ;;  %v1122_v29 = vstv %s2876_s21  ;;  %v720_v39 = vstv %s2885_s23  ;;  %s2954_s21 = sld [smem:[#allocation4 + $0x45]] }
 0x183   : > { %959 = vrot.lane.b32.xlu1 %v954_v31, %s2273_s5  ;;  %1021 = vrot.lane.b32.xlu0 %v1017_v33, %s2271_s28  ;;  %s2965_s23 = sld [smem:[#allocation4 + $0x47]] }
 0x184   : > { %v540_v40 = vadd.f32 %v538_v34, %v532_v37  ;;  %v1123_v37 = vmul.f32 %v1122_v29, %v2873_v10 }
 0x185   : > { %v550_v43 = vpop.permute.xlu1 %549  ;;  %v604_v44 = vpop.permute.xlu0 %603 }
 0x186   : > { %v609_v51 = vadd.f32 %v604_v44, %v595_v50  ;;  %v554_v57 = vadd.f32 %v550_v43, %v540_v40  ;;  %v721_v50 = vmul.f32 %v720_v39, %v2664_v15 }
 0x187   : > { %973 = vrot.lane.b32.xlu1 %v968_v45, %s2274_s7  ;;  %1035 = vrot.lane.b32.xlu0 %v1031_v46, %s2272_s15  ;;  %v1074_v45 = vmul.f32 %v1072_v2, %v2858_v58  ;;  %v1137_v46 = vmul.f32 %v1136_v38, %v2873_v10  ;;  %v1186_v2 = vstv %s2911_s4  ;;  %s2998_s4 = sld [smem:[#allocation4 + $0x4a]] }
 0x189   : > { %v564_v52 = vpop.permute.xlu1 %563  ;;  %v618_v53 = vpop.permute.xlu0 %617 }
 0x18a   : > { %v623_v42 = vadd.f32 %v618_v53, %v609_v51  ;;  %v568_v9 = vadd.f32 %v564_v52, %v554_v57  ;;  %v1150_v51 = vstv %s2893_s27  ;;  %s2972_s27 = sld [smem:[#allocation4 + $0x48]] }
 0x18b   : > { %987 = vrot.lane.b32.xlu1 %v982_v54, %s2275_s20  ;;  %1049 = vrot.lane.b32.xlu0 %v1045_v55, %s2273_s5  ;;  %v1096_v55 = vmul.f32 %v1094_v11, %v2908_v48  ;;  %v1151_v15 = vmul.f32 %v1150_v51, %v2873_v10  ;;  %v1200_v11 = vstv %s2922_s17  ;;  %s3008_s17 = sld [smem:[#allocation4 + $0x4b]] }
 0x18c   : > { %v631_v60 = vadd.f32 %v629_v26, %v623_v42  ;;  %v1164_v26 = vstv %s2900_s19  ;;  %s2989_s19 = sld [smem:[#allocation4 + $0x49]] }
 0x18d   : > { %v578_v61 = vpop.permute.xlu1 %577  ;;  %v640_v62 = vpop.permute.xlu0 %639 }
 0x18e   : > { %v582_v36 = vadd.f32 %v578_v61, %v568_v9  ;;  %v645_v5 = vadd.f32 %v640_v62, %v631_v60  ;;  %v1110_v61 = vmul.f32 %v1108_v19, %v2908_v48  ;;  %v1165_v62 = vmul.f32 %v1164_v26, %v2873_v10 }
 0x18f   : > { %1063 = vrot.lane.b32.xlu0 %v1059_v63, %s2274_s7  ;;  %1009 = vrot.lane.b32.xlu1 %v1004_v0, %s2270_s26  ;;  %v2929_v0 = vld [vmem:[#allocation2 + $0x1a] sm:$0xff] }
 0x191   : > { %v592_v3 = vpop.permute.xlu1 %591  ;;  %v654_v4 = vpop.permute.xlu0 %653 }
 0x192   : > { %v596_v17 = vadd.f32 %v592_v3, %v582_v36  ;;  %v659_v28 = vadd.f32 %v654_v4, %v645_v5  ;;  %v1214_v5 = vstv %s2932_s14  ;;  %s3012_s14 = sld [smem:[#allocation4 + $0x2a]] }
 0x193   : > { %1023 = vrot.lane.b32.xlu1 %v1018_v6, %s2271_s28  ;;  %1077 = vrot.lane.b32.xlu0 %v1073_v7, %s2275_s20  ;;  %v1124_v6 = vmul.f32 %v1122_v29, %v2908_v48  ;;  %v1187_v7 = vmul.f32 %v1186_v2, %v2929_v0 }
 0x195   : > { %v606_v12 = vpop.permute.xlu1 %605  ;;  %v668_v13 = vpop.permute.xlu0 %667 }
 0x196   : > { %v610_v21 = vadd.f32 %v606_v12, %v596_v17  ;;  %v673_v30 = vadd.f32 %v668_v13, %v659_v28  ;;  %v722_v17 = vmul.f32 %v720_v39, %v2678_v20  ;;  %v1228_v28 = vstv %s2939_s6  ;;  %s3019_s6 = sld [smem:[#allocation4 + $0x4c]] }
 0x197   : > { %1037 = vrot.lane.b32.xlu1 %v1032_v14, %s2272_s15  ;;  %1099 = vrot.lane.b32.xlu0 %v1095_v16, %s2270_s26  ;;  %v1138_v14 = vmul.f32 %v1136_v38, %v2908_v48  ;;  %v1201_v16 = vmul.f32 %v1200_v11, %v2929_v0 }
 0x199   : > { %v620_v22 = vpop.permute.xlu1 %619  ;;  %v682_v23 = vpop.permute.xlu0 %681 }
 0x19a   : > { %v624_v32 = vadd.f32 %v620_v22, %v610_v21  ;;  %v687_v8 = vadd.f32 %v682_v23, %v673_v30  ;;  %v1166_v30 = vmul.f32 %v1164_v26, %v2908_v48 }
 0x19b   : > { %1051 = vrot.lane.b32.xlu1 %v1046_v24, %s2273_s5  ;;  %1113 = vrot.lane.b32.xlu0 %v1109_v27, %s2271_s28  ;;  %v1152_v24 = vmul.f32 %v1150_v51, %v2908_v48  ;;  %v1215_v27 = vmul.f32 %v1214_v5, %v2929_v0 }
 0x19c   : > { %v632_v31 = vadd.f32 %v630_v59, %v624_v32 }
 0x19d   : > { %v642_v33 = vpop.permute.xlu1 %641  ;;  %v696_v34 = vpop.permute.xlu0 %695 }
 0x19e   : > { %v701_v40 = vadd.f32 %v696_v34, %v687_v8  ;;  %v646_v42 = vadd.f32 %v642_v33, %v632_v31  ;;  %v1229_v31 = vmul.f32 %v1228_v28, %v2929_v0  ;;  %v1242_v34 = vstv %s2947_s8  ;;  %s3029_s8 = sld [smem:[#allocation4 + $0x4e]] }
 0x19f   : > { %1065 = vrot.lane.b32.xlu1 %v1060_v35, %s2274_s7  ;;  %1127 = vrot.lane.b32.xlu0 %v1123_v37, %s2272_s15  ;;  %v1243_v39 = vmul.f32 %v1242_v34, %v2929_v0 }
 0x1a1   : > { %v656_v43 = vpop.permute.xlu1 %655  ;;  %v710_v44 = vpop.permute.xlu0 %709 }
 0x1a2   : > { %v715_v47 = vadd.f32 %v710_v44, %v701_v40  ;;  %v660_v63 = vadd.f32 %v656_v43, %v646_v42  ;;  %v1256_v44 = vstv %s2954_s21  ;;  %s3038_s21 = sld [smem:[#allocation4 + $0x4f]] }
 0x1a3   : > { %1079 = vrot.lane.b32.xlu1 %v1074_v45, %s2275_s20  ;;  %1141 = vrot.lane.b32.xlu0 %v1137_v46, %s2273_s5  ;;  %v812_v45 = vstv %s2956_s22  ;;  %s3053_s22 = sld [smem:[#allocation4 + $0x50]] }
 0x1a4   : > { %v2915_v52 = vadd.f32 %v721_v50, %v715_v47  ;;  %v814_v46 = vmul.f32 %v812_v45, %v2718_v41 }
 0x1a5   : > { %v670_v53 = vpop.permute.xlu1 %669  ;;  %v2917_v54 = vpop.permute.xlu0 %731 }
 0x1a6   : > { %v674_v57 = vadd.f32 %v670_v53, %v660_v63  ;;  %v737_v50 = vadd.f32 %v2917_v54, %v2915_v52 }
 0x1a7   : > { %1101 = vrot.lane.b32.xlu1 %v1096_v55, %s2270_s26  ;;  %1155 = vrot.lane.b32.xlu0 %v1151_v15, %s2274_s7  ;;  %v1257_v55 = vmul.f32 %v1256_v44, %v2929_v0 }
 0x1a9   : > { %v684_v56 = vpop.permute.xlu1 %683  ;;  %v338_v60 = vpop.permute.xlu0 %337 }
 0x1aa   : > { %340 = vst.msk [vmem:[#allocation2 + $0x29] sm:$0x1] %vm219_vm3, %v338_v60  ;;  %v688_v9 = vadd.f32 %v684_v56, %v674_v57  ;;  %v2986_v56 = vld [vmem:[#allocation2 + $0x1b] sm:$0xff]  ;;  %v1278_v60 = vstv %s2965_s23  ;;  %s3062_s23 = sld [smem:[#allocation4 + $0x51]] }
 0x1ab   : > { %1115 = vrot.lane.b32.xlu1 %v1110_v61, %s2271_s28  ;;  %1169 = vrot.lane.b32.xlu0 %v1165_v62, %s2275_s20  ;;  %v1279_v61 = vmul.f32 %v1278_v60, %v2986_v56 }
 0x1ad   : > { %v698_v3 = vpop.permute.xlu1 %697  ;;  %v748_v4 = vpop.permute.xlu0 %747 }
 0x1ae   : > { %v702_v36 = vadd.f32 %v698_v3, %v688_v9  ;;  %v813_v9 = vmul.f32 %v812_v45, %v2729_v49  ;;  %v3050_v45 = vld [vmem:[#allocation2 + $0x1c] sm:$0xff] }
 0x1af   : > { %1129 = vrot.lane.b32.xlu1 %v1124_v6, %s2272_s15  ;;  %1191 = vrot.lane.b32.xlu0 %v1187_v7, %s2270_s26 }
 0x1b1   : > { %v712_v12 = vpop.permute.xlu1 %711  ;;  %v762_v13 = vpop.permute.xlu0 %761  ;;  %v2963_v35 = vld [vmem:[#allocation2 + $0x22] sm:$0xff] }
 0x1b2   : > { %v716_v19 = vadd.f32 %v712_v12, %v702_v36  ;;  %v1188_v40 = vmul.f32 %v1186_v2, %v2963_v35  ;;  %v1202_v15 = vmul.f32 %v1200_v11, %v2963_v35  ;;  %v1216_v62 = vmul.f32 %v1214_v5, %v2963_v35 }
 0x1b3   : > { %1143 = vrot.lane.b32.xlu1 %v1138_v14, %s2273_s5  ;;  %1205 = vrot.lane.b32.xlu0 %v1201_v16, %s2271_s28  ;;  %v1292_v2 = vstv %s2972_s27  ;;  %v1230_v7 = vmul.f32 %v1228_v28, %v2963_v35  ;;  %v1306_v36 = vstv %s2989_s19  ;;  %v1244_v49 = vmul.f32 %v1242_v34, %v2963_v35  ;;  %s3077_s27 = sld [smem:[#allocation4 + $0x52]] }
 0x1b4   : > { %v724_v21 = vadd.f32 %v722_v17, %v716_v19  ;;  %v1293_v6 = vmul.f32 %v1292_v2, %v2986_v56  ;;  %v1307_v16 = vmul.f32 %v1306_v36, %v2986_v56  ;;  %v1320_v19 = vstv %s2998_s4  ;;  %s3091_s19 = sld [smem:[#allocation4 + $0x53]] }
 0x1b5   : > { %v734_v22 = vpop.permute.xlu1 %733  ;;  %v776_v23 = vpop.permute.xlu0 %775  ;;  %s3102_s4 = sld [smem:[#allocation4 + $0x55]] }
 0x1b6   : > { %v738_v59 = vadd.f32 %v734_v22, %v724_v21 }
 0x1b7   : > { %1157 = vrot.lane.b32.xlu1 %v1152_v24, %s2274_s7  ;;  %1219 = vrot.lane.b32.xlu0 %v1215_v27, %s2272_s15  ;;  %v1258_v24 = vmul.f32 %v1256_v44, %v2963_v35 }
 0x1b8   : > { %v752_v20 = vadd.f32 %v748_v4, %v738_v59  ;;  %v1334_v59 = vstv %s3008_s17  ;;  %s3115_s17 = sld [smem:[#allocation4 + $0x56]] }
 0x1b9   : > { %v746_v32 = vpop.permute.xlu1 %745  ;;  %v790_v29 = vpop.permute.xlu0 %789 }
 0x1ba   : > { %v766_v33 = vadd.f32 %v762_v13, %v752_v20  ;;  %v751_v26 = vadd.f32 %v746_v32, %v737_v50  ;;  %v904_v20 = vstv %s3012_s14  ;;  %s3080_s14 = sld [smem:[#allocation4 + $0x31]] }
 0x1bb   : > { %1171 = vrot.lane.b32.xlu1 %v1166_v30, %s2275_s20  ;;  %1233 = vrot.lane.b32.xlu0 %v1229_v31, %s2273_s5  ;;  %v1335_v30 = vmul.f32 %v1334_v59, %v2986_v56  ;;  %v905_v34 = vmul.f32 %v904_v20, %v2771_v25 }
 0x1bc   : > { %v780_v37 = vadd.f32 %v776_v23, %v766_v33  ;;  %v1321_v23 = vmul.f32 %v1320_v19, %v2986_v56  ;;  %v1348_v33 = vstv %s3019_s6  ;;  %s3130_s6 = sld [smem:[#allocation4 + $0x57]] }
 0x1bd   : > { %v760_v8 = vpop.permute.xlu1 %759  ;;  %v804_v38 = vpop.permute.xlu0 %803 }
 0x1be   : > { %v794_v43 = vadd.f32 %v790_v29, %v780_v37  ;;  %v765_v41 = vadd.f32 %v760_v8, %v751_v26  ;;  %v1384_v26 = vstv %s3038_s21  ;;  %s3152_s21 = sld [smem:[#allocation4 + $0x59]] }
 0x1bf   : > { %1247 = vrot.lane.b32.xlu0 %v1243_v39, %s2274_s7  ;;  %1193 = vrot.lane.b32.xlu1 %v1188_v40, %s2270_s26  ;;  %v1349_v39 = vmul.f32 %v1348_v33, %v2986_v56 }
 0x1c0   : > { %v808_v47 = vadd.f32 %v804_v38, %v794_v43 }
 0x1c1   : > { %v774_v51 = vpop.permute.xlu1 %773  ;;  %v2980_v53 = vpop.permute.xlu0 %825 }
 0x1c2   : > { %v2984_v42 = vadd.f32 %v814_v46, %v808_v47  ;;  %v779_v63 = vadd.f32 %v774_v51, %v765_v41  ;;  %v1370_v46 = vstv %s3029_s8  ;;  %v1385_v41 = vmul.f32 %v1384_v26, %v3050_v45  ;;  %s3137_s8 = sld [smem:[#allocation4 + $0x58]] }
 0x1c3   : > { %1261 = vrot.lane.b32.xlu0 %v1257_v55, %s2275_s20  ;;  %1207 = vrot.lane.b32.xlu1 %v1202_v15, %s2271_s28  ;;  %v1371_v51 = vmul.f32 %v1370_v46, %v3050_v45 }
 0x1c4   : > { %v830_v25 = vadd.f32 %v2980_v53, %v2984_v42 }
 0x1c5   : > { %v788_v52 = vpop.permute.xlu1 %787  ;;  %v838_v54 = vpop.permute.xlu0 %837 }
 0x1c6   : > { %v793_v57 = vadd.f32 %v788_v52, %v779_v63 }
 0x1c7   : > { %1283 = vrot.lane.b32.xlu0 %v1279_v61, %s2270_s26  ;;  %1221 = vrot.lane.b32.xlu1 %v1216_v62, %s2272_s15  ;;  %v1398_v62 = vstv %s3053_s22  ;;  %s3162_s22 = sld [smem:[#allocation4 + $0x5a]] }
 0x1c9   : > { %v802_v3 = vpop.permute.xlu1 %801  ;;  %v852_v4 = vpop.permute.xlu0 %851 }
 0x1ca   : > { %v807_v11 = vadd.f32 %v802_v3, %v793_v57  ;;  %v1399_v3 = vmul.f32 %v1398_v62, %v3050_v45 }
 0x1cb   : > { %1297 = vrot.lane.b32.xlu0 %v1293_v6, %s2271_s28  ;;  %1235 = vrot.lane.b32.xlu1 %v1230_v7, %s2273_s5  ;;  %v906_v6 = vmul.f32 %v904_v20, %v2806_v1 }
 0x1cc   : > { %v815_v12 = vadd.f32 %v813_v9, %v807_v11 }
 0x1cd   : > { %v824_v13 = vpop.permute.xlu1 %823  ;;  %v866_v14 = vpop.permute.xlu0 %865 }
 0x1ce   : > { %v829_v17 = vadd.f32 %v824_v13, %v815_v12 }
 0x1cf   : > { %1311 = vrot.lane.b32.xlu0 %v1307_v16, %s2272_s15  ;;  %1249 = vrot.lane.b32.xlu1 %v1244_v49, %s2274_s7 }
 0x1d0   : > { %v843_v5 = vadd.f32 %v838_v54, %v829_v17  ;;  %v1426_v17 = vstv %s3077_s27  ;;  %s3190_s27 = sld [smem:[#allocation4 + $0x5d]] }
 0x1d1   : > { %v346_v21 = vpop.permute.xlu1 %345  ;;  %v880_v22 = vpop.permute.xlu0 %879 }
 0x1d2   : > { %v857_v27 = vadd.f32 %v852_v4, %v843_v5  ;;  %348 = vst.msk [vmem:[#allocation2 + $0x2a] sm:$0x1] %vm219_vm3, %v346_v21  ;;  %v1412_v4 = vstv %s3062_s23  ;;  %s3177_s23 = sld [smem:[#allocation4 + $0x5c]] }
 0x1d3   : > { %1325 = vrot.lane.b32.xlu0 %v1321_v23, %s2273_s5  ;;  %1263 = vrot.lane.b32.xlu1 %v1258_v24, %s2275_s20  ;;  %v1413_v1 = vmul.f32 %v1412_v4, %v3050_v45  ;;  %v1427_v23 = vmul.f32 %v1426_v17, %v3050_v45 }
 0x1d4   : > { %v871_v28 = vadd.f32 %v866_v14, %v857_v27 }
 0x1d5   : > { %v840_v32 = vpop.permute.xlu1 %839  ;;  %v894_v29 = vpop.permute.xlu0 %893 }
 0x1d6   : > { %v885_v31 = vadd.f32 %v880_v22, %v871_v28  ;;  %v844_v55 = vadd.f32 %v840_v32, %v830_v25  ;;  %v1440_v28 = vstv %s3091_s19  ;;  %s3205_s19 = sld [smem:[#allocation4 + $0x5e]] }
 0x1d7   : > { %1339 = vrot.lane.b32.xlu0 %v1335_v30, %s2274_s7 }
 0x1d8   : > { %v899_v37 = vadd.f32 %v894_v29, %v885_v31 }
 0x1d9   : > { %v854_v8 = vpop.permute.xlu1 %853  ;;  %v916_v38 = vpop.permute.xlu0 %915  ;;  %v3045_v40 = vld [vmem:[#allocation2 + $0x23] sm:$0xff] }
 0x1da   : > { %v907_v43 = vadd.f32 %v905_v34, %v899_v37  ;;  %v1280_v44 = vmul.f32 %v1278_v60, %v3045_v40  ;;  %v1294_v15 = vmul.f32 %v1292_v2, %v3045_v40  ;;  %v858_v60 = vadd.f32 %v854_v8, %v844_v55  ;;  %v3118_v20 = vld [vmem:[#allocation2 + $0x24] sm:$0xff] }
 0x1db   : > { %1353 = vrot.lane.b32.xlu0 %v1349_v39, %s2275_s20  ;;  %v1308_v61 = vmul.f32 %v1306_v36, %v3045_v40  ;;  %v1322_v11 = vmul.f32 %v1320_v19, %v3045_v40  ;;  %v1336_v49 = vmul.f32 %v1334_v59, %v3045_v40  ;;  %v996_v19 = vstv %s3080_s14  ;;  %v3127_v34 = vld [vmem:[#allocation2 + $0x1d] sm:$0xff]  ;;  %s3155_s14 = sld [smem:[#allocation4 + $0x38]] }
 0x1dc   : > { %1285 = vrot.lane.b32.xlu1 %v1280_v44, %s2270_s26  ;;  %v921_v52 = vadd.f32 %v916_v38, %v907_v43  ;;  %v997_v24 = vmul.f32 %v996_v19, %v2822_v18  ;;  %v1350_v59 = vmul.f32 %v1348_v33, %v3045_v40  ;;  %v1441_v18 = vmul.f32 %v1440_v28, %v3050_v45 }
 0x1dd   : > { %v868_v50 = vpop.permute.xlu1 %867  ;;  %v930_v47 = vpop.permute.xlu0 %929  ;;  %v1372_v33 = vmul.f32 %v1370_v46, %v3118_v20  ;;  %v1462_v37 = vstv %s3102_s4  ;;  %v1386_v25 = vmul.f32 %v1384_v26, %v3118_v20  ;;  %v1490_v26 = vstv %s3130_s6  ;;  %s3223_s4 = sld [smem:[#allocation4 + $0x60]] }
 0x1de   : > { %v872_v54 = vadd.f32 %v868_v50, %v858_v60  ;;  %v935_v7 = vadd.f32 %v930_v47, %v921_v52  ;;  %v1463_v43 = vmul.f32 %v1462_v37, %v3127_v34  ;;  %v1476_v50 = vstv %s3115_s17  ;;  %s3226_s17 = sld [smem:[#allocation4 + $0x3f]] }
 0x1df   : > { %1375 = vrot.lane.b32.xlu0 %v1371_v51, %s2270_s26  ;;  %s3235_s6 = sld [smem:[#allocation4 + $0x61]] }
 0x1e0   : > { %1299 = vrot.lane.b32.xlu1 %v1294_v15, %s2271_s28  ;;  %v1477_v15 = vmul.f32 %v1476_v50, %v3127_v34 }
 0x1e1   : > { %v882_v53 = vpop.permute.xlu1 %881  ;;  %v944_v42 = vpop.permute.xlu0 %943 }
 0x1e2   : > { %v886_v63 = vadd.f32 %v882_v53, %v872_v54  ;;  %v949_v36 = vadd.f32 %v944_v42, %v935_v7  ;;  %v1400_v42 = vmul.f32 %v1398_v62, %v3118_v20 }
 0x1e3   : > { %1389 = vrot.lane.b32.xlu0 %v1385_v41, %s2271_s28 }
 0x1e4   : > { %1313 = vrot.lane.b32.xlu1 %v1308_v61, %s2272_s15  ;;  %v1491_v61 = vmul.f32 %v1490_v26, %v3127_v34 }
 0x1e5   : > { %v896_v2 = vpop.permute.xlu1 %895  ;;  %v958_v57 = vpop.permute.xlu0 %957 }
 0x1e6   : > { %v900_v9 = vadd.f32 %v896_v2, %v886_v63  ;;  %v963_v16 = vadd.f32 %v958_v57, %v949_v36  ;;  %v1504_v63 = vstv %s3137_s8  ;;  %v998_v2 = vmul.f32 %v996_v19, %v2858_v58  ;;  %s3264_s8 = sld [smem:[#allocation4 + $0x46]] }
 0x1e7   : > { %1403 = vrot.lane.b32.xlu0 %v1399_v3, %s2272_s15  ;;  %v1414_v3 = vmul.f32 %v1412_v4, %v3118_v20  ;;  %v1428_v58 = vmul.f32 %v1426_v17, %v3118_v20  ;;  %v1088_v4 = vstv %s3155_s14  ;;  %s3210_s14 = sld [smem:[#allocation4 + $0x5f]] }
 0x1e8   : > { %v908_v12 = vadd.f32 %v906_v6, %v900_v9  ;;  %1327 = vrot.lane.b32.xlu1 %v1322_v11, %s2273_s5  ;;  %v1505_v11 = vmul.f32 %v1504_v63, %v3127_v34  ;;  %v1089_v17 = vmul.f32 %v1088_v4, %v2873_v10 }
 0x1e9   : > { %v918_v13 = vpop.permute.xlu1 %917  ;;  %v972_v14 = vpop.permute.xlu0 %971 }
 0x1ea   : > { %v977_v5 = vadd.f32 %v972_v14, %v963_v16  ;;  %v922_v8 = vadd.f32 %v918_v13, %v908_v12  ;;  %v1518_v12 = vstv %s3152_s21  ;;  %s2280_s21 = smov 48  }
 0x1eb   : > { %1417 = vrot.lane.b32.xlu0 %v1413_v1, %s2273_s5  ;;  %v1519_v16 = vmul.f32 %v1518_v12, %v3127_v34 }
 0x1ec   : > { %1341 = vrot.lane.b32.xlu1 %v1336_v49, %s2274_s7  ;;  %v1532_v49 = vstv %s3162_s22  ;;  %s2281_s22 = smov 80  }
 0x1ed   : > { %v932_v21 = vpop.permute.xlu1 %931  ;;  %v986_v22 = vpop.permute.xlu0 %985  ;;  %v1533_v10 = vmul.f32 %v1532_v49, %v3127_v34 }
 0x1ee   : > { %v991_v27 = vadd.f32 %v986_v22, %v977_v5  ;;  %v936_v44 = vadd.f32 %v932_v21, %v922_v8  ;;  %v1442_v21 = vmul.f32 %v1440_v28, %v3118_v20  ;;  %v3193_v22 = vld [vmem:[#allocation2 + $0x25] sm:$0xff]  ;;  %v1568_v8 = vstv %s3190_s27  ;;  %s2283_s27 = smov 112  }
 0x1ef   : > { %1431 = vrot.lane.b32.xlu0 %v1427_v23, %s2274_s7  ;;  %v1464_v28 = vmul.f32 %v1462_v37, %v3193_v22  ;;  %v1478_v37 = vmul.f32 %v1476_v50, %v3193_v22 }
 0x1f0   : > { %v999_v32 = vadd.f32 %v997_v24, %v991_v27  ;;  %1355 = vrot.lane.b32.xlu1 %v1350_v59, %s2275_s20 }
 0x1f1   : > { %v946_v29 = vpop.permute.xlu1 %945  ;;  %v1008_v30 = vpop.permute.xlu0 %1007 }
 0x1f2   : > { %v1013_v31 = vadd.f32 %v1008_v30, %v999_v32  ;;  %v950_v47 = vadd.f32 %v946_v29, %v936_v44  ;;  %v3202_v32 = vld [vmem:[#allocation2 + $0x1e] sm:$0xff]  ;;  %v1554_v29 = vstv %s3177_s23  ;;  %v1492_v44 = vmul.f32 %v1490_v26, %v3193_v22  ;;  %s2282_s23 = smov 96  }
 0x1f3   : > { %1445 = vrot.lane.b32.xlu0 %v1441_v18, %s2275_s20  ;;  %v1506_v26 = vmul.f32 %v1504_v63, %v3193_v22  ;;  %v1180_v63 = vstv %s3226_s17 }
 0x1f4   : > { %1377 = vrot.lane.b32.xlu1 %v1372_v33, %s2270_s26 }
 0x1f5   : > { %v960_v38 = vpop.permute.xlu1 %959  ;;  %v1022_v39 = vpop.permute.xlu0 %1021 }
 0x1f6   : > { %v1027_v46 = vadd.f32 %v1022_v39, %v1013_v31  ;;  %v964_v60 = vadd.f32 %v960_v38, %v950_v47  ;;  %v1555_v31 = vmul.f32 %v1554_v29, %v3202_v32 }
 0x1f7   : > { %1467 = vrot.lane.b32.xlu0 %v1463_v43, %s2270_s26  ;;  %v1569_v43 = vmul.f32 %v1568_v8, %v3202_v32 }
 0x1f8   : > { %1391 = vrot.lane.b32.xlu1 %v1386_v25, %s2271_s28 }
 0x1f9   : > { %v974_v51 = vpop.permute.xlu1 %973  ;;  %v1036_v55 = vpop.permute.xlu0 %1035 }
 0x1fa   : > { %v1041_v53 = vadd.f32 %v1036_v55, %v1027_v46  ;;  %v978_v41 = vadd.f32 %v974_v51, %v964_v60  ;;  %v1582_v46 = vstv %s3205_s19  ;;  %s2060_s19 = sshll.u32 %s2321_s13, 7 }
 0x1fb   : > { %1481 = vrot.lane.b32.xlu0 %v1477_v15, %s2271_s28  ;;  %v1583_v55 = vmul.f32 %v1582_v46, %v3202_v32  ;;  %v1596_v15 = vstv %s3210_s14  ;;  %s171_s14 = scalar_lea.vmem [#allocation9], %s1953_s30 }
 0x1fc   : > { %1405 = vrot.lane.b32.xlu1 %v1400_v42, %s2272_s15 }
 0x1fd   : > { %v988_v52 = vpop.permute.xlu1 %987  ;;  %v1050_v54 = vpop.permute.xlu0 %1049 }
 0x1fe   : > { %v992_v62 = vadd.f32 %v988_v52, %v978_v41  ;;  %v1055_v57 = vadd.f32 %v1050_v54, %v1041_v53  ;;  %v1090_v53 = vmul.f32 %v1088_v4, %v2908_v48  ;;  %v1520_v48 = vmul.f32 %v1518_v12, %v3193_v22  ;;  %v3254_v12 = vld [vmem:[#allocation2 + $0x26] sm:$0xff] }
 0x1ff   : > { %1495 = vrot.lane.b32.xlu0 %v1491_v61, %s2272_s15  ;;  %v1624_v4 = vstv %s3235_s6 }
 0x200   : > { %v1000_v6 = vadd.f32 %v998_v2, %v992_v62  ;;  %1419 = vrot.lane.b32.xlu1 %v1414_v3, %s2273_s5  ;;  %v1597_v62 = vmul.f32 %v1596_v15, %v3202_v32 }
 0x201   : > { %v1010_v7 = vpop.permute.xlu1 %1009  ;;  %v1064_v9 = vpop.permute.xlu0 %1063 }
 0x202   : > { %v1014_v36 = vadd.f32 %v1010_v7, %v1000_v6  ;;  %v1069_v13 = vadd.f32 %v1064_v9, %v1055_v57  ;;  %v1610_v57 = vstv %s3223_s4  ;;  %s1862_s4 = sshll.u32 %s171_s14, 4  ;;  %s1863_s4 = int_to_ptr.vmem [resolvable:$true] %s1862_s4 }
 0x203   : > { %1509 = vrot.lane.b32.xlu0 %v1505_v11, %s2273_s5  ;;  %v1611_v9 = vmul.f32 %v1610_v57, %v3202_v32  ;;  %v1181_v11 = vmul.f32 %v1180_v63, %v2929_v0 }
 0x204   : > { %1433 = vrot.lane.b32.xlu1 %v1428_v58, %s2274_s7  ;;  %v1534_v58 = vmul.f32 %v1532_v49, %v3193_v22 }
 0x205   : > { %v1024_v14 = vpop.permute.xlu1 %1023  ;;  %v1078_v1 = vpop.permute.xlu0 %1077 }
 0x206   : > { %v1028_v19 = vadd.f32 %v1024_v14, %v1014_v36  ;;  %v1083_v5 = vadd.f32 %v1078_v1, %v1069_v13 }
 0x207   : > { %1523 = vrot.lane.b32.xlu0 %v1519_v16, %s2274_s7  ;;  %v1625_v16 = vmul.f32 %v1624_v4, %v3202_v32 }
 0x208   : > { %v1091_v23 = vadd.f32 %v1089_v17, %v1083_v5  ;;  %1447 = vrot.lane.b32.xlu1 %v1442_v21, %s2275_s20  ;;  %v1570_v21 = vmul.f32 %v1568_v8, %v3254_v12  ;;  %v1598_v8 = vmul.f32 %v1596_v15, %v3254_v12 }
 0x209   : > { %v1038_v24 = vpop.permute.xlu1 %1037  ;;  %v1100_v27 = vpop.permute.xlu0 %1099 }
 0x20a   : > { %v1042_v59 = vadd.f32 %v1038_v24, %v1028_v19  ;;  %v1105_v25 = vadd.f32 %v1100_v27, %v1091_v23  ;;  %v1556_v19 = vmul.f32 %v1554_v29, %v3254_v12 }
 0x20b   : > { %1537 = vrot.lane.b32.xlu0 %v1533_v10, %s2275_s20 }
 0x20c   : > { %1469 = vrot.lane.b32.xlu1 %v1464_v28, %s2270_s26 }
 0x20d   : > { %v1052_v30 = vpop.permute.xlu1 %1051  ;;  %v1114_v18 = vpop.permute.xlu0 %1113 }
 0x20e   : > { %v1056_v33 = vadd.f32 %v1052_v30, %v1042_v59  ;;  %v1119_v60 = vadd.f32 %v1114_v18, %v1105_v25  ;;  %v1584_v59 = vmul.f32 %v1582_v46, %v3254_v12  ;;  %v1612_v25 = vmul.f32 %v1610_v57, %v3254_v12 }
 0x20f   : > { %1559 = vrot.lane.b32.xlu0 %v1555_v31, %s2270_s26 }
 0x210   : > { %1483 = vrot.lane.b32.xlu1 %v1478_v37, %s2271_s28  ;;  %v1182_v37 = vmul.f32 %v1180_v63, %v2963_v35  ;;  %v1626_v35 = vmul.f32 %v1624_v4, %v3254_v12 }
 0x211   : > { %v1066_v38 = vpop.permute.xlu1 %1065  ;;  %v1128_v39 = vpop.permute.xlu0 %1127 }
 0x212   : > { %v1070_v50 = vadd.f32 %v1066_v38, %v1056_v33  ;;  %v1133_v41 = vadd.f32 %v1128_v39, %v1119_v60 }
 0x213   : > { %1573 = vrot.lane.b32.xlu0 %v1569_v43, %s2271_s28 }
 0x214   : > { %1497 = vrot.lane.b32.xlu1 %v1492_v44, %s2272_s15 }
 0x215   : > { %v1080_v47 = vpop.permute.xlu1 %1079  ;;  %v1142_v51 = vpop.permute.xlu0 %1141 }
 0x216   : > { %v1084_v42 = vadd.f32 %v1080_v47, %v1070_v50  ;;  %v1147_v2 = vadd.f32 %v1142_v51, %v1133_v41  ;;  %v1272_v50 = vstv %s3264_s8  ;;  %s1860_s8 = scalar_lea.hbm %s3505_s2, %s2060_s19 }
 0x217   : > { %1587 = vrot.lane.b32.xlu0 %v1583_v55, %s2272_s15  ;;  %v1273_v15 = vmul.f32 %v1272_v50, %v2986_v56 }
 0x218   : > { %v1092_v52 = vadd.f32 %v1090_v53, %v1084_v42  ;;  %1511 = vrot.lane.b32.xlu1 %v1506_v26, %s2273_s5 }
 0x219   : > { %v1102_v54 = vpop.permute.xlu1 %1101  ;;  %v1156_v61 = vpop.permute.xlu0 %1155 }
 0x21a   : > { %v1161_v3 = vadd.f32 %v1156_v61, %v1147_v2  ;;  %v1106_v0 = vadd.f32 %v1102_v54, %v1092_v52 }
 0x21b   : > { %1601 = vrot.lane.b32.xlu0 %v1597_v62, %s2273_s5 }
 0x21c   : > { %1525 = vrot.lane.b32.xlu1 %v1520_v48, %s2274_s7 }
 0x21d   : > { %v1116_v6 = vpop.permute.xlu1 %1115  ;;  %v1170_v7 = vpop.permute.xlu0 %1169 }
 0x21e   : > { %v1175_v36 = vadd.f32 %v1170_v7, %v1161_v3  ;;  %v1120_v5 = vadd.f32 %v1116_v6, %v1106_v0 }
 0x21f   : > { %1615 = vrot.lane.b32.xlu0 %v1611_v9, %s2274_s7 }
 0x220   : > { %v1183_v13 = vadd.f32 %v1181_v11, %v1175_v36  ;;  %1539 = vrot.lane.b32.xlu1 %v1534_v58, %s2275_s20  ;;  %v1274_v11 = vmul.f32 %v1272_v50, %v3045_v40 }
 0x221   : > { %v1130_v14 = vpop.permute.xlu1 %1129  ;;  %v1192_v1 = vpop.permute.xlu0 %1191 }
 0x222   : > { %v1134_v23 = vadd.f32 %v1130_v14, %v1120_v5  ;;  %v1197_v28 = vadd.f32 %v1192_v1, %v1183_v13 }
 0x223   : > { %1629 = vrot.lane.b32.xlu0 %v1625_v16, %s2275_s20 }
 0x224   : > { %1561 = vrot.lane.b32.xlu1 %v1556_v19, %s2270_s26  ;;  %s3276_s26 = sld [smem:[#allocation4 + $0x4d]] }
 0x225   : > { %v1144_v49 = vpop.permute.xlu1 %1143  ;;  %v1206_v17 = vpop.permute.xlu0 %1205 }
 0x226   : > { %v1148_v10 = vadd.f32 %v1144_v49, %v1134_v23  ;;  %v1211_v31 = vadd.f32 %v1206_v17, %v1197_v28 }
 0x228   : > { %1575 = vrot.lane.b32.xlu1 %v1570_v21, %s2271_s28  ;;  %s3281_s28 = sld [smem:[#allocation4 + $0x54]] }
 0x229   : > { %v1158_v24 = vpop.permute.xlu1 %1157  ;;  %v1220_v27 = vpop.permute.xlu0 %1219 }
 0x22a   : > { %v1162_v29 = vadd.f32 %v1158_v24, %v1148_v10  ;;  %v1225_v38 = vadd.f32 %v1220_v27, %v1211_v31  ;;  %v1364_v14 = vstv %s3276_s26  ;;  %s1848_s26 = scalar_lea.sflag [#allocation6], %s2403_s29 }
 0x22b   : > { %v1365_v49 = vmul.f32 %v1364_v14, %v3050_v45 }
 0x22c   : > { %1589 = vrot.lane.b32.xlu1 %v1584_v59, %s2272_s15  ;;  %s3286_s15 = sld [smem:[#allocation4 + $0x5b]] }
 0x22d   : > { %v1172_v30 = vpop.permute.xlu1 %1171  ;;  %v1234_v18 = vpop.permute.xlu0 %1233 }
 0x22e   : > { %v1176_v33 = vadd.f32 %v1172_v30, %v1162_v29  ;;  %v1239_v46 = vadd.f32 %v1234_v18, %v1225_v38 }
 0x230   : > { %v1184_v39 = vadd.f32 %v1182_v37, %v1176_v33  ;;  %1603 = vrot.lane.b32.xlu1 %v1598_v8, %s2273_s5  ;;  %s2277_s5 = smov 16  }
 0x231   : > { %v1194_v43 = vpop.permute.xlu1 %1193  ;;  %v1248_v44 = vpop.permute.xlu0 %1247 }
 0x232   : > { %v1253_v47 = vadd.f32 %v1248_v44, %v1239_v46  ;;  %v1198_v41 = vadd.f32 %v1194_v43, %v1184_v39  ;;  %v1366_v44 = vmul.f32 %v1364_v14, %v3118_v20  ;;  %v1456_v46 = vstv %s3281_s28  ;;  %s2189_s28 = scalar_lea.vmem %s1863_s4, 128 }
 0x233   : > { %p2190_p6 = scmp.ne.s32.totalorder %s1863_s4, %s2189_s28 }
 0x234   : > { %1617 = vrot.lane.b32.xlu1 %v1612_v25, %s2274_s7  ;;  %s2278_s7 = smov 32  }
 0x235   : > { %v1208_v51 = vpop.permute.xlu1 %1207  ;;  %v1262_v55 = vpop.permute.xlu0 %1261  ;;  %p2191_p7 = pnand %p2190_p6, %p3563_p8 }
 0x236   : > { %v1267_v60 = vadd.f32 %v1262_v55, %v1253_v47  ;;  %v1212_v61 = vadd.f32 %v1208_v51, %v1198_v41 }
 0x237   : > { %p2192_p10 = pneg %p2191_p7 }
 0x238   : > { %1631 = vrot.lane.b32.xlu1 %v1626_v35, %s2275_s20  ;;  %v1275_v53 = vadd.f32 %v1273_v15, %v1267_v60  ;;  %v1457_v60 = vmul.f32 %v1456_v46, %v3127_v34  ;;  %s2279_s20 = smov 64  }
 0x239   : > { %v1222_v42 = vpop.permute.xlu1 %1221  ;;  %v1284_v26 = vpop.permute.xlu0 %1283 }
 0x23a   : > { %v1226_v62 = vadd.f32 %v1222_v42, %v1212_v61  ;;  %v1289_v63 = vadd.f32 %v1284_v26, %v1275_v53 }
 0x23d   : > { %v1236_v52 = vpop.permute.xlu1 %1235  ;;  %v1298_v54 = vpop.permute.xlu0 %1297 }
 0x23e   : > { %v1240_v57 = vadd.f32 %v1236_v52, %v1226_v62  ;;  %v1303_v7 = vadd.f32 %v1298_v54, %v1289_v63 }
 0x241   : > { %v1250_v2 = vpop.permute.xlu1 %1249  ;;  %v1312_v48 = vpop.permute.xlu0 %1311 }
 0x242   : > { %v1254_v3 = vadd.f32 %v1250_v2, %v1240_v57  ;;  %v1317_v36 = vadd.f32 %v1312_v48, %v1303_v7 }
 0x245   : > { %v1264_v6 = vpop.permute.xlu1 %1263  ;;  %v1326_v56 = vpop.permute.xlu0 %1325 }
 0x246   : > { %v1268_v9 = vadd.f32 %v1264_v6, %v1254_v3  ;;  %v1331_v13 = vadd.f32 %v1326_v56, %v1317_v36  ;;  %v1548_v36 = vstv %s3286_s15  ;;  %s2284_s15 = smov [#allocation9]  }
 0x248   : > { %v1276_v58 = vadd.f32 %v1274_v11, %v1268_v9  ;;  %v1458_v11 = vmul.f32 %v1456_v46, %v3193_v22 }
 0x249   : > { %v1340_v4 = vpop.permute.xlu0 %1339 }
 0x24a   : > { %v1345_v1 = vadd.f32 %v1340_v4, %v1331_v13 }
 0x24d   : > { %v1354_v16 = vpop.permute.xlu0 %1353 }
 0x24e   : > { %v1359_v19 = vadd.f32 %v1354_v16, %v1345_v1  ;;  %v1286_v0 = vpop.permute.xlu1 %1285  ;;  %v1549_v16 = vmul.f32 %v1548_v36, %v3202_v32 }
 0x24f   : > { %v1290_v27 = vadd.f32 %v1286_v0, %v1276_v58 }
 0x250   : > { %v1367_v17 = vadd.f32 %v1365_v49, %v1359_v19 }
 0x251   : > { %v1376_v5 = vpop.permute.xlu0 %1375 }
 0x252   : > { %v1300_v21 = vpop.permute.xlu1 %1299  ;;  %v1381_v28 = vadd.f32 %v1376_v5, %v1367_v17 }
 0x253   : > { %v1304_v40 = vadd.f32 %v1300_v21, %v1290_v27 }
 0x255   : > { %v1390_v23 = vpop.permute.xlu0 %1389 }
 0x256   : > { %v1314_v24 = vpop.permute.xlu1 %1313  ;;  %v1395_v18 = vadd.f32 %v1390_v23, %v1381_v28 }
 0x257   : > { %v1318_v29 = vadd.f32 %v1314_v24, %v1304_v40 }
 0x259   : > { %v1404_v10 = vpop.permute.xlu0 %1403 }
 0x25a   : > { %v1328_v59 = vpop.permute.xlu1 %1327  ;;  %v1409_v37 = vadd.f32 %v1404_v10, %v1395_v18 }
 0x25b   : > { %v1332_v33 = vadd.f32 %v1328_v59, %v1318_v29 }
 0x25d   : > { %v1418_v30 = vpop.permute.xlu0 %1417 }
 0x25e   : > { %v1342_v31 = vpop.permute.xlu1 %1341  ;;  %v1423_v38 = vadd.f32 %v1418_v30, %v1409_v37 }
 0x25f   : > { %v1346_v45 = vadd.f32 %v1342_v31, %v1332_v33 }
 0x261   : > { %v1432_v8 = vpop.permute.xlu0 %1431 }
 0x262   : > { %v1356_v39 = vpop.permute.xlu1 %1355  ;;  %v1437_v25 = vadd.f32 %v1432_v8, %v1423_v38 }
 0x263   : > { %v1360_v43 = vadd.f32 %v1356_v39, %v1346_v45  ;;  %v1550_v45 = vmul.f32 %v1548_v36, %v3254_v12 }
 0x265   : > { %v1446_v50 = vpop.permute.xlu0 %1445  ;;  %v1368_v47 = vadd.f32 %v1366_v44, %v1360_v43 }
 0x266   : > { %v1451_v51 = vadd.f32 %v1446_v50, %v1437_v25  ;;  %v1378_v55 = vpop.permute.xlu1 %1377 }
 0x267   : > { %v1382_v41 = vadd.f32 %v1378_v55, %v1368_v47 }
 0x268   : > { %v1459_v35 = vadd.f32 %v1457_v60, %v1451_v51 }
 0x269   : > { %v1468_v15 = vpop.permute.xlu0 %1467 }
 0x26a   : > { %v1392_v53 = vpop.permute.xlu1 %1391  ;;  %v1473_v20 = vadd.f32 %v1468_v15, %v1459_v35 }
 0x26b   : > { %v1396_v61 = vadd.f32 %v1392_v53, %v1382_v41 }
 0x26d   : > { %v1482_v42 = vpop.permute.xlu0 %1481 }
 0x26e   : > { %v1406_v26 = vpop.permute.xlu1 %1405  ;;  %v1487_v48 = vadd.f32 %v1482_v42, %v1473_v20 }
 0x26f   : > { %v1410_v62 = vadd.f32 %v1406_v26, %v1396_v61 }
 0x271   : > { %v1496_v52 = vpop.permute.xlu0 %1495 }
 0x272   : > { %v1420_v54 = vpop.permute.xlu1 %1419  ;;  %v1501_v3 = vadd.f32 %v1496_v52, %v1487_v48  ;;  %v1649_v52 = vlaneseq }
 0x273   : > { %v1424_v63 = vadd.f32 %v1420_v54, %v1410_v62  ;;  %v2276_v54 = vmov 1966171168  }
 0x274   : > { %v1656_v61 = vunpack.c.l.s4 %v2276_v54  ;;  %vm3297_vm4 = vcmp.lt.s32.totalorder %v1649_v52, 16  ;;  %vm3306_vm5 = vcmp.ge.s32.totalorder %v1649_v52, 16  ;;  %vm3311_vm6 = vcmp.lt.s32.totalorder %v1649_v52, 32 }
 0x275   : > { %v1510_v2 = vpop.permute.xlu0 %1509  ;;  %vm3513_vm7 = vmand %vm3306_vm5, %vm3311_vm6  ;;  %vm3320_vm8 = vcmp.ge.s32.totalorder %v1649_v52, 32  ;;  %vm3325_vm9 = vcmp.lt.s32.totalorder %v1649_v52, 48  ;;  %vm3344_vm11 = vcmp.ge.s32.totalorder %v1649_v52, 48  ;;  %vm3349_vm12 = vcmp.lt.s32.totalorder %v1649_v52, 64 }
 0x276   : > { %v1434_v57 = vpop.permute.xlu1 %1433  ;;  %v1515_v56 = vadd.f32 %v1510_v2, %v1501_v3  ;;  %v1657_v62 = vunpack.c.0.s8 %v1656_v61  ;;  %v3293_v2 = vshrl.u32 %v1649_v52, 7  ;;  %vm3510_vm10 = vmand %vm3320_vm8, %vm3325_vm9  ;;  %vm3354_vm13 = vcmp.ge.s32.totalorder %v1649_v52, 64 }
 0x277   : > { %v1438_v34 = vadd.f32 %v1434_v57, %v1424_v63  ;;  %vm3359_vm14 = vcmp.lt.s32.totalorder %v1649_v52, 80  ;;  %vm3512_vm15 = vmand %vm3344_vm11, %vm3349_vm12  ;;  %vm3372_vm1 = vcmp.ge.s32.totalorder %v1649_v52, 80  ;;  %vm3377_vm2 = vcmp.lt.s32.totalorder %v1649_v52, 96 }
 0x278   : > { %v1660_v48 = vsub.s32 %v1657_v62, %v3293_v2  ;;  %vm3511_vm0 = vmand %vm3354_vm13, %vm3359_vm14  ;;  %v1837_v61 = vsub.s32 0, %v3293_v2 }
 0x279   : > { %v1524_v6 = vpop.permute.xlu0 %1523  ;;  %vm3514_vm3 = vmand %vm3372_vm1, %vm3377_vm2 }
 0x27a   : > { %v1448_v7 = vpop.permute.xlu1 %1447  ;;  %v1529_v58 = vadd.f32 %v1524_v6, %v1515_v56 }
 0x27b   : > { %v1452_v9 = vadd.f32 %v1448_v7, %v1438_v34 }
 0x27d   : > { %v1538_v4 = vpop.permute.xlu0 %1537  ;;  %v1460_v13 = vadd.f32 %v1458_v11, %v1452_v9 }
 0x27e   : > { %v1543_v14 = vadd.f32 %v1538_v4, %v1529_v58  ;;  %v1470_v1 = vpop.permute.xlu1 %1469 }
 0x27f   : > { %v1474_v21 = vadd.f32 %v1470_v1, %v1460_v13 }
 0x280   : > { %v1551_v19 = vadd.f32 %v1549_v16, %v1543_v14 }
 0x281   : > { %v1560_v0 = vpop.permute.xlu0 %1559 }
 0x282   : > { %v1484_v49 = vpop.permute.xlu1 %1483  ;;  %v1565_v10 = vadd.f32 %v1560_v0, %v1551_v19 }
 0x283   : > { %v1488_v27 = vadd.f32 %v1484_v49, %v1474_v21 }
 0x285   : > { %v1574_v17 = vpop.permute.xlu0 %1573 }
 0x286   : > { %v1498_v5 = vpop.permute.xlu1 %1497  ;;  %v1579_v40 = vadd.f32 %v1574_v17, %v1565_v10 }
 0x287   : > { %v1502_v59 = vadd.f32 %v1498_v5, %v1488_v27 }
 0x289   : > { %v1588_v23 = vpop.permute.xlu0 %1587 }
 0x28a   : > { %v1512_v24 = vpop.permute.xlu1 %1511  ;;  %v1593_v30 = vadd.f32 %v1588_v23, %v1579_v40 }
 0x28b   : > { %v1516_v29 = vadd.f32 %v1512_v24, %v1502_v59 }
 0x28d   : > { %v1602_v22 = vpop.permute.xlu0 %1601 }
 0x28e   : > { %v1526_v28 = vpop.permute.xlu1 %1525  ;;  %v1607_v33 = vadd.f32 %v1602_v22, %v1593_v30 }
 0x28f   : > { %v1530_v18 = vadd.f32 %v1526_v28, %v1516_v29 }
 0x291   : > { %v1616_v31 = vpop.permute.xlu0 %1615 }
 0x292   : > { %v1540_v32 = vpop.permute.xlu1 %1539  ;;  %v1621_v8 = vadd.f32 %v1616_v31, %v1607_v33 }
 0x293   : > { %v1544_v37 = vadd.f32 %v1540_v32, %v1530_v18 }
 0x295   : > { %v1630_v38 = vpop.permute.xlu0 %1629  ;;  %v1552_v39 = vadd.f32 %v1550_v45, %v1544_v37 }
 0x296   : > { %v1635_v43 = vadd.f32 %v1630_v38, %v1621_v8  ;;  %v1562_v44 = vpop.permute.xlu1 %1561 }
 0x297   : > { %v1566_v47 = vadd.f32 %v1562_v44, %v1552_v39 }
 0x298   : > { %v2052_v46 = vmul.f32 -1.442695, %v1635_v43 }
 0x29a   : > { %2142 = vpow2.f32 %v2052_v46  ;;  %v1576_v25 = vpop.permute.xlu1 %1575  ;;  %v3546_v46 = vmov 0 }
 0x29b   : > { %v1580_v55 = vadd.f32 %v1576_v25, %v1566_v47  ;;  %v3547_v46 = vsel %vm3377_vm2, 4294967295, %v3546_v46 }
 0x29e   : > { %v1590_v50 = vpop.permute.xlu1 %1589 }
 0x29f   : > { %v1594_v60 = vadd.f32 %v1590_v50, %v1580_v55 }
 0x2a2   : > { %v1604_v51 = vpop.permute.xlu1 %1603 }
 0x2a3   : > { %v1608_v53 = vadd.f32 %v1604_v51, %v1594_v60 }
 0x2a6   : > { %v1618_v35 = vpop.permute.xlu1 %1617 }
 0x2a7   : > { %v2143_v15 = vpop.eup %2142  ;;  %v1622_v26 = vadd.f32 %v1618_v35, %v1608_v53 }
 0x2a8   : > { %v1643_v42 = vadd.f32 1.0, %v2143_v15 }
 0x2aa   : > { %2144 = vrcp.f32 %v1643_v42  ;;  %v1632_v12 = vpop.permute.xlu1 %1631 }
 0x2ab   : > { %v1636_v41 = vadd.f32 %v1632_v12, %v1622_v26 }
 0x2ad   : > { %v2053_v20 = vmul.f32 -1.442695, %v1636_v41 }
 0x2af   : > { %2146 = vpow2.f32 %v2053_v20  ;;  %v1841_v20 = vsub.s32 1, %v3293_v2 }
 0x2b7   : > { %v2145_v63 = vpop.eup %2144 }
 0x2b8   : > { %v1661_v3 = vrot.slane %v2145_v63, %v1660_v48  ;;  %1653 = vst.msk [vmem:[#allocation3] sm:$0x1] %vm3297_vm4, %v2145_v63  ;;  %v1700_v9 = vcombine.high %v2145_v63, %v2145_v63  ;;  %v1833_v63 = vld [vmem:[%s2409_s3] sm:$0xff]  ;;  %s2193_s3 = sshll.u32 %s2284_s15, 4  ;;  %s2194_s3 = int_to_ptr.vmem [resolvable:$false] %s2193_s3 }
 0x2b9   : > { %s2195_s13 = scalar_lea.vmem %s2194_s3, 256  ;;  %p2196_p11 = scmp.lt.s32.totalorder %s1863_s4, %s2194_s3 }
 0x2ba   : > { %v1662_v34 = vcombine.high %v1661_v3, %v1661_v3  ;;  %v1669_v7 = vrot.slane %v1661_v3, %v1660_v48  ;;  %v1707_v58 = vrot.slane %v1700_v9, %v1660_v48  ;;  %p2197_p0 = scmp.lt.s32.totalorder %s2195_s13, %s2189_s28 }
 0x2bc   : > { %v2147_v6 = vpop.eup %2146  ;;  %v1676_v56 = vrot.slane %v1662_v34, %v1660_v48  ;;  %v1684_v36 = vcombine.high %v1669_v7, %v1669_v7  ;;  %v1714_v4 = vrot.slane %v1707_v58, %v1660_v48  ;;  %v1722_v14 = vcombine.high %v1707_v58, %v1707_v58  ;;  %p2198_p3 = por %p2197_p0, %p2196_p11 }
 0x2bd   : > { %v1644_v11 = vadd.f32 1.0, %v2147_v6 }
 0x2be   : > { %1677 = vrot.lane.b32.xlu0 %v1676_v56, %s2277_s5  ;;  %v1692_v13 = vcombine.high %v1676_v56, %v1676_v56  ;;  %v1729_v16 = vrot.slane %v1722_v14, %v1660_v48  ;;  %v1737_v49 = vcombine.high %v1714_v4, %v1714_v4  ;;  %p2199_p5 = pnand %p2198_p3, %p2192_p10 }
 0x2bf   : > { %2148 = vrcp.f32 %v1644_v11 }
 0x2c0   : > { %v1745_v23 = vcombine.high %v1729_v16, %v1729_v16 }
 0x2c2   : > { %1685 = vrot.lane.b32.xlu0 %v1684_v36, %s2278_s7 }
 0x2c6   : > { %1715 = vrot.lane.b32.xlu0 %v1714_v4, %s2279_s20 }
 0x2ca   : > { %1693 = vrot.lane.b32.xlu0 %v1692_v13, %s2280_s21 }
 0x2cc   : > { %v2149_v1 = vpop.eup %2148 }
 0x2cd   : > { %v1761_v19 = vrot.slane %v2149_v1, %v1660_v48  ;;  %1753 = vst.msk [vmem:[#allocation3 + $0x1] sm:$0x1] %vm3297_vm4, %v2149_v1  ;;  %v1791_v21 = vcombine.high %v2149_v1, %v2149_v1  ;;  %vm3396_vm4 = vcmp.ge.s32.totalorder %v1649_v52, 96 }
 0x2ce   : > { %1730 = vrot.lane.b32.xlu0 %v1729_v16, %s2281_s22 }
 0x2cf   : > { %v1762_v0 = vcombine.high %v1761_v19, %v1761_v19  ;;  %v1769_v5 = vrot.slane %v1761_v19, %v1660_v48  ;;  %v1798_v27 = vrot.slane %v1791_v21, %v1660_v48 }
 0x2d1   : > { %v1776_v17 = vrot.slane %v1762_v0, %v1660_v48  ;;  %v1781_v24 = vcombine.high %v1769_v5, %v1769_v5  ;;  %v1805_v10 = vrot.slane %v1798_v27, %v1660_v48  ;;  %v1810_v22 = vcombine.high %v1798_v27, %v1798_v27 }
 0x2d2   : > { %1738 = vrot.lane.b32.xlu0 %v1737_v49, %s2282_s23 }
 0x2d3   : > { %1777 = vrot.lane.b32.xlu1 %v1776_v17, %s2277_s5  ;;  %v1786_v59 = vcombine.high %v1776_v17, %v1776_v17  ;;  %v1817_v40 = vrot.slane %v1810_v22, %v1660_v48  ;;  %v1822_v28 = vcombine.high %v1805_v10, %v1805_v10 }
 0x2d5   : > { %v1827_v29 = vcombine.high %v1817_v40, %v1817_v40 }
 0x2d6   : > { %1746 = vrot.lane.b32.xlu0 %v1745_v23, %s2283_s27 }
 0x2d7   : > { %1782 = vrot.lane.b32.xlu1 %v1781_v24, %s2278_s7 }
 0x2db   : > { %1806 = vrot.lane.b32.xlu1 %v1805_v10, %s2279_s20 }
 0x2df   : > { %1787 = vrot.lane.b32.xlu1 %v1786_v59, %s2280_s21 }
 0x2e3   : > { %1818 = vrot.lane.b32.xlu1 %v1817_v40, %s2281_s22 }
 0x2e7   : > { %1823 = vrot.lane.b32.xlu1 %v1822_v28, %s2282_s23 }
 0x2eb   : > { %1828 = vrot.lane.b32.xlu1 %v1827_v29, %s2283_s27 }
 0x330   : > { %v1678_v32 = vpop.permute.xlu0 %1677 }
 0x331   : > { %1683 = vst.msk [vmem:[#allocation3] sm:$0x1] %vm3513_vm7, %v1678_v32  ;;  %vm3420_vm7 = vcmp.lt.s32.totalorder %v1649_v52, 128 }
 0x334   : > { %v1686_v37 = vpop.permute.xlu0 %1685 }
 0x335   : > { %1691 = vst.msk [vmem:[#allocation3] sm:$0x1] %vm3510_vm10, %v1686_v37  ;;  %vm3401_vm10 = vcmp.lt.s32.totalorder %v1649_v52, 112 }
 0x338   : > { %v1716_v38 = vpop.permute.xlu0 %1715 }
 0x33c   : > { %v1694_v25 = vpop.permute.xlu0 %1693 }
 0x33d   : > { %1699 = vst.msk [vmem:[#allocation3] sm:$0x1] %vm3512_vm15, %v1694_v25  ;;  %vm3415_vm15 = vcmp.ge.s32.totalorder %v1649_v52, 112 }
 0x33e   : > { %1721 = vst.msk [vmem:[#allocation3] sm:$0x1] %vm3511_vm0, %v1716_v38  ;;  %vm3516_vm0 = vmand %vm3396_vm4, %vm3401_vm10 }
 0x33f   : > { %vm1751_vm2 = vmand %vm3415_vm15, %vm3420_vm7  ;;  %vm3560_vm7 = vnez %v3547_v46 }
 0x340   : > { %v1731_v51 = vpop.permute.xlu0 %1730 }
 0x341   : > { %1736 = vst.msk [vmem:[#allocation3] sm:$0x1] %vm3514_vm3, %v1731_v51  ;;  %vm3556_vm3 = vmand %vm3306_vm5, %vm3311_vm6 }
 0x342   : > { %vm3558_vm5 = vmand %vm3344_vm11, %vm3349_vm12 }
 0x343   : > { %vm3559_vm6 = vmand %vm3354_vm13, %vm3359_vm14 }
 0x344   : > { %v1739_v35 = vpop.permute.xlu0 %1738 }
 0x345   : > { %1744 = vst.msk [vmem:[#allocation3] sm:$0x1] %vm3516_vm0, %v1739_v35  ;;  %v1778_v15 = vpop.permute.xlu1 %1777  ;;  %vm3557_vm0 = vmand %vm3320_vm8, %vm3325_vm9 }
 0x346   : > { %1780 = vst.msk [vmem:[#allocation3 + $0x1] sm:$0x1] %vm3556_vm3, %v1778_v15  ;;  %vm3561_vm8 = vmand %vm3372_vm1, %vm3560_vm7 }
 0x347   : > { %vm3562_vm9 = vmand %vm3396_vm4, %vm3401_vm10 }
 0x348   : > { %v1747_v53 = vpop.permute.xlu0 %1746 }
 0x349   : > { %1752 = vst.msk [vmem:[#allocation3] sm:$0x1] %vm1751_vm2, %v1747_v53  ;;  %v1783_v42 = vpop.permute.xlu1 %1782 }
 0x34a   : > { %1785 = vst.msk [vmem:[#allocation3 + $0x1] sm:$0x1] %vm3557_vm0, %v1783_v42 }
 0x34d   : > { %v1807_v26 = vpop.permute.xlu1 %1806 }
 0x351   : > { %v1788_v12 = vpop.permute.xlu1 %1787 }
 0x352   : > { %1790 = vst.msk [vmem:[#allocation3 + $0x1] sm:$0x1] %vm3558_vm5, %v1788_v12 }
 0x353   : > { %1809 = vst.msk [vmem:[#allocation3 + $0x1] sm:$0x1] %vm3559_vm6, %v1807_v26 }
 0x355   : > { %v1819_v41 = vpop.permute.xlu1 %1818 }
 0x356   : > { %1821 = vst.msk [vmem:[#allocation3 + $0x1] sm:$0x1] %vm3561_vm8, %v1819_v41 }
 0x359   : > { %v1824_v52 = vpop.permute.xlu1 %1823 }
 0x35a   : > { %1826 = vst.msk [vmem:[#allocation3 + $0x1] sm:$0x1] %vm3562_vm9, %v1824_v52 }
 0x35d   : > { %v1829_v54 = vpop.permute.xlu1 %1828 }
 0x35e   : > { %1831 = vst.msk [vmem:[#allocation3 + $0x1] sm:$0x1] %vm1751_vm2, %v1829_v54 }
 0x365   : > { %v1832_v62 = vld [vmem:[#allocation3] sm:$0x3] }
 0x366   : > { %v1838_v48 = vrot.slane %v1832_v62, %v1837_v61  ;;  %v1842_v57 = vrot.slane %v1832_v62, %v1841_v20 }
 0x368   : > { %v1843_v3 = vcombine.low %v1838_v48, %v1842_v57 }
 0x36a   : > { %v1845_v34 = vmul.f32 %v1843_v3, %v1833_v63 }
 0x36c   : > { %1846 = vst [vmem:[%s171_s14] sm:$0xff] %v1845_v34 }
 0x36d   : > { %2202 = shalt.err (!%p2199_p5)
}
 0x36e   : > { %s2203_s30 = scalar_lea.hbm %s1860_s8, 128  ;;  %s2207_s7 = scalar_lea.hbm %s3505_s2, 256 }
 0x36f   : > { %p2204_p2 = scmp.ne.s32.totalorder %s1860_s8, %s2203_s30  ;;  %p2208_p9 = scmp.lt.s32.totalorder %s1860_s8, %s3505_s2 }
 0x370   : > { %p2209_p1 = scmp.lt.s32.totalorder %s2207_s7, %s2203_s30 }
 0x371   : > { %p2205_p12 = pnand %p2204_p2, %p3563_p8 }
 0x372   : > { %p2210_p4 = por %p2209_p1, %p2208_p9 }
 0x373   : > { %p2206_p13 = pneg %p2205_p12 }
 0x375   : > { %p2211_p6 = pnand %p2210_p4, %p2206_p13 }
 0x377   : > { %2214 = shalt.err (!%p2211_p6)
}
 0x378   : > { %2067 = dma.vmem_to_hbm [thread:$0]  (%p3563_p8), %s1863_s4, 128, %s1860_s8, %s1848_s26  }
 0x379 PF: > { %s1874_s22 = sand.u32 1, %s2245_s9   ;;  %p3564_p7 = scmp.ne.s32.totalorder %s3518_s16, 0 }
 0x37a   : > { %p3565_p10 = scmp.ge.s32.totalorder %s2257_s12, 2  ;;  %s1875_s23 = scalar_lea.sflag [#allocation6], %s1874_s22 }
 0x37c   : > { %p2078_p11 = pnand %p3565_p10, %p3564_p7 }
 0x37e   : > { %p2079_p0 = pneg %p2078_p11 }
 0x380   : > { %2240 = dma.done.wait (%p2079_p0), %s1875_s23, 128  }
 0x381   : > { %2242 = vsyncadd (%p2079_p0), %s1875_s23, 4294967168  ;;  %p16_p3 = scmp.ge.s32.totalorder %s2346_s18, 4   ;;  %s3566_s9 = smov %s2249_s10 }
 0x382   : > { %s3567_s10 = smov %s2253_s11  ;;  %s3568_s11 = smov %s2363_s24 }
 0x383   : > { %s3569_s12 = smov %s2346_s18  ;;  %18 = sbr.rel (!%p16_p3) target bundleno = 6 (0x6), region = 79 }
 0x388   :  { %1880 = vsyncpa [#allocation5], 1 }
 0x389   :  { %1882 = vsyncpa [#allocation5 + $0x1], 1 }
 0x38a   :  { %1883 = vsyncpa [#allocation6], 1 }
 0x38b   :  { %1885 = vsyncpa [#allocation6 + $0x1], 1 }
 0x38c   :  { %1886 = vsyncpa [#allocation7], 1 }
 0x38d   :  { %1888 = vsyncpa [#allocation7 + $0x1], 1 }

</bundles_post_ra>
